<compile_context>
chip_gen: v7x
topology: tpu7x:2x2x1
jax: 0.10.0
libtpu: 0.0.40
codegen_flags: <defaults>
</compile_context>

<pallas_src>
import jax
import jax.numpy as jnp
from jax import lax
from jax.experimental import pallas as pl
from jax.experimental.pallas import tpu as pltpu

# ---------------------------------------------------------------------------
# Hyper-parameters, chosen so conv4's output flattens to exactly 840 features
# (required by fc1 = nn.Linear(840, 1024) in the PyTorch module).
# ---------------------------------------------------------------------------
NUM_WORDS   = 100
DIM_EMBED   = 32
NUM_CLASSES = 5
N_FILTERS   = (16, 24, 32, 84)
SEQ_LEN     = 34
HIDDEN      = 1024
BATCH       = 2
KSIZE       = 3

L1 = SEQ_LEN - 2            # 32  (conv1, k=3, valid)
L2 = L1 - 2                 # 30  (conv2)
LP = (L2 - 3) // 2 + 1      # 14  (maxpool k=3 s=2)
L3 = LP - 2                 # 12  (conv3)
L4 = L3 - 2                 # 10  (conv4)
FLAT = L4 * N_FILTERS[3]    # 840
assert FLAT == 840, "flatten size must be 840 for fc1"

# Merged-batch ("stack along sublanes with guard rows") geometry.
GAP0          = KSIZE - 1                        # guard rows between batch items
ITEM_OFF      = SEQ_LEN + GAP0                   # item b starts at row b*ITEM_OFF (36)
assert ITEM_OFF % 2 == 0, "guard gap must keep maxpool stride-2 aligned"
STACK0        = (BATCH - 1) * ITEM_OFF + SEQ_LEN # 70 embedded rows (items + guards)
M_ROWS        = STACK0 - 3 * (KSIZE - 1)         # 64 rows entering the pool select
POOL_ROWS     = M_ROWS // 2                      # 32 pooled rows (items + junk gap)
ITEM_OFF_POOL = ITEM_OFF // 2                    # 18: item b at row b*18 after pooling


# ---------------------------------------------------------------------------
# Pallas kernel: embedding + convs + pool + fc1 + fc2, whole batch, fused,
# one invocation.  Activations are channels-LAST (rows, C); the torch permute
# and channel-major flatten are folded into weight layouts in prepare_params().
# ---------------------------------------------------------------------------
def cnn_deep_kernel(tok_ref, emb_ref, w1, b1, w2, b2, w3, b3, w4, b4, sel_ref,
                    wfc1_hbm, bfc1, wfc2, bfc2, o_ref, wfc1_vmem, wfc1_sem):

    # (1) Kick off the dominant HBM transfer (840x1024 bf16 fc1 weight) NOW so
    #     it streams in behind the embedding / conv compute.
    wfc1_cp = pltpu.make_async_copy(wfc1_hbm, wfc1_vmem, wfc1_sem)
    wfc1_cp.start()

    # (2) Fused nn.Embedding: one-hot (STACK0, NUM_WORDS) @ (NUM_WORDS, E) on
    #     the MXU.  Guard rows carry token -1 -> all-zero one-hot -> zero rows.
    word_ids = lax.broadcasted_iota(jnp.int32, (STACK0, NUM_WORDS), 1)
    onehot = (word_ids == tok_ref[...]).astype(jnp.bfloat16)
    h = jnp.dot(onehot, emb_ref[...],
                preferred_element_type=jnp.float32).astype(jnp.bfloat16)

    def conv_relu(h_bf16, w_ref, b_ref):
        """Valid k=3 conv in (rows, C) layout: im2col lane-concat + one MXU
        matmul over BOTH batch items at once.  Bias add / ReLU stay f32."""
        l_out = h_bf16.shape[0] - KSIZE + 1
        col = jnp.concatenate([h_bf16[dk:dk + l_out, :] for dk in range(KSIZE)],
                              axis=1)                       # (l_out, 3*C_in) bf16
        y = jnp.dot(col, w_ref[...], preferred_element_type=jnp.float32)
        return jnp.maximum(y + b_ref[...], 0.0)             # f32

    h1 = conv_relu(h, w1, b1)                               # (68, 16) f32
    h2 = conv_relu(h1.astype(jnp.bfloat16), w2, b2)         # (66, 24) f32

    # MaxPool1d(kernel=3, stride=2): max of three stride-1 shifts (f32), then
    # keep every other row via a tiny precomputed exact 0/1 selector matmul.
    # The post-pool F.relu and Dropout(p=0.5) are identities here (all values
    # are already >= 0; inference mode).
    m = jnp.maximum(jnp.maximum(h2[0:M_ROWS], h2[1:M_ROWS + 1]), h2[2:M_ROWS + 2])
    pooled = jnp.dot(sel_ref[...], m.astype(jnp.bfloat16),
                     preferred_element_type=jnp.float32)    # (32, 24) f32

    h3 = conv_relu(pooled.astype(jnp.bfloat16), w3, b3)     # (30, 32) f32
    h4 = conv_relu(h3.astype(jnp.bfloat16), w4, b4)         # (28, 84) f32

    # l-major flatten of each batch item (item b lives at rows b*ITEM_OFF_POOL);
    # wfc1 was pre-permuted in prepare_params so this exactly reproduces torch's
    # channel-major Linear(840, 1024).
    h4b = h4.astype(jnp.bfloat16)
    flat = jnp.concatenate(
        [jnp.concatenate(
            [h4b[b * ITEM_OFF_POOL + l:b * ITEM_OFF_POOL + l + 1, :]
             for l in range(L4)], axis=1)
         for b in range(BATCH)], axis=0)                    # (BATCH, 840) bf16

    # (3) fc1 + ReLU: the big weight is needed only now -- wait for the
    #     overlapped DMA, then one M=BATCH matmul over K=840.
    wfc1_cp.wait()
    hfc = jnp.dot(flat, wfc1_vmem[...],
                  preferred_element_type=jnp.float32) + bfc1[...]
    hfc = jnp.maximum(hfc, 0.0)                             # (BATCH, HIDDEN) f32

    # fc2 kept in f32 (tiny weight, final-layer precision).
    out = jnp.dot(hfc, wfc2[...], preferred_element_type=jnp.float32) + bfc2[...]
    o_ref[...] = out.astype(o_ref.dtype)                    # (BATCH, NUM_CLASSES)


# ---------------------------------------------------------------------------
# One-time parameter preparation (hoisted out of the per-call path).
# ---------------------------------------------------------------------------
def prepare_params(p):
    def conv_w(w):  # torch (Cout, Cin, K) -> im2col (K*Cin, Cout), bf16
        cout, cin, k = w.shape
        return jnp.transpose(w, (2, 1, 0)).reshape(k * cin, cout).astype(jnp.bfloat16)

    # fc1: torch weight (HIDDEN, 840) with feature index f = c*L4 + l (c-major).
    # Re-index to l-major (f = l*F3 + c) so the kernel's row-flatten matches.
    wfc1 = jnp.transpose(p["wfc1"], (1, 0))                    # (840, H), c-major rows
    wfc1 = (wfc1.reshape(N_FILTERS[3], L4, HIDDEN)
                .transpose(1, 0, 2)
                .reshape(FLAT, HIDDEN)).astype(jnp.bfloat16)   # (840, H), l-major rows

    # MaxPool downsample selector over merged-batch rows: sel[j, i] = 1 iff i == 2j
    # (exact in bf16).  Item 1's start (row 36) is even, so the same rule covers it.
    sel = (jnp.arange(M_ROWS, dtype=jnp.int32)[None, :]
           == 2 * jnp.arange(POOL_ROWS, dtype=jnp.int32)[:, None]).astype(jnp.bfloat16)

    return {
        "emb":  p["emb"].astype(jnp.bfloat16),                 # (100, 32) bf16 table
        "w1": conv_w(p["w1"]), "b1": p["b1"][None, :].astype(jnp.float32),
        "w2": conv_w(p["w2"]), "b2": p["b2"][None, :].astype(jnp.float32),
        "w3": conv_w(p["w3"]), "b3": p["b3"][None, :].astype(jnp.float32),
        "w4": conv_w(p["w4"]), "b4": p["b4"][None, :].astype(jnp.float32),
        "sel": sel,
        "wfc1": wfc1, "bfc1": p["bfc1"][None, :].astype(jnp.float32),
        "wfc2": jnp.transpose(p["wfc2"], (1, 0)).astype(jnp.float32),  # (H, NUM_CLASSES)
        "bfc2": p["bfc2"][None, :].astype(jnp.float32),
    }


# ---------------------------------------------------------------------------
# Forward: a single pallas_call (embedding gather fused into the kernel).
# ---------------------------------------------------------------------------
def cnn_deep_forward(tokens, kp):
    assert tokens.shape == (BATCH, SEQ_LEN)

    # Stack the batch items along the row axis with GAP0 guard rows (token -1)
    # between them; the whole net then runs as single merged matmuls.
    parts = []
    for b in range(BATCH):
        if b:
            parts.append(jnp.full((GAP0,), -1, jnp.int32))
        parts.append(tokens[b].astype(jnp.int32))
    tok_stacked = jnp.concatenate(parts)[:, None]               # (STACK0, 1) int32

    weights = (kp["emb"], kp["w1"], kp["b1"], kp["w2"], kp["b2"], kp["w3"],
               kp["b3"], kp["w4"], kp["b4"], kp["sel"])
    tail = (kp["bfc1"], kp["wfc2"], kp["bfc2"])

    def full_spec(a):
        n = a.ndim
        return pl.BlockSpec(a.shape, lambda i, n=n: (0,) * n)

    in_specs = ([full_spec(tok_stacked)]
                + [full_spec(a) for a in weights]
                + [pl.BlockSpec(memory_space=pl.ANY)]           # wfc1: manual DMA
                + [full_spec(a) for a in tail])

    # Advisory cost estimate so XLA can schedule around the kernel.
    f0, f1, f2, f3 = N_FILTERS
    mxu_macs = (STACK0 * NUM_WORDS * DIM_EMBED
                + (STACK0 - 2) * 3 * DIM_EMBED * f0
                + (STACK0 - 4) * 3 * f0 * f1
                + POOL_ROWS * M_ROWS * f1
                + (POOL_ROWS - 2) * 3 * f1 * f2
                + (POOL_ROWS - 4) * 3 * f2 * f3
                + BATCH * (FLAT * HIDDEN + HIDDEN * NUM_CLASSES))
    all_in = (tok_stacked,) + weights + (kp["wfc1"],) + tail
    bytes_accessed = (sum(int(a.size) * a.dtype.itemsize for a in all_in)
                      + BATCH * NUM_CLASSES * 4)

    out = pl.pallas_call(
        cnn_deep_kernel,
        out_shape=jax.ShapeDtypeStruct((BATCH, NUM_CLASSES), jnp.float32),
        grid_spec=pltpu.PrefetchScalarGridSpec(
            num_scalar_prefetch=0,
            grid=(1,),                                  # single invocation: whole batch
            in_specs=in_specs,
            out_specs=pl.BlockSpec((BATCH, NUM_CLASSES), lambda i: (0, 0)),
            scratch_shapes=[pltpu.VMEM((FLAT, HIDDEN), jnp.bfloat16),  # wfc1 landing
                            pltpu.SemaphoreType.DMA(())],
        ),
        compiler_params=pltpu.CompilerParams(
            dimension_semantics=("arbitrary",)),
        cost_estimate=pl.CostEstimate(flops=2 * mxu_macs, transcendentals=0,
                                      bytes_accessed=bytes_accessed),
    )(tok_stacked, *weights, kp["wfc1"], *tail)

    # torch `.squeeze()`: no size-1 dims for (BATCH, NUM_CLASSES) -> no-op.
    return out


# ---------------------------------------------------------------------------
# Deterministic parameter init (torch layouts) + torch-faithful f32 reference.
# ---------------------------------------------------------------------------
def init_params(key):
    keys = jax.random.split(key, 13)
    nrm = lambda k, shape, s: s * jax.random.normal(k, shape, dtype=jnp.float32)
    f0, f1, f2, f3 = N_FILTERS
    return {
        "emb":  nrm(keys[0], (NUM_WORDS, DIM_EMBED), 1.0),
        "w1":   nrm(keys[1], (f0, DIM_EMBED, 3), 0.1), "b1": nrm(keys[2], (f0,), 0.1),
        "w2":   nrm(keys[3], (f1, f0, 3), 0.1),        "b2": nrm(keys[4], (f1,), 0.1),
        "w3":   nrm(keys[5], (f2, f1, 3), 0.1),        "b3": nrm(keys[6], (f2,), 0.1),
        "w4":   nrm(keys[7], (f3, f2, 3), 0.1),        "b4": nrm(keys[8], (f3,), 0.1),
        "wfc1": nrm(keys[9], (HIDDEN, 840), 0.05),     "bfc1": nrm(keys[10], (HIDDEN,), 0.05),
        "wfc2": nrm(keys[11], (NUM_CLASSES, HIDDEN), 0.05),
        "bfc2": nrm(keys[12], (NUM_CLASSES,), 0.05),
    }


def reference_forward(tokens, p):
    """Torch-faithful reference in plain JAX (NCW layout, channel-major flatten)."""
    x = p["emb"][tokens].astype(jnp.float32)                  # (B, S, E)
    x = jnp.transpose(x, (0, 2, 1))                           # (B, E, S)

    def conv1d(x, w, b):                                      # w: (Cout, Cin, K)
        k = w.shape[2]
        l_out = x.shape[2] - k + 1
        y = b[None, :, None]
        for dk in range(k):
            y = y + jnp.einsum("bcl,oc->bol", x[:, :, dk:dk + l_out], w[:, :, dk])
        return y

    x = jax.nn.relu(conv1d(x, p["w1"], p["b1"]))
    x = jax.nn.relu(conv1d(x, p["w2"], p["b2"]))
    l_out = (x.shape[2] - 3) // 2 + 1
    x = jnp.stack([x[:, :, 2 * i:2 * i + 3].max(axis=2) for i in range(l_out)], axis=2)
    x = jax.nn.relu(x)                                        # dropout: identity (eval)
    x = jax.nn.relu(conv1d(x, p["w3"], p["b3"]))
    x = jax.nn.relu(conv1d(x, p["w4"], p["b4"]))
    flat = x.reshape(x.shape[0], -1)                          # (B, 840), c-major
    h = jax.nn.relu(flat @ p["wfc1"].T + p["bfc1"])
    return h @ p["wfc2"].T + p["bfc2"]


if __name__ == "__main__":
    key = jax.random.PRNGKey(0)
    kparam, ktok = jax.random.split(key)
    params = init_params(kparam)
    tokens = jax.random.randint(ktok, (BATCH, SEQ_LEN), 0, NUM_WORDS, dtype=jnp.int32)

    kernel_params = prepare_params(params)        # one-time weight re-layout + bf16 cast
    fwd = jax.jit(cnn_deep_forward)

    out = jax.block_until_ready(fwd(tokens, kernel_params))
    ref = jax.block_until_ready(reference_forward(tokens, params))

    assert out.shape == (BATCH, NUM_CLASSES), out.shape
    if not jnp.allclose(out, ref, rtol=2e-2, atol=2e-2):
        raise AssertionError(
            f"Pallas/reference mismatch, max abs err {float(jnp.max(jnp.abs(out - ref)))}")
    print("KERNEL_OK")
</pallas_src>

<mosaic_0001>
module attributes {stable_mosaic.version = 11 : i64} {
  func.func @cnn_deep_kernel(%arg0: i32, %arg1: memref<70x1xi32, #tpu.memory_space<vmem>>, %arg2: memref<100x32xbf16, #tpu.memory_space<vmem>>, %arg3: memref<96x16xbf16, #tpu.memory_space<vmem>>, %arg4: memref<1x16xf32, #tpu.memory_space<vmem>>, %arg5: memref<48x24xbf16, #tpu.memory_space<vmem>>, %arg6: memref<1x24xf32, #tpu.memory_space<vmem>>, %arg7: memref<72x32xbf16, #tpu.memory_space<vmem>>, %arg8: memref<1x32xf32, #tpu.memory_space<vmem>>, %arg9: memref<96x84xbf16, #tpu.memory_space<vmem>>, %arg10: memref<1x84xf32, #tpu.memory_space<vmem>>, %arg11: memref<32x64xbf16, #tpu.memory_space<vmem>>, %arg12: memref<840x1024xbf16, #tpu.memory_space<any>>, %arg13: memref<1x1024xf32, #tpu.memory_space<vmem>>, %arg14: memref<1024x5xf32, #tpu.memory_space<vmem>>, %arg15: memref<1x5xf32, #tpu.memory_space<vmem>>, %arg16: memref<2x5xf32, #tpu.memory_space<vmem>>, %arg17: memref<840x1024xbf16, #tpu.memory_space<vmem>>, %arg18: memref<!tpu.dma_semaphore, #tpu.memory_space<semaphore_mem>>) attributes {dimension_semantics = [#tpu.dimension_semantics<arbitrary>], iteration_bounds = array<i64: 1>, scalar_prefetch = 0 : i64, scratch_operands = 2 : i64, tpu.core_type = #tpu.core_type<tc>, window_params = [{pipeline_mode = #tpu.pipeline_mode<synchronous>, transform_indices = @transform_0, window_bounds = array<i64: 70, 1>}, {pipeline_mode = #tpu.pipeline_mode<synchronous>, transform_indices = @transform_1, window_bounds = array<i64: 100, 32>}, {pipeline_mode = #tpu.pipeline_mode<synchronous>, transform_indices = @transform_2, window_bounds = array<i64: 96, 16>}, {pipeline_mode = #tpu.pipeline_mode<synchronous>, transform_indices = @transform_3, window_bounds = array<i64: 1, 16>}, {pipeline_mode = #tpu.pipeline_mode<synchronous>, transform_indices = @transform_4, window_bounds = array<i64: 48, 24>}, {pipeline_mode = #tpu.pipeline_mode<synchronous>, transform_indices = @transform_5, window_bounds = array<i64: 1, 24>}, {pipeline_mode = #tpu.pipeline_mode<synchronous>, transform_indices = @transform_6, window_bounds = array<i64: 72, 32>}, {pipeline_mode = #tpu.pipeline_mode<synchronous>, transform_indices = @transform_7, window_bounds = array<i64: 1, 32>}, {pipeline_mode = #tpu.pipeline_mode<synchronous>, transform_indices = @transform_8, window_bounds = array<i64: 96, 84>}, {pipeline_mode = #tpu.pipeline_mode<synchronous>, transform_indices = @transform_9, window_bounds = array<i64: 1, 84>}, {pipeline_mode = #tpu.pipeline_mode<synchronous>, transform_indices = @transform_10, window_bounds = array<i64: 32, 64>}, {}, {pipeline_mode = #tpu.pipeline_mode<synchronous>, transform_indices = @transform_12, window_bounds = array<i64: 1, 1024>}, {pipeline_mode = #tpu.pipeline_mode<synchronous>, transform_indices = @transform_13, window_bounds = array<i64: 1024, 5>}, {pipeline_mode = #tpu.pipeline_mode<synchronous>, transform_indices = @transform_14, window_bounds = array<i64: 1, 5>}, {pipeline_mode = #tpu.pipeline_mode<synchronous>, transform_indices = @transform_15, window_bounds = array<i64: 2, 5>}]} {
    tpu.enqueue_dma source(%arg12 : memref<840x1024xbf16, #tpu.memory_space<any>>) target(%arg17 : memref<840x1024xbf16, #tpu.memory_space<vmem>>) target_semaphore(%arg18 : memref<!tpu.dma_semaphore, #tpu.memory_space<semaphore_mem>>)
    %0 = tpu.iota {dimensions = array<i32: 1>} : vector<70x100xi32>
    %c0 = arith.constant 0 : index
    %c0_0 = arith.constant 0 : index
    %1 = vector.load %arg1[%c0, %c0_0] : memref<70x1xi32, #tpu.memory_space<vmem>>, vector<70x1xi32>
    %2 = vector.broadcast %1 : vector<70x1xi32> to vector<70x100xi32>
    %3 = arith.cmpi eq, %0, %2 : vector<70x100xi32>
    %4 = arith.extui %3 : vector<70x100xi1> to vector<70x100xi32>
    %5 = arith.sitofp %4 : vector<70x100xi32> to vector<70x100xf32>
    %6 = arith.truncf %5 : vector<70x100xf32> to vector<70x100xbf16>
    %c0_1 = arith.constant 0 : index
    %c0_2 = arith.constant 0 : index
    %7 = vector.load %arg2[%c0_1, %c0_2] : memref<100x32xbf16, #tpu.memory_space<vmem>>, vector<100x32xbf16>
    %cst = arith.constant dense<0.000000e+00> : vector<70x32xf32>
    %8 = tpu.matmul %6, %7, %cst {dimension_numbers = #tpu.dot_dimension_numbers<[1], [0], [0], [1], [0, 0, 1, 1], [], []>} : vector<70x100xbf16>, vector<100x32xbf16>, vector<70x32xf32> -> vector<70x32xf32>
    %9 = arith.truncf %8 : vector<70x32xf32> to vector<70x32xbf16>
    %10 = vector.extract_strided_slice %9 {offsets = [0, 0], sizes = [68, 32], strides = [1, 1]} : vector<70x32xbf16> to vector<68x32xbf16>
    %11 = vector.extract_strided_slice %9 {offsets = [1, 0], sizes = [68, 32], strides = [1, 1]} : vector<70x32xbf16> to vector<68x32xbf16>
    %12 = vector.extract_strided_slice %9 {offsets = [2, 0], sizes = [68, 32], strides = [1, 1]} : vector<70x32xbf16> to vector<68x32xbf16>
    %13 = tpu.concatenate %10, %11, %12 in 1 : vector<68x32xbf16>, vector<68x32xbf16>, vector<68x32xbf16> -> vector<68x96xbf16>
    %c0_3 = arith.constant 0 : index
    %c0_4 = arith.constant 0 : index
    %14 = vector.load %arg3[%c0_3, %c0_4] : memref<96x16xbf16, #tpu.memory_space<vmem>>, vector<96x16xbf16>
    %cst_5 = arith.constant dense<0.000000e+00> : vector<68x16xf32>
    %15 = tpu.matmul %13, %14, %cst_5 {dimension_numbers = #tpu.dot_dimension_numbers<[1], [0], [0], [1], [0, 0, 1, 1], [], []>} : vector<68x96xbf16>, vector<96x16xbf16>, vector<68x16xf32> -> vector<68x16xf32>
    %c0_6 = arith.constant 0 : index
    %c0_7 = arith.constant 0 : index
    %16 = vector.load %arg4[%c0_6, %c0_7] : memref<1x16xf32, #tpu.memory_space<vmem>>, vector<1x16xf32>
    %17 = vector.broadcast %16 : vector<1x16xf32> to vector<68x16xf32>
    %18 = arith.addf %15, %17 : vector<68x16xf32>
    %cst_8 = arith.constant 0.000000e+00 : f32
    %19 = vector.broadcast %cst_8 : f32 to vector<68x16xf32>
    %20 = arith.maximumf %18, %19 : vector<68x16xf32>
    %21 = arith.truncf %20 : vector<68x16xf32> to vector<68x16xbf16>
    %22 = vector.extract_strided_slice %21 {offsets = [0, 0], sizes = [66, 16], strides = [1, 1]} : vector<68x16xbf16> to vector<66x16xbf16>
    %23 = vector.extract_strided_slice %21 {offsets = [1, 0], sizes = [66, 16], strides = [1, 1]} : vector<68x16xbf16> to vector<66x16xbf16>
    %24 = vector.extract_strided_slice %21 {offsets = [2, 0], sizes = [66, 16], strides = [1, 1]} : vector<68x16xbf16> to vector<66x16xbf16>
    %25 = tpu.concatenate %22, %23, %24 in 1 : vector<66x16xbf16>, vector<66x16xbf16>, vector<66x16xbf16> -> vector<66x48xbf16>
    %c0_9 = arith.constant 0 : index
    %c0_10 = arith.constant 0 : index
    %26 = vector.load %arg5[%c0_9, %c0_10] : memref<48x24xbf16, #tpu.memory_space<vmem>>, vector<48x24xbf16>
    %cst_11 = arith.constant dense<0.000000e+00> : vector<66x24xf32>
    %27 = tpu.matmul %25, %26, %cst_11 {dimension_numbers = #tpu.dot_dimension_numbers<[1], [0], [0], [1], [0, 0, 1, 1], [], []>} : vector<66x48xbf16>, vector<48x24xbf16>, vector<66x24xf32> -> vector<66x24xf32>
    %c0_12 = arith.constant 0 : index
    %c0_13 = arith.constant 0 : index
    %28 = vector.load %arg6[%c0_12, %c0_13] : memref<1x24xf32, #tpu.memory_space<vmem>>, vector<1x24xf32>
    %29 = vector.broadcast %28 : vector<1x24xf32> to vector<66x24xf32>
    %30 = arith.addf %27, %29 : vector<66x24xf32>
    %cst_14 = arith.constant 0.000000e+00 : f32
    %31 = vector.broadcast %cst_14 : f32 to vector<66x24xf32>
    %32 = arith.maximumf %30, %31 : vector<66x24xf32>
    %33 = vector.extract_strided_slice %32 {offsets = [0, 0], sizes = [64, 24], strides = [1, 1]} : vector<66x24xf32> to vector<64x24xf32>
    %34 = vector.extract_strided_slice %32 {offsets = [1, 0], sizes = [64, 24], strides = [1, 1]} : vector<66x24xf32> to vector<64x24xf32>
    %35 = arith.maximumf %33, %34 : vector<64x24xf32>
    %36 = vector.extract_strided_slice %32 {offsets = [2, 0], sizes = [64, 24], strides = [1, 1]} : vector<66x24xf32> to vector<64x24xf32>
    %37 = arith.maximumf %35, %36 : vector<64x24xf32>
    %c0_15 = arith.constant 0 : index
    %c0_16 = arith.constant 0 : index
    %38 = vector.load %arg11[%c0_15, %c0_16] : memref<32x64xbf16, #tpu.memory_space<vmem>>, vector<32x64xbf16>
    %39 = arith.truncf %37 : vector<64x24xf32> to vector<64x24xbf16>
    %cst_17 = arith.constant dense<0.000000e+00> : vector<32x24xf32>
    %40 = tpu.matmul %38, %39, %cst_17 {dimension_numbers = #tpu.dot_dimension_numbers<[1], [0], [0], [1], [0, 0, 1, 1], [], []>} : vector<32x64xbf16>, vector<64x24xbf16>, vector<32x24xf32> -> vector<32x24xf32>
    %41 = arith.truncf %40 : vector<32x24xf32> to vector<32x24xbf16>
    %42 = vector.extract_strided_slice %41 {offsets = [0, 0], sizes = [30, 24], strides = [1, 1]} : vector<32x24xbf16> to vector<30x24xbf16>
    %43 = vector.extract_strided_slice %41 {offsets = [1, 0], sizes = [30, 24], strides = [1, 1]} : vector<32x24xbf16> to vector<30x24xbf16>
    %44 = vector.extract_strided_slice %41 {offsets = [2, 0], sizes = [30, 24], strides = [1, 1]} : vector<32x24xbf16> to vector<30x24xbf16>
    %45 = tpu.concatenate %42, %43, %44 in 1 : vector<30x24xbf16>, vector<30x24xbf16>, vector<30x24xbf16> -> vector<30x72xbf16>
    %c0_18 = arith.constant 0 : index
    %c0_19 = arith.constant 0 : index
    %46 = vector.load %arg7[%c0_18, %c0_19] : memref<72x32xbf16, #tpu.memory_space<vmem>>, vector<72x32xbf16>
    %cst_20 = arith.constant dense<0.000000e+00> : vector<30x32xf32>
    %47 = tpu.matmul %45, %46, %cst_20 {dimension_numbers = #tpu.dot_dimension_numbers<[1], [0], [0], [1], [0, 0, 1, 1], [], []>} : vector<30x72xbf16>, vector<72x32xbf16>, vector<30x32xf32> -> vector<30x32xf32>
    %c0_21 = arith.constant 0 : index
    %c0_22 = arith.constant 0 : index
    %48 = vector.load %arg8[%c0_21, %c0_22] : memref<1x32xf32, #tpu.memory_space<vmem>>, vector<1x32xf32>
    %49 = vector.broadcast %48 : vector<1x32xf32> to vector<30x32xf32>
    %50 = arith.addf %47, %49 : vector<30x32xf32>
    %cst_23 = arith.constant 0.000000e+00 : f32
    %51 = vector.broadcast %cst_23 : f32 to vector<30x32xf32>
    %52 = arith.maximumf %50, %51 : vector<30x32xf32>
    %53 = arith.truncf %52 : vector<30x32xf32> to vector<30x32xbf16>
    %54 = vector.extract_strided_slice %53 {offsets = [0, 0], sizes = [28, 32], strides = [1, 1]} : vector<30x32xbf16> to vector<28x32xbf16>
    %55 = vector.extract_strided_slice %53 {offsets = [1, 0], sizes = [28, 32], strides = [1, 1]} : vector<30x32xbf16> to vector<28x32xbf16>
    %56 = vector.extract_strided_slice %53 {offsets = [2, 0], sizes = [28, 32], strides = [1, 1]} : vector<30x32xbf16> to vector<28x32xbf16>
    %57 = tpu.concatenate %54, %55, %56 in 1 : vector<28x32xbf16>, vector<28x32xbf16>, vector<28x32xbf16> -> vector<28x96xbf16>
    %c0_24 = arith.constant 0 : index
    %c0_25 = arith.constant 0 : index
    %58 = vector.load %arg9[%c0_24, %c0_25] : memref<96x84xbf16, #tpu.memory_space<vmem>>, vector<96x84xbf16>
    %cst_26 = arith.constant dense<0.000000e+00> : vector<28x84xf32>
    %59 = tpu.matmul %57, %58, %cst_26 {dimension_numbers = #tpu.dot_dimension_numbers<[1], [0], [0], [1], [0, 0, 1, 1], [], []>} : vector<28x96xbf16>, vector<96x84xbf16>, vector<28x84xf32> -> vector<28x84xf32>
    %c0_27 = arith.constant 0 : index
    %c0_28 = arith.constant 0 : index
    %60 = vector.load %arg10[%c0_27, %c0_28] : memref<1x84xf32, #tpu.memory_space<vmem>>, vector<1x84xf32>
    %61 = vector.broadcast %60 : vector<1x84xf32> to vector<28x84xf32>
    %62 = arith.addf %59, %61 : vector<28x84xf32>
    %cst_29 = arith.constant 0.000000e+00 : f32
    %63 = vector.broadcast %cst_29 : f32 to vector<28x84xf32>
    %64 = arith.maximumf %62, %63 : vector<28x84xf32>
    %65 = arith.truncf %64 : vector<28x84xf32> to vector<28x84xbf16>
    %66 = vector.extract_strided_slice %65 {offsets = [0, 0], sizes = [1, 84], strides = [1, 1]} : vector<28x84xbf16> to vector<1x84xbf16>
    %67 = vector.extract_strided_slice %65 {offsets = [1, 0], sizes = [1, 84], strides = [1, 1]} : vector<28x84xbf16> to vector<1x84xbf16>
    %68 = vector.extract_strided_slice %65 {offsets = [2, 0], sizes = [1, 84], strides = [1, 1]} : vector<28x84xbf16> to vector<1x84xbf16>
    %69 = vector.extract_strided_slice %65 {offsets = [3, 0], sizes = [1, 84], strides = [1, 1]} : vector<28x84xbf16> to vector<1x84xbf16>
    %70 = vector.extract_strided_slice %65 {offsets = [4, 0], sizes = [1, 84], strides = [1, 1]} : vector<28x84xbf16> to vector<1x84xbf16>
    %71 = vector.extract_strided_slice %65 {offsets = [5, 0], sizes = [1, 84], strides = [1, 1]} : vector<28x84xbf16> to vector<1x84xbf16>
    %72 = vector.extract_strided_slice %65 {offsets = [6, 0], sizes = [1, 84], strides = [1, 1]} : vector<28x84xbf16> to vector<1x84xbf16>
    %73 = vector.extract_strided_slice %65 {offsets = [7, 0], sizes = [1, 84], strides = [1, 1]} : vector<28x84xbf16> to vector<1x84xbf16>
    %74 = vector.extract_strided_slice %65 {offsets = [8, 0], sizes = [1, 84], strides = [1, 1]} : vector<28x84xbf16> to vector<1x84xbf16>
    %75 = vector.extract_strided_slice %65 {offsets = [9, 0], sizes = [1, 84], strides = [1, 1]} : vector<28x84xbf16> to vector<1x84xbf16>
    %76 = tpu.concatenate %66, %67, %68, %69, %70, %71, %72, %73, %74, %75 in 1 : vector<1x84xbf16>, vector<1x84xbf16>, vector<1x84xbf16>, vector<1x84xbf16>, vector<1x84xbf16>, vector<1x84xbf16>, vector<1x84xbf16>, vector<1x84xbf16>, vector<1x84xbf16>, vector<1x84xbf16> -> vector<1x840xbf16>
    %77 = vector.extract_strided_slice %65 {offsets = [18, 0], sizes = [1, 84], strides = [1, 1]} : vector<28x84xbf16> to vector<1x84xbf16>
    %78 = vector.extract_strided_slice %65 {offsets = [19, 0], sizes = [1, 84], strides = [1, 1]} : vector<28x84xbf16> to vector<1x84xbf16>
    %79 = vector.extract_strided_slice %65 {offsets = [20, 0], sizes = [1, 84], strides = [1, 1]} : vector<28x84xbf16> to vector<1x84xbf16>
    %80 = vector.extract_strided_slice %65 {offsets = [21, 0], sizes = [1, 84], strides = [1, 1]} : vector<28x84xbf16> to vector<1x84xbf16>
    %81 = vector.extract_strided_slice %65 {offsets = [22, 0], sizes = [1, 84], strides = [1, 1]} : vector<28x84xbf16> to vector<1x84xbf16>
    %82 = vector.extract_strided_slice %65 {offsets = [23, 0], sizes = [1, 84], strides = [1, 1]} : vector<28x84xbf16> to vector<1x84xbf16>
    %83 = vector.extract_strided_slice %65 {offsets = [24, 0], sizes = [1, 84], strides = [1, 1]} : vector<28x84xbf16> to vector<1x84xbf16>
    %84 = vector.extract_strided_slice %65 {offsets = [25, 0], sizes = [1, 84], strides = [1, 1]} : vector<28x84xbf16> to vector<1x84xbf16>
    %85 = vector.extract_strided_slice %65 {offsets = [26, 0], sizes = [1, 84], strides = [1, 1]} : vector<28x84xbf16> to vector<1x84xbf16>
    %86 = vector.extract_strided_slice %65 {offsets = [27, 0], sizes = [1, 84], strides = [1, 1]} : vector<28x84xbf16> to vector<1x84xbf16>
    %87 = tpu.concatenate %77, %78, %79, %80, %81, %82, %83, %84, %85, %86 in 1 : vector<1x84xbf16>, vector<1x84xbf16>, vector<1x84xbf16>, vector<1x84xbf16>, vector<1x84xbf16>, vector<1x84xbf16>, vector<1x84xbf16>, vector<1x84xbf16>, vector<1x84xbf16>, vector<1x84xbf16> -> vector<1x840xbf16>
    %88 = tpu.concatenate %76, %87 in 0 : vector<1x840xbf16>, vector<1x840xbf16> -> vector<2x840xbf16>
    tpu.wait_dma2 semaphore(%arg18 : memref<!tpu.dma_semaphore, #tpu.memory_space<semaphore_mem>>) src(%arg12 : memref<840x1024xbf16, #tpu.memory_space<any>>) dst(%arg17 : memref<840x1024xbf16, #tpu.memory_space<vmem>>)
    %c0_30 = arith.constant 0 : index
    %c0_31 = arith.constant 0 : index
    %89 = vector.load %arg17[%c0_30, %c0_31] : memref<840x1024xbf16, #tpu.memory_space<vmem>>, vector<840x1024xbf16>
    %cst_32 = arith.constant dense<0.000000e+00> : vector<2x1024xf32>
    %90 = tpu.matmul %88, %89, %cst_32 {dimension_numbers = #tpu.dot_dimension_numbers<[1], [0], [0], [1], [0, 0, 1, 1], [], []>} : vector<2x840xbf16>, vector<840x1024xbf16>, vector<2x1024xf32> -> vector<2x1024xf32>
    %c0_33 = arith.constant 0 : index
    %c0_34 = arith.constant 0 : index
    %91 = vector.load %arg13[%c0_33, %c0_34] : memref<1x1024xf32, #tpu.memory_space<vmem>>, vector<1x1024xf32>
    %92 = vector.broadcast %91 : vector<1x1024xf32> to vector<2x1024xf32>
    %93 = arith.addf %90, %92 : vector<2x1024xf32>
    %cst_35 = arith.constant 0.000000e+00 : f32
    %94 = vector.broadcast %cst_35 : f32 to vector<2x1024xf32>
    %95 = arith.maximumf %93, %94 : vector<2x1024xf32>
    %c0_36 = arith.constant 0 : index
    %c0_37 = arith.constant 0 : index
    %96 = vector.load %arg14[%c0_36, %c0_37] : memref<1024x5xf32, #tpu.memory_space<vmem>>, vector<1024x5xf32>
    %cst_38 = arith.constant dense<0.000000e+00> : vector<2x5xf32>
    %97 = tpu.matmul %95, %96, %cst_38 {dimension_numbers = #tpu.dot_dimension_numbers<[1], [0], [0], [1], [0, 0, 1, 1], [], []>} : vector<2x1024xf32>, vector<1024x5xf32>, vector<2x5xf32> -> vector<2x5xf32>
    %c0_39 = arith.constant 0 : index
    %c0_40 = arith.constant 0 : index
    %98 = vector.load %arg15[%c0_39, %c0_40] : memref<1x5xf32, #tpu.memory_space<vmem>>, vector<1x5xf32>
    %99 = vector.broadcast %98 : vector<1x5xf32> to vector<2x5xf32>
    %100 = arith.addf %97, %99 : vector<2x5xf32>
    %c0_41 = arith.constant 0 : index
    %c0_42 = arith.constant 0 : index
    %101 = vector.load %arg16[%c0_41, %c0_42] : memref<2x5xf32, #tpu.memory_space<vmem>>, vector<2x5xf32>
    tpu.vector_store %arg16[%c0_41, %c0_42], %100 {strides = array<i32>} : memref<2x5xf32, #tpu.memory_space<vmem>>, vector<2x5xf32>,
    return
  }
  func.func @transform_0(%arg0: i32) -> (i32, i32) {
    %c0_i32 = arith.constant 0 : i32
    %c0_i32_0 = arith.constant 0 : i32
    %c0_i32_1 = arith.constant 0 : i32
    return %c0_i32, %c0_i32_0 : i32, i32
  }
  func.func @transform_1(%arg0: i32) -> (i32, i32) {
    %c0_i32 = arith.constant 0 : i32
    %c0_i32_0 = arith.constant 0 : i32
    %c0_i32_1 = arith.constant 0 : i32
    return %c0_i32, %c0_i32_0 : i32, i32
  }
  func.func @transform_2(%arg0: i32) -> (i32, i32) {
    %c0_i32 = arith.constant 0 : i32
    %c0_i32_0 = arith.constant 0 : i32
    %c0_i32_1 = arith.constant 0 : i32
    return %c0_i32, %c0_i32_0 : i32, i32
  }
  func.func @transform_3(%arg0: i32) -> (i32, i32) {
    %c0_i32 = arith.constant 0 : i32
    %c0_i32_0 = arith.constant 0 : i32
    %c0_i32_1 = arith.constant 0 : i32
    return %c0_i32, %c0_i32_0 : i32, i32
  }
  func.func @transform_4(%arg0: i32) -> (i32, i32) {
    %c0_i32 = arith.constant 0 : i32
    %c0_i32_0 = arith.constant 0 : i32
    %c0_i32_1 = arith.constant 0 : i32
    return %c0_i32, %c0_i32_0 : i32, i32
  }
  func.func @transform_5(%arg0: i32) -> (i32, i32) {
    %c0_i32 = arith.constant 0 : i32
    %c0_i32_0 = arith.constant 0 : i32
    %c0_i32_1 = arith.constant 0 : i32
    return %c0_i32, %c0_i32_0 : i32, i32
  }
  func.func @transform_6(%arg0: i32) -> (i32, i32) {
    %c0_i32 = arith.constant 0 : i32
    %c0_i32_0 = arith.constant 0 : i32
    %c0_i32_1 = arith.constant 0 : i32
    return %c0_i32, %c0_i32_0 : i32, i32
  }
  func.func @transform_7(%arg0: i32) -> (i32, i32) {
    %c0_i32 = arith.constant 0 : i32
    %c0_i32_0 = arith.constant 0 : i32
    %c0_i32_1 = arith.constant 0 : i32
    return %c0_i32, %c0_i32_0 : i32, i32
  }
  func.func @transform_8(%arg0: i32) -> (i32, i32) {
    %c0_i32 = arith.constant 0 : i32
    %c0_i32_0 = arith.constant 0 : i32
    %c0_i32_1 = arith.constant 0 : i32
    return %c0_i32, %c0_i32_0 : i32, i32
  }
  func.func @transform_9(%arg0: i32) -> (i32, i32) {
    %c0_i32 = arith.constant 0 : i32
    %c0_i32_0 = arith.constant 0 : i32
    %c0_i32_1 = arith.constant 0 : i32
    return %c0_i32, %c0_i32_0 : i32, i32
  }
  func.func @transform_10(%arg0: i32) -> (i32, i32) {
    %c0_i32 = arith.constant 0 : i32
    %c0_i32_0 = arith.constant 0 : i32
    %c0_i32_1 = arith.constant 0 : i32
    return %c0_i32, %c0_i32_0 : i32, i32
  }
  func.func @transform_12(%arg0: i32) -> (i32, i32) {
    %c0_i32 = arith.constant 0 : i32
    %c0_i32_0 = arith.constant 0 : i32
    %c0_i32_1 = arith.constant 0 : i32
    return %c0_i32, %c0_i32_0 : i32, i32
  }
  func.func @transform_13(%arg0: i32) -> (i32, i32) {
    %c0_i32 = arith.constant 0 : i32
    %c0_i32_0 = arith.constant 0 : i32
    %c0_i32_1 = arith.constant 0 : i32
    return %c0_i32, %c0_i32_0 : i32, i32
  }
  func.func @transform_14(%arg0: i32) -> (i32, i32) {
    %c0_i32 = arith.constant 0 : i32
    %c0_i32_0 = arith.constant 0 : i32
    %c0_i32_1 = arith.constant 0 : i32
    return %c0_i32, %c0_i32_0 : i32, i32
  }
  func.func @transform_15(%arg0: i32) -> (i32, i32) {
    %c0_i32 = arith.constant 0 : i32
    %c0_i32_0 = arith.constant 0 : i32
    %c0_i32_1 = arith.constant 0 : i32
    return %c0_i32, %c0_i32_0 : i32, i32
  }
}

</mosaic_0001>

<bundles_post_ra>
// kernel: cnn_deep_forward.1
= control target key start
LH: loop header
LB: loop body
LE: loop exit
PB: predicated region body
PF: predicated region fallthrough
CT: control target
= control target key end

     0   :  { %20 = vsyncpa [#allocation5], 0  ;;  %s7467_s0 = inlined_call_operand.vmem [shape: s32[70,1], index: 0, kind: input, shape index: {}]   ;;  %s7468_s1 = inlined_call_operand.vmem [shape: bf16[100,32], index: 1, kind: input, shape index: {}]   ;;  %s7469_s2 = inlined_call_operand.vmem [shape: bf16[96,16], index: 2, kind: input, shape index: {}]   ;;  %s7470_s3 = inlined_call_operand.hbm [shape: f32[1,16], index: 3, kind: input, shape index: {}]   ;;  %s7471_s4 = inlined_call_operand.vmem [shape: bf16[48,24], index: 4, kind: input, shape index: {}]   ;;  %s7472_s5 = inlined_call_operand.hbm [shape: f32[1,24], index: 5, kind: input, shape index: {}]   ;;  %s7473_s6 = inlined_call_operand.vmem [shape: bf16[72,32], index: 6, kind: input, shape index: {}]   ;;  %s7474_s7 = inlined_call_operand.hbm [shape: f32[1,32], index: 7, kind: input, shape index: {}]   ;;  %s7475_s8 = inlined_call_operand.vmem [shape: bf16[96,84], index: 8, kind: input, shape index: {}]   ;;  %s7476_s9 = inlined_call_operand.hbm [shape: f32[1,84], index: 9, kind: input, shape index: {}]   ;;  %s7477_s10 = inlined_call_operand.hbm [shape: bf16[32,64], index: 10, kind: input, shape index: {}]   ;;  %s7478_s11 = inlined_call_operand.hbm [shape: bf16[840,1024], index: 11, kind: input, shape index: {}]   ;;  %s7479_s12 = inlined_call_operand.hbm [shape: f32[1,1024], index: 12, kind: input, shape index: {}]   ;;  %s7480_s13 = inlined_call_operand.vmem [shape: f32[1024,5], index: 13, kind: input, shape index: {}]   ;;  %s7481_s14 = inlined_call_operand.hbm [shape: f32[1,5], index: 14, kind: input, shape index: {}]   ;;  %s7482_s15 = inlined_call_operand.hbm [shape: f32[2,5], index: 15, kind: output, shape index: {}]  }
   0x1   :  { %21 = vsyncpa [#allocation8], 0 }
   0x2   :  { %22 = vsyncpa [#allocation11], 0 }
   0x3   :  { %23 = vsyncpa [#allocation14], 0 }
   0x4   :  { %24 = vsyncpa [#allocation6], 0  ;;  %s6405_s18 = smov [#allocation7]   ;;  %s6406_s20 = smov [#allocation10]  }
   0x5   :  { %s49_s19 = sshll.u32 %s6405_s18, 4  ;;  %s73_s21 = sshll.u32 %s6406_s20, 4  ;;  %s50_s19 = int_to_ptr.vmem [resolvable:$true] %s49_s19  ;;  %s74_s21 = int_to_ptr.vmem [resolvable:$true] %s73_s21 }
   0x6   :  { %s6195_s24 = scalar_lea.hbm %s7472_s5, 16 }
   0x7   :  { %p6196_p0 = scmp.ne.s32.totalorder %s7472_s5, %s6195_s24  ;;  %p6199_p1 = scmp.lt.u32.totalorder %s6195_s24, %s7472_s5 }
   0x9   :  { %p6201_p2 = pnand %p6199_p1, %p6196_p0 }
   0xb   :  { %6204 = shalt.err (!%p6201_p2)
}
   0xc   :  { %s6205_s29 = scalar_lea.vmem %s50_s19, 16  ;;  %s6209_s30 = scalar_lea.vmem %s50_s19, 32 }
   0xd   :  { %p6206_p3 = scmp.ne.s32.totalorder %s50_s19, %s6205_s29  ;;  %p6210_p4 = scmp.lt.s32.totalorder %s50_s19, %s50_s19 }
   0xe   :  { %p6211_p5 = scmp.lt.s32.totalorder %s6209_s30, %s6205_s29 }
  0x10   :  { %p6212_p6 = por %p6211_p5, %p6210_p4 }
  0x12   :  { %p6213_p7 = pnand %p6212_p6, %p6206_p3 }
  0x14   :  { %6216 = shalt.err (!%p6213_p7)
}
  0x15   :  { %52 = dma.hbm_to_vmem [thread:$0]  %s7472_s5, 16, %s50_s19, [#allocation8]  }
  0x16   :  { %s6217_s22 = scalar_lea.hbm %s7476_s9, 16 }
  0x17   :  { %p6218_p8 = scmp.ne.s32.totalorder %s7476_s9, %s6217_s22  ;;  %p6221_p9 = scmp.lt.u32.totalorder %s6217_s22, %s7476_s9 }
  0x19   :  { %p6223_p10 = pnand %p6221_p9, %p6218_p8 }
  0x1b   :  { %6226 = shalt.err (!%p6223_p10)
}
  0x1c   :  { %s6227_s27 = scalar_lea.vmem %s74_s21, 16  ;;  %s6231_s28 = scalar_lea.vmem %s74_s21, 32 }
  0x1d   :  { %p6228_p11 = scmp.ne.s32.totalorder %s74_s21, %s6227_s27  ;;  %p6232_p12 = scmp.lt.s32.totalorder %s74_s21, %s74_s21 }
  0x1e   :  { %p6233_p13 = scmp.lt.s32.totalorder %s6231_s28, %s6227_s27 }
  0x20   :  { %p6234_p0 = por %p6233_p13, %p6232_p12 }
  0x22   :  { %p6235_p1 = pnand %p6234_p0, %p6228_p11 }
  0x24   :  { %6238 = shalt.err (!%p6235_p1)
}
  0x25   :  { %76 = dma.hbm_to_vmem [thread:$0]  %s7476_s9, 16, %s74_s21, [#allocation11]  }
  0x26   :  { %s6407_s29 = smov [#allocation13]   ;;  %s6408_s16 = smov [#allocation4]  }
  0x27   :  { %s95_s30 = sshll.u32 %s6407_s29, 4  ;;  %s37_s17 = sshll.u32 %s6408_s16, 4  ;;  %s96_s30 = int_to_ptr.vmem [resolvable:$true] %s95_s30  ;;  %s38_s17 = int_to_ptr.vmem [resolvable:$true] %s37_s17 }
  0x28   :  { %s6239_s22 = scalar_lea.hbm %s7479_s12, 128 }
  0x29   :  { %p6240_p2 = scmp.ne.s32.totalorder %s7479_s12, %s6239_s22  ;;  %p6243_p3 = scmp.lt.u32.totalorder %s6239_s22, %s7479_s12 }
  0x2b   :  { %p6245_p4 = pnand %p6243_p3, %p6240_p2 }
  0x2d   :  { %6248 = shalt.err (!%p6245_p4)
}
  0x2e   :  { %s6249_s9 = scalar_lea.vmem %s96_s30, 128  ;;  %p6254_p6 = scmp.lt.s32.totalorder %s96_s30, %s96_s30 }
  0x2f   :  { %p6250_p5 = scmp.ne.s32.totalorder %s96_s30, %s6249_s9  ;;  %p6255_p7 = scmp.lt.s32.totalorder %s6249_s9, %s6249_s9 }
  0x31   :  { %p6256_p8 = por %p6255_p7, %p6254_p6 }
  0x33   :  { %p6257_p9 = pnand %p6256_p8, %p6250_p5 }
  0x35   :  { %6260 = shalt.err (!%p6257_p9)
}
  0x36   :  { %98 = dma.hbm_to_vmem [thread:$0]  %s7479_s12, 128, %s96_s30, [#allocation14]  }
  0x37   :  { %s6261_s19 = scalar_lea.hbm %s7470_s3, 16 }
  0x38   :  { %p6262_p10 = scmp.ne.s32.totalorder %s7470_s3, %s6261_s19  ;;  %p6265_p11 = scmp.lt.u32.totalorder %s6261_s19, %s7470_s3 }
  0x3a   :  { %p6267_p12 = pnand %p6265_p11, %p6262_p10 }
  0x3c   :  { %6270 = shalt.err (!%p6267_p12)
}
  0x3d   :  { %s6271_s22 = scalar_lea.vmem %s38_s17, 16  ;;  %s6275_s23 = scalar_lea.vmem %s38_s17, 32 }
  0x3e   :  { %p6272_p13 = scmp.ne.s32.totalorder %s38_s17, %s6271_s22  ;;  %p6276_p0 = scmp.lt.s32.totalorder %s38_s17, %s38_s17 }
  0x3f   :  { %p6277_p1 = scmp.lt.s32.totalorder %s6275_s23, %s6271_s22 }
  0x41   :  { %p6278_p2 = por %p6277_p1, %p6276_p0 }
  0x43   :  { %p6279_p3 = pnand %p6278_p2, %p6272_p13 }
  0x45   :  { %6282 = shalt.err (!%p6279_p3)
}
  0x46   :  { %40 = dma.hbm_to_vmem [thread:$0]  %s7470_s3, 16, %s38_s17, [#allocation5]  }
  0x47   :  { %s6409_s24 = smov [#allocation9]   ;;  %s6410_s26 = smov [#allocation12]  }
  0x48   :  { %s61_s25 = sshll.u32 %s6409_s24, 4  ;;  %s82_s9 = sshll.u32 %s6410_s26, 4  ;;  %s62_s25 = int_to_ptr.vmem [resolvable:$true] %s61_s25  ;;  %s6559_s9 = int_to_ptr.vmem [resolvable:$true] %s82_s9 }
  0x49   :  { %s6283_s28 = scalar_lea.hbm %s7474_s7, 16 }
  0x4a   :  { %p6284_p4 = scmp.ne.s32.totalorder %s7474_s7, %s6283_s28  ;;  %p6287_p5 = scmp.lt.u32.totalorder %s6283_s28, %s7474_s7 }
  0x4c   :  { %p6289_p6 = pnand %p6287_p5, %p6284_p4 }
  0x4e   :  { %6292 = shalt.err (!%p6289_p6)
}
  0x4f   :  { %s6293_s3 = scalar_lea.vmem %s62_s25, 16  ;;  %s6297_s17 = scalar_lea.vmem %s62_s25, 32 }
  0x50   :  { %p6294_p7 = scmp.ne.s32.totalorder %s62_s25, %s6293_s3  ;;  %p6298_p8 = scmp.lt.s32.totalorder %s62_s25, %s62_s25 }
  0x51   :  { %p6299_p9 = scmp.lt.s32.totalorder %s6297_s17, %s6293_s3 }
  0x53   :  { %p6300_p10 = por %p6299_p9, %p6298_p8 }
  0x55   :  { %p6301_p11 = pnand %p6300_p10, %p6294_p7 }
  0x57   :  { %6304 = shalt.err (!%p6301_p11)
}
  0x58   :  { %64 = dma.hbm_to_vmem [thread:$0]  %s7474_s7, 16, %s62_s25, [#allocation8]  }
  0x59   :  { %s6305_s12 = scalar_lea.hbm %s7477_s10, 256 }
  0x5a   :  { %p6306_p12 = scmp.ne.s32.totalorder %s7477_s10, %s6305_s12  ;;  %p6309_p13 = scmp.lt.u32.totalorder %s6305_s12, %s7477_s10 }
  0x5c   :  { %p6311_p0 = pnand %p6309_p13, %p6306_p12 }
  0x5e   :  { %6314 = shalt.err (!%p6311_p0)
}
  0x5f   :  { %s6315_s27 = scalar_lea.vmem %s6559_s9, 256  ;;  %p6320_p2 = scmp.lt.s32.totalorder %s6559_s9, %s6559_s9 }
  0x60   :  { %p6316_p1 = scmp.ne.s32.totalorder %s6559_s9, %s6315_s27  ;;  %p6321_p3 = scmp.lt.s32.totalorder %s6315_s27, %s6315_s27 }
  0x62   :  { %p6322_p4 = por %p6321_p3, %p6320_p2 }
  0x64   :  { %p6323_p5 = pnand %p6322_p4, %p6316_p1 }
  0x66   :  { %6326 = shalt.err (!%p6323_p5)
}
  0x67   :  { %s6411_s7 = smov 64   ;;  %s6412_s25 = smov 4  }
  0x68   :  { %88 = dma.hbm_to_vmem [thread:$0]  %s7477_s10, 256, %s6559_s9, [#allocation11], %s6411_s7, %s6411_s7, %s6412_s25  }
  0x69   :  { %s6413_s19 = smov [#allocation15]   ;;  %s6327_s17 = scalar_lea.hbm %s7481_s14, 16 }
  0x6a   :  { %s107_s29 = sshll.u32 %s6413_s19, 4  ;;  %p6328_p6 = scmp.ne.s32.totalorder %s7481_s14, %s6327_s17  ;;  %s108_s29 = int_to_ptr.vmem [resolvable:$true] %s107_s29 }
  0x6b   :  { %p6331_p7 = scmp.lt.u32.totalorder %s6327_s17, %s7481_s14 }
  0x6d   :  { %p6333_p8 = pnand %p6331_p7, %p6328_p6 }
  0x6f   :  { %6336 = shalt.err (!%p6333_p8)
}
  0x70   :  { %s6337_s12 = scalar_lea.vmem %s108_s29, 16  ;;  %s6341_s10 = scalar_lea.vmem %s108_s29, 32 }
  0x71   :  { %p6338_p9 = scmp.ne.s32.totalorder %s108_s29, %s6337_s12  ;;  %p6342_p10 = scmp.lt.s32.totalorder %s108_s29, %s108_s29 }
  0x72   :  { %p6343_p11 = scmp.lt.s32.totalorder %s6341_s10, %s6337_s12 }
  0x74   :  { %p6344_p12 = por %p6343_p11, %p6342_p10 }
  0x76   :  { %p6345_p13 = pnand %p6344_p12, %p6338_p9 }
  0x78   :  { %6348 = shalt.err (!%p6345_p13)
}
  0x79   :  { %110 = dma.hbm_to_vmem [thread:$0]  %s7481_s14, 16, %s108_s29, [#allocation14]  }
  0x7a   :  { %6393 = dma.done.wait [#allocation5], 16  }
  0x7b   :  { %6394 = vsyncadd [#allocation5], 4294967280 }
  0x7c   :  { %6395 = dma.done.wait [#allocation8], 32  }
  0x7d   :  { %6396 = vsyncadd [#allocation8], 4294967264 }
  0x7e   :  { %6397 = dma.done.wait [#allocation11], 272  }
  0x7f   :  { %6398 = vsyncadd [#allocation11], 4294967024 }
  0x80   :  { %6399 = dma.done.wait [#allocation14], 144  }
  0x81   :  { %6400 = vsyncadd [#allocation14], 4294967152  ;;  %v6414_v0 = vmov 0   ;;  %v6415_v1 = vmov 0.0   ;;  %v148_v2 = vld [vmem:[%s7467_s0 + $0x10] sm:$0xff]  ;;  %v146_v3 = vld [vmem:[%s7467_s0] sm:$0xff]  ;;  %v144_v19 = vlaneseq }
  0x82   :  { %6157 = vset.pattern.permute.xlu1 %v6414_v0  ;;  %6156 = vset.pattern.permute.xlu0 %v6414_v0  ;;  %v149_v4 = vld [vmem:[%s7467_s0 + $0x18] sm:$0xff]  ;;  %v147_v5 = vld [vmem:[%s7467_s0 + $0x8] sm:$0xff]  ;;  %v6158_v6 = vld [vmem:[%s7468_s1] sm:$0xff]   ;;  %vm6416_vm0 = vmmov 0   ;;  %vm282_vm1 = vcmask 1041408   ;;  %vm266_vm4 = vcmask 818176  }
  0x83   :  { %5811 = vmatprep.subr.bf16.mxu0 %v6415_v1  ;;  %5845 = vmatprep.subr.bf16.mxu1 %v6415_v1  ;;  %v151_v7 = vld [vmem:[%s7467_s0 + $0x28] sm:$0xff]  ;;  %v150_v8 = vld [vmem:[%s7467_s0 + $0x20] sm:$0xff]  ;;  %v153_v10 = vld [vmem:[%s7467_s0 + $0x38] sm:$0xff]  ;;  %v145_v20 = vand.u32 127, %v144_v19  ;;  %vm418_vm12 = vcmask 1046528   ;;  %vm438_vm14 = vcmask 261120  }
  0x84   :  { %162 = vperm.xlu1 %6157, %v148_v2   ;;  %156 = vperm.xlu0 %6156, %v146_v3   ;;  %v6159_v9 = vld [vmem:[%s7468_s1 + $0x8] sm:$0xff]   ;;  %v152_v11 = vld [vmem:[%s7467_s0 + $0x30] sm:$0xff]  ;;  %v154_v13 = vld [vmem:[%s7467_s0 + $0x40] sm:$0x3f]  ;;  %vm363_vm13 = vsmask.f32 7424 }
  0x85   :  { %5812 = vmatpush3.bf16.msra.mxu0 %v6158_v6  ;;  %5825 = vmatprep.mubr.msk.bf16.mxu0 %vm6416_vm0, %v6415_v1  ;;  %v6160_v12 = vld [vmem:[%s7468_s1 + $0x10] sm:$0xff]   ;;  %v6161_v14 = vld [vmem:[%s7468_s1 + $0x18] sm:$0xff]   ;;  %v6162_v15 = vld [vmem:[%s7468_s1 + $0x20] sm:$0xff]   ;;  %vm449_vm15 = vcmask 523264   ;;  %s6420_s20 = smov 48   ;;  %s6424_s28 = smov 120  }
  0x86   :  { %5813 = vmatprep.subr.bf16.mxu0 %v6415_v1  ;;  %5857 = vmatprep.mubr.msk.bf16.mxu1 %vm6416_vm0, %v6415_v1  ;;  %v6163_v16 = vld [vmem:[%s7468_s1 + $0x28] sm:$0xff]   ;;  %v6164_v17 = vld [vmem:[%s7468_s1 + $0x30] ss:$0 sps:$4 sm:$0x33]   ;;  %v6165_v44 = vld [vmem:[%s7469_s2] sm:$0xff]   ;;  %s6425_s5 = smov 76  }
  0x87   :  { %v284_v18 = vsel %vm282_vm1, %v6164_v17, 0  ;;  %5846 = vmatpush3.bf16.msra.mxu1 %v6165_v44  ;;  %v6166_v45 = vld [vmem:[%s7469_s2 + $0x8] sm:$0xff]   ;;  %v6167_v46 = vld [vmem:[%s7469_s2 + $0x10] sm:$0xff]   ;;  %v6168_v47 = vld [vmem:[%s7469_s2 + $0x18] sm:$0xff]   ;;  %vm515_vm1 = vcmask 785408   ;;  %s6426_s19 = smov 124  }
  0x88   :  { %165 = vperm.xlu1 %6157, %v149_v4   ;;  %159 = vperm.xlu0 %6156, %v147_v5   ;;  %v6169_v48 = vld [vmem:[%s7469_s2 + $0x20] sm:$0xff]   ;;  %v6170_v52 = vld [vmem:[%s7469_s2 + $0x28] sm:$0xff]   ;;  %s6417_s2 = smov 32   ;;  %s6427_s0 = smov 36  }
  0x89   :  { %5814 = vmatpush3.bf16.msra.mxu0 %v6159_v9  ;;  %5847 = vmatprep.subr.bf16.mxu1 %v6415_v1  ;;  %s6428_s29 = smov [#allocation2]   ;;  %s6349_s3 = scalar_lea.hbm %s7478_s11, 53760 }
  0x8a   :  { %5815 = vmatprep.subr.bf16.mxu0 %v6415_v1  ;;  %s140_s1 = sshll.u32 %s6428_s29, 4  ;;  %p6350_p0 = scmp.ne.s32.totalorder %s7478_s11, %s6349_s3  ;;  %s141_s1 = int_to_ptr.vmem [resolvable:$true] %s140_s1 }
  0x8b   :  { %5848 = vmatpush3.bf16.msra.mxu1 %v6166_v45  ;;  %p6353_p1 = scmp.lt.u32.totalorder %s6349_s3, %s7478_s11 }
  0x8c   :  { %171 = vperm.xlu1 %6157, %v151_v7   ;;  %168 = vperm.xlu0 %6156, %v150_v8  }
  0x8d   :  { %5816 = vmatpush3.bf16.msra.mxu0 %v6160_v12  ;;  %5849 = vmatprep.subr.bf16.mxu1 %v6415_v1  ;;  %p6355_p2 = pnand %p6353_p1, %p6350_p0 }
  0x8e   :  { %5817 = vmatprep.subr.bf16.mxu0 %v6415_v1 }
  0x8f   :  { %5850 = vmatpush3.bf16.msra.mxu1 %v6167_v46 }
  0x90   :  { %177 = vperm.xlu1 %6157, %v153_v10   ;;  %174 = vperm.xlu0 %6156, %v152_v11  }
  0x91   :  { %5818 = vmatpush3.bf16.msra.mxu0 %v6161_v14  ;;  %5851 = vmatprep.subr.bf16.mxu1 %v6415_v1 }
  0x92   :  { %5819 = vmatprep.subr.bf16.mxu0 %v6415_v1 }
  0x93   :  { %5852 = vmatpush3.bf16.msra.mxu1 %v6168_v47 }
  0x94   :  { %180 = vperm.xlu0 %6156, %v154_v13   ;;  %5853 = vmatprep.subr.bf16.mxu1 %v6415_v1 }
  0x95   :  { %5820 = vmatpush3.bf16.msra.mxu0 %v6162_v15 }
  0x96   :  { %5821 = vmatprep.subr.bf16.mxu0 %v6415_v1 }
  0x97   :  { %5854 = vmatpush3.bf16.msra.mxu1 %v6169_v48 }
  0x98   :  { %5855 = vmatprep.subr.bf16.mxu1 %v6415_v1 }
  0x99   :  { %5822 = vmatpush3.bf16.msra.mxu0 %v6163_v16 }
  0x9a   :  { %5823 = vmatprep.subr.bf16.mxu0 %v6415_v1 }
  0x9b   :  { %5856 = vmatpush3.bf16.msra.mxu1 %v6170_v52 }
  0x9c   :  { %5877 = vmatprep.subr.bf16.mxu1 %v6415_v1 }
  0x9d   :  { %5824 = vmatpush3.bf16.msra.mxu0 %v284_v18 }
 0x103   :  { %v157_v21 = vpop.permute.xlu0 %156  ;;  %v163_v22 = vpop.permute.xlu1 %162 }
 0x104   :  { %vm182_vm2 = vcmp.eq.s32.totalorder %v145_v20, %v157_v21  ;;  %vm184_vm5 = vcmp.eq.s32.totalorder %v145_v20, %v163_v22 }
 0x105   :  { %v5122_v24 = vsel %vm182_vm2, 1.0, %v6415_v1  ;;  %v5124_v28 = vsel %vm184_vm5, 1.0, %v6415_v1  ;;  %vm685_vm2 = vcmask 130048   ;;  %vm1009_vm5 = vcmask 195584  }
 0x107   :  { %v160_v23 = vpop.permute.xlu0 %159  ;;  %v166_v27 = vpop.permute.xlu1 %165 }
 0x108   :  { %vm183_vm3 = vcmp.eq.s32.totalorder %v145_v20, %v160_v23  ;;  %vm185_vm6 = vcmp.eq.s32.totalorder %v145_v20, %v166_v27 }
 0x109   :  { %v5123_v25 = vsel %vm183_vm3, 1.0, %v6415_v1  ;;  %v5125_v29 = vsel %vm185_vm6, 1.0, %v6415_v1  ;;  %vm737_vm3 = vcmask 392192   ;;  %vm1061_vm6 = vcmask 588800  }
 0x10a   :  { %v209_v26 = vpack.c.bf16 %v5123_v25, %v5122_v24  ;;  %v210_v32 = vpack.c.bf16 %v5125_v29, %v5124_v28 }
 0x10b   :  { %v172_v30 = vpop.permute.xlu1 %171  ;;  %v169_v31 = vpop.permute.xlu0 %168 }
 0x10c   :  { %5826 = vmatmul.mubr.msk.bf16.vlgmr.msra.gmra.mrb[0].mxu0 %vm266_vm4, %v209_v26  ;;  %vm187_vm7 = vcmp.eq.s32.totalorder %v145_v20, %v172_v30  ;;  %vm186_vm8 = vcmp.eq.s32.totalorder %v145_v20, %v169_v31 }
 0x10d   :  { %5829 = vmatprep.mubr.msk.bf16.mxu0 %vm6416_vm0, %v6415_v1  ;;  %v5127_v33 = vsel %vm187_vm7, 1.0, %v6415_v1  ;;  %v5126_v34 = vsel %vm186_vm8, 1.0, %v6415_v1 }
 0x10e   :  { %v211_v37 = vpack.c.bf16 %v5127_v33, %v5126_v34 }
 0x10f   :  { %v178_v35 = vpop.permute.xlu1 %177  ;;  %v175_v36 = vpop.permute.xlu0 %174 }
 0x110   :  { %vm189_vm9 = vcmp.eq.s32.totalorder %v145_v20, %v178_v35  ;;  %vm188_vm10 = vcmp.eq.s32.totalorder %v145_v20, %v175_v36 }
 0x111   :  { %v5129_v38 = vsel %vm189_vm9, 1.0, %v6415_v1  ;;  %v5128_v39 = vsel %vm188_vm10, 1.0, %v6415_v1 }
 0x112   :  { %v212_v41 = vpack.c.bf16 %v5129_v38, %v5128_v39 }
 0x113   :  { %v181_v40 = vpop.permute.xlu0 %180 }
 0x114   :  { %5830 = vmatmul.mubr.msk.bf16.gmra.mrb[4].mxu0 %vm266_vm4, %v210_v32  ;;  %vm190_vm11 = vcmp.eq.s32.totalorder %v145_v20, %v181_v40 }
 0x115   :  { %5833 = vmatprep.mubr.msk.bf16.mxu0 %vm6416_vm0, %v6415_v1  ;;  %v5130_v42 = vsel %vm190_vm11, 1.0, %v6415_v1 }
 0x116   :  { %v213_v43 = vpack.c.bf16 %v5130_v42, %v5130_v42 }
 0x11c   :  { %5834 = vmatmul.mubr.msk.bf16.gmra.mrb[8].mxu0 %vm266_vm4, %v211_v37 }
 0x11d   :  { %5837 = vmatprep.mubr.msk.bf16.mxu0 %vm6416_vm0, %v6415_v1 }
 0x124   :  { %5838 = vmatmul.mubr.msk.bf16.gmra.mrb[12].mxu0 %vm266_vm4, %v212_v41 }
 0x125   :  { %5841 = vmatprep.mubr.msk.bf16.mxu0 %vm6416_vm0, %v6415_v1 }
 0x12c   :  { %5842 = vmatmul.mubr.msk.bf16.gmra.mrb[16].mxu0 %vm266_vm4, %v213_v43  ;;  %vm1066_vm4 = vcmask 1043456  }
 0x1df   :  { %v320_v49 = vpop.f32.mrb[0].mxu0 }
 0x1e0   :  { %v5827_v50 = vpop.f32.mrb[1].mxu0 }
 0x1e1   :  { %v323_v51 = vpop.f32.mrb[2].mxu0 }
 0x1e2   :  { %v6712_v53 = vpack.c.bf16 %v323_v51, %v320_v49  ;;  %v5828_v54 = vpop.f32.mrb[3].mxu0 }
 0x1e4   :  { %v367_v55 = vshll.u32 %v6712_v53, 16  ;;  %v419_v62 = vrot.slane %v6712_v53, 1  ;;  %v365_v2 = vshrl.u32 %v6712_v53, 16 }
 0x1e6   :  { %v369_v61 = vrot.slane %v367_v55, 1 }
 0x1e7   :  { %v328_v56 = vpop.f32.mrb[4].mxu0 }
 0x1e8   :  { %v5831_v57 = vpop.f32.mrb[5].mxu0  ;;  %v370_v5 = vor.u32 %v369_v61, %v365_v2 }
 0x1e9   :  { %v331_v58 = vpop.f32.mrb[6].mxu0 }
 0x1ea   :  { %v6716_v59 = vpack.c.bf16 %v331_v58, %v328_v56  ;;  %v5832_v60 = vpop.f32.mrb[7].mxu0 }
 0x1ec   :  { %v420_v63 = vrot.slane %v6716_v59, 1  ;;  %v372_v3 = vshll.u32 %v6716_v59, 16  ;;  %v376_v14 = vshrl.u32 %v6716_v59, 16 }
 0x1ee   :  { %v421_v4 = vsel %vm418_vm12, %v419_v62, %v420_v63  ;;  %v374_v6 = vrot.slane %v372_v3, 1 }
 0x1ef   :  { %428 = vrot.lane.b32.xlu0 %v421_v4, %s6411_s7  ;;  %v336_v7 = vpop.f32.mrb[8].mxu0 }
 0x1f0   :  { %v5835_v8 = vpop.f32.mrb[9].mxu0  ;;  %v375_v9 = vsel %vm363_vm13, %v370_v5, %v374_v6  ;;  %v378_v17 = vor.u32 %v376_v14, %v374_v6  ;;  %v6171_v5 = vld [vmem:[%s7471_s4] sm:$0xff]   ;;  %v6172_v6 = vld [vmem:[%s7471_s4 + $0x8] sm:$0xff]  }
 0x1f1   :  { %403 = vrot.lane.b32.xlu1 %v375_v9, %s6417_s2  ;;  %v339_v10 = vpop.f32.mrb[10].mxu0 }
 0x1f2   :  { %v360_v11 = vpack.c.bf16 %v339_v10, %v336_v7  ;;  %v5836_v12 = vpop.f32.mrb[11].mxu0  ;;  %v5143_v7 = vld [vmem:[#allocation4] ss:$0 sm:$0xff] }
 0x1f4   :  { %v422_v13 = vrot.slane %v360_v11, 1  ;;  %v380_v15 = vshll.u32 %v360_v11, 16  ;;  %v384_v27 = vshrl.u32 %v360_v11, 16 }
 0x1f6   :  { %v423_v16 = vsel %vm418_vm12, %v420_v63, %v422_v13  ;;  %v382_v18 = vrot.slane %v380_v15, 1 }
 0x1f7   :  { %430 = vrot.lane.b32.xlu0 %v423_v16, %s6411_s7  ;;  %v344_v20 = vpop.f32.mrb[12].mxu0  ;;  %v6173_v16 = vld [vmem:[%s7471_s4 + $0x10] sm:$0xff]   ;;  %s6418_s4 = smov 16  }
 0x1f8   :  { %v5839_v21 = vpop.f32.mrb[13].mxu0  ;;  %v383_v22 = vsel %vm363_vm13, %v378_v17, %v382_v18  ;;  %v386_v30 = vor.u32 %v384_v27, %v382_v18 }
 0x1f9   :  { %405 = vrot.lane.b32.xlu1 %v383_v22, %s6417_s2  ;;  %v347_v23 = vpop.f32.mrb[14].mxu0 }
 0x1fa   :  { %v361_v24 = vpack.c.bf16 %v347_v23, %v344_v20  ;;  %v5840_v25 = vpop.f32.mrb[15].mxu0 }
 0x1fc   :  { %v424_v26 = vrot.slane %v361_v24, 1  ;;  %v388_v28 = vshll.u32 %v361_v24, 16  ;;  %v392_v39 = vshrl.u32 %v361_v24, 16 }
 0x1fe   :  { %v425_v29 = vsel %vm418_vm12, %v422_v13, %v424_v26  ;;  %v390_v31 = vrot.slane %v388_v28, 1 }
 0x1ff   :  { %432 = vrot.lane.b32.xlu0 %v425_v29, %s6411_s7  ;;  %v352_v32 = vpop.f32.mrb[16].mxu0 }
 0x200   :  { %v362_v33 = vpack.c.bf16 %v352_v32, %v352_v32  ;;  %v5843_v34 = vpop.f32.mrb[17].mxu0  ;;  %v391_v35 = vsel %vm363_vm13, %v386_v30, %v390_v31  ;;  %v394_v42 = vor.u32 %v392_v39, %v390_v31 }
 0x201   :  { %407 = vrot.lane.b32.xlu1 %v391_v35, %s6417_s2  ;;  %v355_v36 = vpop.f32.mrb[18].mxu0 }
 0x202   :  { %v5844_v37 = vpop.f32.mrb[19].mxu0  ;;  %v426_v38 = vrot.slane %v362_v33, 1  ;;  %v396_v40 = vshll.u32 %v362_v33, 16  ;;  %v400_v45 = vshrl.u32 %v362_v33, 16 }
 0x204   :  { %v427_v41 = vsel %vm418_vm12, %v424_v26, %v426_v38  ;;  %v398_v43 = vrot.slane %v396_v40, 1 }
 0x205   :  { %434 = vrot.lane.b32.xlu0 %v427_v41, %s6411_s7 }
 0x206   :  { %v399_v44 = vsel %vm363_vm13, %v394_v42, %v398_v43  ;;  %v402_v46 = vor.u32 %v400_v45, %v398_v43 }
 0x207   :  { %409 = vrot.lane.b32.xlu1 %v399_v44, %s6417_s2 }
 0x209   :  { %436 = vrot.lane.b32.xlu0 %v426_v38, %s6411_s7 }
 0x20b   :  { %411 = vrot.lane.b32.xlu1 %v402_v46, %s6417_s2 }
 0x261   :  { %v429_v48 = vpop.permute.xlu0 %428 }
 0x263   :  { %v404_v47 = vpop.permute.xlu1 %403 }
 0x264   :  { %v440_v49 = vsel %vm438_vm14, %v6712_v53, %v404_v47 }
 0x265   :  { %v451_v50 = vsel %vm449_vm15, %v440_v49, %v429_v48 }
 0x266   :  { %5858 = vmatmul.mubr.msk.bf16.vlgmr.msra.gmra.mrb[0].mxu1 %vm515_vm1, %v451_v50 }
 0x267   :  { %5861 = vmatprep.mubr.msk.bf16.mxu1 %vm6416_vm0, %v6415_v1  ;;  %5878 = vmatpush3.bf16.msra.mxu1 %v6171_v5 }
 0x268   :  { %5879 = vmatprep.subr.bf16.mxu1 %v6415_v1 }
 0x269   :  { %v431_v52 = vpop.permute.xlu0 %430 }
 0x26b   :  { %v406_v51 = vpop.permute.xlu1 %405  ;;  %5880 = vmatpush3.bf16.msra.mxu1 %v6172_v6 }
 0x26c   :  { %v442_v54 = vsel %vm438_vm14, %v6716_v59, %v406_v51  ;;  %5881 = vmatprep.subr.bf16.mxu1 %v6415_v1 }
 0x26d   :  { %v453_v55 = vsel %vm449_vm15, %v442_v54, %v431_v52 }
 0x26e   :  { %5862 = vmatmul.mubr.msk.bf16.gmra.mrb[4].mxu1 %vm515_vm1, %v453_v55 }
 0x26f   :  { %5865 = vmatprep.mubr.msk.bf16.mxu1 %vm6416_vm0, %v6415_v1  ;;  %5882 = vmatpush3.bf16.msra.mxu1 %v6173_v16 }
 0x271   :  { %v433_v56 = vpop.permute.xlu0 %432 }
 0x273   :  { %v408_v53 = vpop.permute.xlu1 %407 }
 0x274   :  { %v444_v57 = vsel %vm438_vm14, %v360_v11, %v408_v53 }
 0x275   :  { %v455_v58 = vsel %vm449_vm15, %v444_v57, %v433_v56 }
 0x276   :  { %5866 = vmatmul.mubr.msk.bf16.gmra.mrb[8].mxu1 %vm515_vm1, %v455_v58 }
 0x277   :  { %5869 = vmatprep.mubr.msk.bf16.mxu1 %vm6416_vm0, %v6415_v1  ;;  %v435_v61 = vpop.permute.xlu0 %434 }
 0x279   :  { %v410_v60 = vpop.permute.xlu1 %409 }
 0x27a   :  { %v446_v59 = vsel %vm438_vm14, %v361_v24, %v410_v60 }
 0x27b   :  { %v457_v62 = vsel %vm449_vm15, %v446_v59, %v435_v61  ;;  %v437_v3 = vpop.permute.xlu0 %436 }
 0x27d   :  { %v412_v63 = vpop.permute.xlu1 %411 }
 0x27e   :  { %5870 = vmatmul.mubr.msk.bf16.gmra.mrb[12].mxu1 %vm515_vm1, %v457_v62  ;;  %v448_v2 = vsel %vm438_vm14, %v362_v33, %v412_v63 }
 0x27f   :  { %5873 = vmatprep.mubr.msk.bf16.mxu1 %vm6416_vm0, %v6415_v1  ;;  %v459_v4 = vsel %vm449_vm15, %v448_v2, %v437_v3 }
 0x286   :  { %5874 = vmatmul.mubr.msk.bf16.gmra.mrb[16].mxu1 %vm515_vm1, %v459_v4 }
 0x287   :  { %5883 = vmatprep.mubr.msk.bf16.mxu1 %vm6416_vm0, %v6415_v1 }
 0x339   :  { %v560_v8 = vpop.f32.mrb[0].mxu1 }
 0x33a   :  { %v561_v9 = vadd.f32 %v5143_v7, %v560_v8  ;;  %v5859_v10 = vpop.f32.mrb[1].mxu1 }
 0x33b   :  { %v563_v11 = vpop.f32.mrb[2].mxu1 }
 0x33c   :  { %v564_v12 = vadd.f32 %v5143_v7, %v563_v11  ;;  %v5860_v13 = vpop.f32.mrb[3].mxu1  ;;  %v598_v14 = vmax.f32 %v561_v9, 0.0 }
 0x33e   :  { %v599_v15 = vmax.f32 %v564_v12, 0.0 }
 0x340   :  { %v6779_v17 = vpack.c.bf16 %v599_v15, %v598_v14 }
 0x341   :  { %v568_v18 = vpop.f32.mrb[4].mxu1 }
 0x342   :  { %v569_v20 = vadd.f32 %v5143_v7, %v568_v18  ;;  %v5863_v21 = vpop.f32.mrb[5].mxu1  ;;  %v615_v25 = vshll.u32 %v6779_v17, 16  ;;  %v666_v31 = vrot.slane %v6779_v17, 1  ;;  %v613_v35 = vshrl.u32 %v6779_v17, 16 }
 0x343   :  { %v571_v22 = vpop.f32.mrb[6].mxu1 }
 0x344   :  { %v572_v23 = vadd.f32 %v5143_v7, %v571_v22  ;;  %v5864_v24 = vpop.f32.mrb[7].mxu1  ;;  %v600_v26 = vmax.f32 %v569_v20, 0.0  ;;  %v617_v29 = vrot.slane %v615_v25, 1 }
 0x346   :  { %v601_v27 = vmax.f32 %v572_v23, 0.0  ;;  %v618_v41 = vor.u32 %v617_v29, %v613_v35 }
 0x348   :  { %v6782_v28 = vpack.c.bf16 %v601_v27, %v600_v26 }
 0x349   :  { %v576_v30 = vpop.f32.mrb[8].mxu1 }
 0x34a   :  { %v577_v32 = vadd.f32 %v5143_v7, %v576_v30  ;;  %v5867_v33 = vpop.f32.mrb[9].mxu1  ;;  %v667_v34 = vrot.slane %v6782_v28, 1  ;;  %v620_v36 = vshll.u32 %v6782_v28, 16  ;;  %v624_v51 = vshrl.u32 %v6782_v28, 16 }
 0x34b   :  { %v579_v37 = vpop.f32.mrb[10].mxu1 }
 0x34c   :  { %v580_v38 = vadd.f32 %v5143_v7, %v579_v37  ;;  %v5868_v39 = vpop.f32.mrb[11].mxu1  ;;  %v668_v40 = vsel %vm418_vm12, %v666_v31, %v667_v34  ;;  %v622_v42 = vrot.slane %v620_v36, 1  ;;  %v602_v43 = vmax.f32 %v577_v32, 0.0 }
 0x34d   :  { %675 = vrot.lane.b32.xlu0 %v668_v40, %s6417_s2 }
 0x34e   :  { %v603_v44 = vmax.f32 %v580_v38, 0.0  ;;  %v623_v45 = vsel %vm363_vm13, %v618_v41, %v622_v42  ;;  %v626_v57 = vor.u32 %v624_v51, %v622_v42 }
 0x34f   :  { %651 = vrot.lane.b32.xlu1 %v623_v45, %s6418_s4  ;;  %v6174_v45 = vld [vmem:[#allocation12] sm:$0xff]  }
 0x350   :  { %v6792_v46 = vpack.c.bf16 %v603_v44, %v602_v43  ;;  %5911 = vmatprep.mubr.msk.bf16.mxu0 %vm449_vm15, %v6174_v45 }
 0x351   :  { %v584_v47 = vpop.f32.mrb[12].mxu1 }
 0x352   :  { %v585_v48 = vadd.f32 %v5143_v7, %v584_v47  ;;  %v5871_v49 = vpop.f32.mrb[13].mxu1  ;;  %v669_v50 = vrot.slane %v6792_v46, 1  ;;  %v628_v52 = vshll.u32 %v6792_v46, 16  ;;  %v632_v5 = vshrl.u32 %v6792_v46, 16 }
 0x353   :  { %v587_v54 = vpop.f32.mrb[14].mxu1 }
 0x354   :  { %v588_v55 = vadd.f32 %v5143_v7, %v587_v54  ;;  %v5872_v53 = vpop.f32.mrb[15].mxu1  ;;  %v670_v56 = vsel %vm418_vm12, %v667_v34, %v669_v50  ;;  %v630_v58 = vrot.slane %v628_v52, 1  ;;  %v604_v60 = vmax.f32 %v585_v48, 0.0 }
 0x355   :  { %677 = vrot.lane.b32.xlu0 %v670_v56, %s6417_s2 }
 0x356   :  { %v605_v59 = vmax.f32 %v588_v55, 0.0  ;;  %v631_v61 = vsel %vm363_vm13, %v626_v57, %v630_v58  ;;  %v634_v12 = vor.u32 %v632_v5, %v630_v58 }
 0x357   :  { %653 = vrot.lane.b32.xlu1 %v631_v61, %s6418_s4 }
 0x358   :  { %v610_v62 = vpack.c.bf16 %v605_v59, %v604_v60 }
 0x359   :  { %v592_v63 = vpop.f32.mrb[16].mxu1 }
 0x35a   :  { %v593_v2 = vadd.f32 %v5143_v7, %v592_v63  ;;  %v5875_v3 = vpop.f32.mrb[17].mxu1  ;;  %v671_v4 = vrot.slane %v610_v62, 1  ;;  %v636_v6 = vshll.u32 %v610_v62, 16  ;;  %v640_v16 = vshrl.u32 %v610_v62, 16 }
 0x35b   :  { %v595_v8 = vpop.f32.mrb[18].mxu1 }
 0x35c   :  { %v606_v9 = vmax.f32 %v593_v2, 0.0  ;;  %v5876_v10 = vpop.f32.mrb[19].mxu1  ;;  %v672_v11 = vsel %vm418_vm12, %v669_v50, %v671_v4  ;;  %v638_v13 = vrot.slane %v636_v6, 1 }
 0x35d   :  { %679 = vrot.lane.b32.xlu0 %v672_v11, %s6417_s2 }
 0x35e   :  { %v611_v14 = vpack.c.bf16 %v606_v9, %v606_v9  ;;  %v639_v15 = vsel %vm363_vm13, %v634_v12, %v638_v13  ;;  %v642_v21 = vor.u32 %v640_v16, %v638_v13 }
 0x35f   :  { %655 = vrot.lane.b32.xlu1 %v639_v15, %s6418_s4 }
 0x360   :  { %v673_v7 = vrot.slane %v611_v14, 1  ;;  %v644_v18 = vshll.u32 %v611_v14, 16  ;;  %v648_v24 = vshrl.u32 %v611_v14, 16 }
 0x362   :  { %v674_v20 = vsel %vm418_vm12, %v671_v4, %v673_v7  ;;  %v646_v22 = vrot.slane %v644_v18, 1 }
 0x363   :  { %681 = vrot.lane.b32.xlu0 %v674_v20, %s6417_s2 }
 0x364   :  { %v647_v23 = vsel %vm363_vm13, %v642_v21, %v646_v22  ;;  %v650_v25 = vor.u32 %v648_v24, %v646_v22 }
 0x365   :  { %657 = vrot.lane.b32.xlu1 %v647_v23, %s6418_s4 }
 0x367   :  { %683 = vrot.lane.b32.xlu0 %v673_v7, %s6417_s2 }
 0x369   :  { %659 = vrot.lane.b32.xlu1 %v650_v25, %s6418_s4  ;;  %s6423_s4 = smov 80  }
 0x3bf   :  { %v676_v27 = vpop.permute.xlu0 %675 }
 0x3c1   :  { %v652_v26 = vpop.permute.xlu1 %651 }
 0x3c2   :  { %v687_v29 = vsel %vm685_vm2, %v6779_v17, %v652_v26 }
 0x3c3   :  { %v697_v30 = vsel %vm438_vm14, %v687_v29, %v676_v27 }
 0x3c4   :  { %5884 = vmatmul.mubr.msk.bf16.vlgmr.msra.gmra.mrb[20].mxu1 %vm737_vm3, %v697_v30 }
 0x3c5   :  { %5887 = vmatprep.mubr.msk.bf16.mxu1 %vm6416_vm0, %v6415_v1 }
 0x3c7   :  { %v678_v32 = vpop.permute.xlu0 %677 }
 0x3c9   :  { %v654_v31 = vpop.permute.xlu1 %653 }
 0x3ca   :  { %v689_v33 = vsel %vm685_vm2, %v6782_v28, %v654_v31 }
 0x3cb   :  { %v699_v34 = vsel %vm438_vm14, %v689_v33, %v678_v32 }
 0x3cc   :  { %5888 = vmatmul.mubr.msk.bf16.gmra.mrb[24].mxu1 %vm737_vm3, %v699_v34 }
 0x3cd   :  { %5891 = vmatprep.mubr.msk.bf16.mxu1 %vm6416_vm0, %v6415_v1 }
 0x3cf   :  { %v680_v35 = vpop.permute.xlu0 %679 }
 0x3d1   :  { %v656_v17 = vpop.permute.xlu1 %655 }
 0x3d2   :  { %v691_v36 = vsel %vm685_vm2, %v6792_v46, %v656_v17  ;;  %v6839_v46 = vld [vmem:[#allocation7] ss:$0 sm:$0xff] }
 0x3d3   :  { %v701_v37 = vsel %vm438_vm14, %v691_v36, %v680_v35 }
 0x3d4   :  { %5892 = vmatmul.mubr.msk.bf16.gmra.mrb[28].mxu1 %vm737_vm3, %v701_v37 }
 0x3d5   :  { %5895 = vmatprep.mubr.msk.bf16.mxu1 %vm6416_vm0, %v6415_v1  ;;  %v682_v39 = vpop.permute.xlu0 %681 }
 0x3d7   :  { %v658_v28 = vpop.permute.xlu1 %657 }
 0x3d8   :  { %v693_v38 = vsel %vm685_vm2, %v610_v62, %v658_v28 }
 0x3d9   :  { %v703_v40 = vsel %vm438_vm14, %v693_v38, %v682_v39  ;;  %v684_v43 = vpop.permute.xlu0 %683 }
 0x3db   :  { %v660_v41 = vpop.permute.xlu1 %659 }
 0x3dc   :  { %5896 = vmatmul.mubr.msk.bf16.gmra.mrb[32].mxu1 %vm737_vm3, %v703_v40  ;;  %v695_v42 = vsel %vm685_vm2, %v611_v14, %v660_v41 }
 0x3dd   :  { %5899 = vmatprep.mubr.msk.bf16.mxu1 %vm6416_vm0, %v6415_v1  ;;  %v705_v44 = vsel %vm438_vm14, %v695_v42, %v684_v43  ;;  %vm872_vm0 = vcmask 1045504  }
 0x3e4   :  { %5900 = vmatmul.mubr.msk.bf16.gmra.mrb[36].mxu1 %vm737_vm3, %v705_v44 }
 0x497   :  { %v782_v47 = vpop.f32.mrb[20].mxu1 }
 0x498   :  { %v783_v48 = vadd.f32 %v6839_v46, %v782_v47  ;;  %v5885_v49 = vpop.f32.mrb[21].mxu1 }
 0x499   :  { %v785_v50 = vpop.f32.mrb[22].mxu1 }
 0x49a   :  { %v820_v51 = vmax.f32 %v783_v48, 0.0  ;;  %v786_v1 = vadd.f32 %v6839_v46, %v785_v50  ;;  %v5886_v52 = vpop.f32.mrb[23].mxu1 }
 0x49c   :  { %v821_v54 = vmax.f32 %v786_v1, 0.0  ;;  %v839_v55 = vrot.slane %v820_v51, 1  ;;  %v873_v53 = vrot.slane %v820_v51, 2 }
 0x49e   :  { %v840_v56 = vrot.slane %v821_v54, 1  ;;  %v874_v57 = vrot.slane %v821_v54, 2 }
 0x49f   :  { %v790_v58 = vpop.f32.mrb[24].mxu1 }
 0x4a0   :  { %v791_v60 = vadd.f32 %v6839_v46, %v790_v58  ;;  %v5889_v59 = vpop.f32.mrb[25].mxu1  ;;  %v841_v61 = vsel %vm418_vm12, %v839_v55, %v840_v56  ;;  %v875_v62 = vsel %vm872_vm0, %v873_v53, %v874_v57 }
 0x4a1   :  { %v793_v63 = vpop.f32.mrb[26].mxu1  ;;  %v864_v2 = vmax.f32 %v820_v51, %v841_v61 }
 0x4a2   :  { %v822_v3 = vmax.f32 %v791_v60, 0.0  ;;  %v794_v4 = vadd.f32 %v6839_v46, %v793_v63  ;;  %v5890_v5 = vpop.f32.mrb[27].mxu1 }
 0x4a3   :  { %v898_v6 = vmax.f32 %v864_v2, %v875_v62 }
 0x4a4   :  { %v842_v8 = vrot.slane %v822_v3, 1  ;;  %v876_v9 = vrot.slane %v822_v3, 2  ;;  %v823_v10 = vmax.f32 %v794_v4, 0.0 }
 0x4a6   :  { %v844_v11 = vrot.slane %v823_v10, 1  ;;  %v878_v12 = vrot.slane %v823_v10, 2  ;;  %v843_v13 = vsel %vm418_vm12, %v840_v56, %v842_v8  ;;  %v877_v14 = vsel %vm872_vm0, %v874_v57, %v876_v9 }
 0x4a7   :  { %v798_v15 = vpop.f32.mrb[28].mxu1  ;;  %v865_v7 = vmax.f32 %v821_v54, %v843_v13 }
 0x4a8   :  { %v799_v16 = vadd.f32 %v6839_v46, %v798_v15  ;;  %v5893_v18 = vpop.f32.mrb[29].mxu1  ;;  %v845_v20 = vsel %vm418_vm12, %v842_v8, %v844_v11  ;;  %v879_v21 = vsel %vm872_vm0, %v876_v9, %v878_v12  ;;  %v6175_v15 = vld [vmem:[#allocation12 + $0x8] sm:$0xff]  }
 0x4a9   :  { %v801_v22 = vpop.f32.mrb[30].mxu1  ;;  %v899_v23 = vmax.f32 %v865_v7, %v877_v14  ;;  %v866_v24 = vmax.f32 %v822_v3, %v845_v20  ;;  %v6176_v7 = vld [vmem:[%s7473_s6] sm:$0xff]   ;;  %v6178_v18 = vld [vmem:[%s7473_s6 + $0x10] sm:$0xff]   ;;  %v6179_v20 = vld [vmem:[%s7473_s6 + $0x18] sm:$0xff]  }
 0x4aa   :  { %v824_v25 = vmax.f32 %v799_v16, 0.0  ;;  %v802_v26 = vadd.f32 %v6839_v46, %v801_v22  ;;  %v5894_v27 = vpop.f32.mrb[31].mxu1  ;;  %v6177_v16 = vld [vmem:[%s7473_s6 + $0x8] sm:$0xff]   ;;  %v6180_v22 = vld [vmem:[%s7473_s6 + $0x20] ss:$0 sps:$4 sm:$0xff]   ;;  %s6419_s6 = smov 24  }
 0x4ab   :  { %v910_v29 = vpack.c.bf16 %v899_v23, %v898_v6  ;;  %v900_v30 = vmax.f32 %v866_v24, %v879_v21 }
 0x4ac   :  { %v846_v31 = vrot.slane %v824_v25, 1  ;;  %v880_v32 = vrot.slane %v824_v25, 2  ;;  %v825_v33 = vmax.f32 %v802_v26, 0.0 }
 0x4ad   :  { %5903 = vmatprep.subr.bf16.mxu0 %v910_v29 }
 0x4ae   :  { %v848_v34 = vrot.slane %v825_v33, 1  ;;  %v882_v17 = vrot.slane %v825_v33, 2  ;;  %5904 = vmatpush3.bf16.msra.mxu0 %v910_v29  ;;  %v847_v35 = vsel %vm418_vm12, %v844_v11, %v846_v31  ;;  %v881_v36 = vsel %vm872_vm0, %v878_v12, %v880_v32 }
 0x4af   :  { %v806_v37 = vpop.f32.mrb[32].mxu1  ;;  %v867_v28 = vmax.f32 %v823_v10, %v847_v35 }
 0x4b0   :  { %v807_v38 = vadd.f32 %v6839_v46, %v806_v37  ;;  %v5897_v39 = vpop.f32.mrb[33].mxu1  ;;  %v849_v40 = vsel %vm418_vm12, %v846_v31, %v848_v34  ;;  %v883_v41 = vsel %vm872_vm0, %v880_v32, %v882_v17 }
 0x4b1   :  { %v809_v42 = vpop.f32.mrb[34].mxu1  ;;  %v901_v43 = vmax.f32 %v867_v28, %v881_v36  ;;  %v868_v44 = vmax.f32 %v824_v25, %v849_v40  ;;  %v1068_v25 = vsel %vm1066_vm4, %v6180_v22, 0 }
 0x4b2   :  { %v826_v45 = vmax.f32 %v807_v38, 0.0  ;;  %v810_v47 = vadd.f32 %v6839_v46, %v809_v42  ;;  %v5898_v48 = vpop.f32.mrb[35].mxu1 }
 0x4b3   :  { %v911_v49 = vpack.c.bf16 %v901_v43, %v900_v30  ;;  %v902_v50 = vmax.f32 %v868_v44, %v883_v41 }
 0x4b4   :  { %v850_v51 = vrot.slane %v826_v45, 1  ;;  %v884_v1 = vrot.slane %v826_v45, 2  ;;  %v827_v52 = vmax.f32 %v810_v47, 0.0 }
 0x4b5   :  { %5905 = vmatprep.subr.bf16.mxu0 %v911_v49 }
 0x4b6   :  { %v852_v54 = vrot.slane %v827_v52, 1  ;;  %v886_v55 = vrot.slane %v827_v52, 2  ;;  %5906 = vmatpush3.bf16.msra.mxu0 %v911_v49  ;;  %v851_v53 = vsel %vm418_vm12, %v848_v34, %v850_v51  ;;  %v885_v56 = vsel %vm872_vm0, %v882_v17, %v884_v1  ;;  %v6181_v49 = vld [vmem:[%s7475_s8] sm:$0xff]  }
 0x4b7   :  { %v814_v57 = vpop.f32.mrb[36].mxu1  ;;  %v869_v58 = vmax.f32 %v825_v33, %v851_v53  ;;  %5929 = vmatprep.subr.bf16.mxu1 %v6181_v49 }
 0x4b8   :  { %v815_v60 = vadd.f32 %v6839_v46, %v814_v57  ;;  %v5901_v59 = vpop.f32.mrb[37].mxu1  ;;  %v853_v61 = vsel %vm418_vm12, %v850_v51, %v852_v54  ;;  %v887_v62 = vsel %vm872_vm0, %v884_v1, %v886_v55  ;;  %5930 = vmatpush3.bf16.msra.mxu1 %v6181_v49  ;;  %v6183_v51 = vld [vmem:[%s7475_s8 + $0x10] sm:$0xff]   ;;  %v6184_v1 = vld [vmem:[%s7475_s8 + $0x18] sm:$0xff]  }
 0x4b9   :  { %v817_v63 = vpop.f32.mrb[38].mxu1  ;;  %v903_v2 = vmax.f32 %v869_v58, %v885_v56  ;;  %v870_v3 = vmax.f32 %v826_v45, %v853_v61 }
 0x4ba   :  { %v828_v4 = vmax.f32 %v815_v60, 0.0  ;;  %v5902_v5 = vpop.f32.mrb[39].mxu1 }
 0x4bb   :  { %v912_v6 = vpack.c.bf16 %v903_v2, %v902_v50  ;;  %v904_v8 = vmax.f32 %v870_v3, %v887_v62  ;;  %v6182_v50 = vld [vmem:[%s7475_s8 + $0x8] sm:$0xff]  }
 0x4bc   :  { %v854_v9 = vrot.slane %v828_v4, 1  ;;  %v888_v10 = vrot.slane %v828_v4, 2  ;;  %5931 = vmatprep.subr.bf16.mxu1 %v6182_v50  ;;  %v6186_v62 = vld [vmem:[%s7475_s8 + $0x28] sm:$0xff]  }
 0x4bd   :  { %5907 = vmatprep.subr.bf16.mxu0 %v912_v6  ;;  %5932 = vmatpush3.bf16.msra.mxu1 %v6182_v50 }
 0x4be   :  { %v855_v11 = vsel %vm418_vm12, %v852_v54, %v854_v9  ;;  %5908 = vmatpush3.bf16.msra.mxu0 %v912_v6  ;;  %v889_v46 = vsel %vm872_vm0, %v886_v55, %v888_v10  ;;  %5933 = vmatprep.subr.bf16.mxu1 %v6183_v51  ;;  %v6185_v55 = vld [vmem:[%s7475_s8 + $0x20] sm:$0xff]   ;;  %s6421_s8 = smov 40  }
 0x4bf   :  { %v871_v12 = vmax.f32 %v827_v52, %v855_v11  ;;  %v5168_v52 = vld [vmem:[#allocation9] ss:$0 sm:$0xff] }
 0x4c1   :  { %v905_v13 = vmax.f32 %v871_v12, %v889_v46  ;;  %5934 = vmatpush3.bf16.msra.mxu1 %v6183_v51 }
 0x4c2   :  { %5935 = vmatprep.subr.bf16.mxu1 %v6184_v1 }
 0x4c3   :  { %v913_v14 = vpack.c.bf16 %v905_v13, %v904_v8 }
 0x4c5   :  { %5909 = vmatprep.subr.bf16.mxu0 %v913_v14  ;;  %5936 = vmatpush3.bf16.msra.mxu1 %v6184_v1 }
 0x4c6   :  { %5910 = vmatpush3.bf16.msra.mxu0 %v913_v14  ;;  %5937 = vmatprep.subr.bf16.mxu1 %v6185_v55 }
 0x4c7   :  { %5915 = vmatprep.subr.bf16.mxu0 %v6176_v7 }
 0x4c9   :  { %5912 = vmatmul.mubr.msk.bf16.vlgmr.msra.gmra.mrb[20].mxu0 %vm449_vm15, %v6175_v15  ;;  %5938 = vmatpush3.bf16.msra.mxu1 %v6185_v55 }
 0x4ca   :  { %5916 = vmatpush3.bf16.msra.mxu0 %v6176_v7  ;;  %5939 = vmatprep.subr.bf16.mxu1 %v6186_v62 }
 0x4cb   :  { %5917 = vmatprep.subr.bf16.mxu0 %v6177_v16 }
 0x4cd   :  { %5940 = vmatpush3.bf16.msra.mxu1 %v6186_v62 }
 0x4ce   :  { %5918 = vmatpush3.bf16.msra.mxu0 %v6177_v16 }
 0x4cf   :  { %5919 = vmatprep.subr.bf16.mxu0 %v6178_v18 }
 0x4d2   :  { %5920 = vmatpush3.bf16.msra.mxu0 %v6178_v18 }
 0x4d3   :  { %5921 = vmatprep.subr.bf16.mxu0 %v6179_v20 }
 0x4d6   :  { %5922 = vmatpush3.bf16.msra.mxu0 %v6179_v20 }
 0x4d7   :  { %6129 = vmatprep.subr.msk.bf16.mxu0 %vm1066_vm4, %v6180_v22 }
 0x4da   :  { %5924 = vmatpush3.bf16.msra.mxu0 %v1068_v25 }
 0x59c   :  { %v5913_v21 = vpop.f32.mrb[20].mxu0 }
 0x59d   :  { %v964_v23 = vpop.f32.mrb[21].mxu0 }
 0x59e   :  { %v5914_v24 = vpop.f32.mrb[22].mxu0 }
 0x59f   :  { %v980_v26 = vpack.c.bf16 %v5914_v24, %v5913_v21  ;;  %v967_v27 = vpop.f32.mrb[23].mxu0 }
 0x5a0   :  { %v979_v29 = vpack.c.bf16 %v967_v27, %v964_v23 }
 0x5a1   :  { %v989_v30 = vshll.u32 %v980_v26, 16  ;;  %v993_v33 = vshrl.u32 %v980_v26, 16  ;;  %v1003_v28 = vrot.slane %v980_v26, 1 }
 0x5a2   :  { %v984_v31 = vshll.u32 %v979_v29, 16  ;;  %v982_v34 = vshrl.u32 %v979_v29, 16  ;;  %v1002_v38 = vrot.slane %v979_v29, 1 }
 0x5a3   :  { %v991_v32 = vrot.slane %v989_v30, 1 }
 0x5a4   :  { %v986_v17 = vrot.slane %v984_v31, 1  ;;  %v1004_v39 = vsel %vm418_vm12, %v1002_v38, %v1003_v28 }
 0x5a5   :  { %v995_v35 = vor.u32 %v993_v33, %v991_v32 }
 0x5a6   :  { %v987_v36 = vor.u32 %v986_v17, %v982_v34 }
 0x5a7   :  { %998 = vrot.lane.b32.xlu0 %v995_v35, %s6419_s6 }
 0x5a8   :  { %v992_v37 = vsel %vm363_vm13, %v987_v36, %v991_v32 }
 0x5a9   :  { %996 = vrot.lane.b32.xlu1 %v992_v37, %s6419_s6 }
 0x5ab   :  { %1007 = vrot.lane.b32.xlu0 %v1003_v28, %s6420_s20 }
 0x5ad   :  { %1005 = vrot.lane.b32.xlu1 %v1004_v39, %s6420_s20 }
 0x619   :  { %v999_v40 = vpop.permute.xlu0 %998 }
 0x61a   :  { %v1013_v45 = vsel %vm1009_vm5, %v980_v26, %v999_v40 }
 0x61b   :  { %v997_v41 = vpop.permute.xlu1 %996 }
 0x61c   :  { %v1011_v43 = vsel %vm1009_vm5, %v979_v29, %v997_v41  ;;  %v5176_v29 = vld [vmem:[#allocation10] ss:$0 sm:$0xff] }
 0x61d   :  { %v1008_v42 = vpop.permute.xlu0 %1007 }
 0x61e   :  { %v1017_v48 = vsel %vm737_vm3, %v1013_v45, %v1008_v42 }
 0x61f   :  { %v1006_v44 = vpop.permute.xlu1 %1005 }
 0x620   :  { %v1015_v47 = vsel %vm737_vm3, %v1011_v43, %v1006_v44 }
 0x621   :  { %5925 = vmatprep.mubr.msk.bf16.mxu0 %vm1061_vm6, %v1015_v47 }
 0x622   :  { %5926 = vmatmul.mubr.msk.bf16.vlgmr.msra.gmra.mrb[24].mxu0 %vm1061_vm6, %v1017_v48 }
 0x6f5   :  { %v5927_v54 = vpop.f32.mrb[24].mxu0 }
 0x6f6   :  { %v1113_v53 = vadd.f32 %v5927_v54, %v5168_v52  ;;  %v1104_v56 = vpop.f32.mrb[25].mxu0 }
 0x6f7   :  { %v1105_v57 = vadd.f32 %v5168_v52, %v1104_v56  ;;  %v5928_v58 = vpop.f32.mrb[26].mxu0 }
 0x6f8   :  { %v1116_v60 = vadd.f32 %v5928_v58, %v5168_v52  ;;  %v1107_v59 = vpop.f32.mrb[27].mxu0  ;;  %v1121_v63 = vmax.f32 %v1113_v53, 0.0 }
 0x6f9   :  { %v1108_v61 = vadd.f32 %v5168_v52, %v1107_v59  ;;  %v1119_v3 = vmax.f32 %v1105_v57, 0.0 }
 0x6fa   :  { %v1122_v2 = vmax.f32 %v1116_v60, 0.0 }
 0x6fb   :  { %v1120_v4 = vmax.f32 %v1108_v61, 0.0 }
 0x6fc   :  { %v1124_v5 = vpack.c.bf16 %v1122_v2, %v1121_v63 }
 0x6fd   :  { %v1123_v6 = vpack.c.bf16 %v1120_v4, %v1119_v3 }
 0x6fe   :  { %v1133_v8 = vshll.u32 %v1124_v5, 16  ;;  %v1137_v11 = vshrl.u32 %v1124_v5, 16  ;;  %v1147_v7 = vrot.slane %v1124_v5, 1 }
 0x6ff   :  { %v1128_v9 = vshll.u32 %v1123_v6, 16  ;;  %v1126_v46 = vshrl.u32 %v1123_v6, 16  ;;  %v1146_v16 = vrot.slane %v1123_v6, 1 }
 0x700   :  { %v1135_v10 = vrot.slane %v1133_v8, 1 }
 0x701   :  { %v1130_v12 = vrot.slane %v1128_v9, 1  ;;  %v1148_v18 = vsel %vm418_vm12, %v1146_v16, %v1147_v7 }
 0x702   :  { %v1139_v13 = vor.u32 %v1137_v11, %v1135_v10 }
 0x703   :  { %v1131_v14 = vor.u32 %v1130_v12, %v1126_v46 }
 0x704   :  { %1142 = vrot.lane.b32.xlu0 %v1139_v13, %s6417_s2 }
 0x705   :  { %v1136_v15 = vsel %vm363_vm13, %v1131_v14, %v1135_v10 }
 0x706   :  { %1140 = vrot.lane.b32.xlu1 %v1136_v15, %s6417_s2 }
 0x708   :  { %1151 = vrot.lane.b32.xlu0 %v1147_v7, %s6411_s7 }
 0x70a   :  { %1149 = vrot.lane.b32.xlu1 %v1148_v18, %s6411_s7  ;;  %s6422_s7 = smov 84  }
 0x776   :  { %v1143_v20 = vpop.permute.xlu0 %1142 }
 0x777   :  { %v1156_v25 = vsel %vm438_vm14, %v1124_v5, %v1143_v20 }
 0x778   :  { %v1141_v21 = vpop.permute.xlu1 %1140 }
 0x779   :  { %v1154_v23 = vsel %vm438_vm14, %v1123_v6, %v1141_v21 }
 0x77a   :  { %v1152_v22 = vpop.permute.xlu0 %1151 }
 0x77b   :  { %v1160_v27 = vsel %vm449_vm15, %v1156_v25, %v1152_v22 }
 0x77c   :  { %v1150_v24 = vpop.permute.xlu1 %1149 }
 0x77d   :  { %v1158_v26 = vsel %vm449_vm15, %v1154_v23, %v1150_v24 }
 0x77e   :  { %5941 = vmatprep.mubr.msk.bf16.mxu1 %vm515_vm1, %v1158_v26 }
 0x77f   :  { %5942 = vmatmul.mubr.msk.bf16.vlgmr.msra.gmra.mrb[40].mxu1 %vm515_vm1, %v1160_v27 }
 0x852   :  { %v5943_v30 = vpop.f32.mrb[40].mxu1 }
 0x853   :  { %v1263_v31 = vadd.f32 %v5943_v30, %v5176_v29  ;;  %v1254_v32 = vpop.f32.mrb[41].mxu1 }
 0x854   :  { %v1255_v33 = vadd.f32 %v5176_v29, %v1254_v32  ;;  %v5944_v34 = vpop.f32.mrb[42].mxu1 }
 0x855   :  { %v1266_v17 = vadd.f32 %v5944_v34, %v5176_v29  ;;  %v1257_v35 = vpop.f32.mrb[43].mxu1  ;;  %v1271_v37 = vmax.f32 %v1263_v31, 0.0 }
 0x856   :  { %v1258_v36 = vadd.f32 %v5176_v29, %v1257_v35  ;;  %v1269_v38 = vmax.f32 %v1255_v33, 0.0 }
 0x857   :  { %v1272_v28 = vmax.f32 %v1266_v17, 0.0 }
 0x858   :  { %v1270_v39 = vmax.f32 %v1258_v36, 0.0 }
 0x859   :  { %v6920_v40 = vpack.c.bf16 %v1272_v28, %v1271_v37 }
 0x85a   :  { %v6922_v41 = vpack.c.bf16 %v1270_v39, %v1269_v38 }
 0x85b   :  { %v1344_v42 = vrot.slane %v6920_v40, 1  ;;  %v1339_v43 = vshrl.u32 %v6920_v40, 16  ;;  %v1362_v44 = vrot.slane %v6920_v40, 4  ;;  %v1350_v45 = vrot.slane %v6920_v40, 2 }
 0x85c   :  { %v1356_v47 = vrot.slane %v6920_v40, 3  ;;  %v1281_v48 = vrot.slane %v6922_v41, 1  ;;  %v1299_v49 = vrot.slane %v6922_v41, 4  ;;  %v1276_v50 = vshrl.u32 %v6922_v41, 16 }
 0x85d   :  { %1345 = vrot.lane.b32.xlu0 %v1344_v42, %s6421_s8  ;;  %1341 = vrot.lane.b32.xlu1 %v1339_v43, %s6422_s7  ;;  %v1359_v51 = vrot.slane %v1339_v43, 3  ;;  %v1287_v1 = vrot.slane %v6922_v41, 2  ;;  %v1347_v52 = vrot.slane %v1339_v43, 1  ;;  %v1353_v54 = vrot.slane %v1339_v43, 2 }
 0x85e   :  { %v1365_v55 = vrot.slane %v1339_v43, 4  ;;  %v1296_v53 = vrot.slane %v1276_v50, 3 }
 0x861   :  { %1363 = vrot.lane.b32.xlu0 %v1362_v44, %s6417_s2  ;;  %1351 = vrot.lane.b32.xlu1 %v1350_v45, %s6423_s4 }
 0x865   :  { %1357 = vrot.lane.b32.xlu0 %v1356_v47, %s6424_s28  ;;  %1282 = vrot.lane.b32.xlu1 %v1281_v48, %s6421_s8 }
 0x869   :  { %1300 = vrot.lane.b32.xlu1 %v1299_v49, %s6417_s2  ;;  %1278 = vrot.lane.b32.xlu0 %v1276_v50, %s6422_s7 }
 0x86d   :  { %1360 = vrot.lane.b32.xlu1 %v1359_v51, %s6425_s5  ;;  %1288 = vrot.lane.b32.xlu0 %v1287_v1, %s6423_s4 }
 0x871   :  { %1348 = vrot.lane.b32.xlu1 %v1347_v52, %s6426_s19  ;;  %1354 = vrot.lane.b32.xlu0 %v1353_v54, %s6427_s0 }
 0x872   :  { %6358 = shalt.err (!%p6355_p2)  }
 0x873   :  { %s6359_s22 = scalar_lea.vmem %s141_s1, 53760  ;;  %p6364_p4 = scmp.lt.s32.totalorder %s141_s1, %s141_s1 }
 0x874   :  { %p6360_p3 = scmp.ne.s32.totalorder %s141_s1, %s6359_s22  ;;  %p6365_p5 = scmp.lt.s32.totalorder %s6359_s22, %s6359_s22 }
 0x876   :  { %p6366_p6 = por %p6365_p5, %p6364_p4 }
 0x878   :  { %p6367_p7 = pnand %p6366_p6, %p6360_p3 }
 0x87a   :  { %6370 = shalt.err (!%p6367_p7)  }
 0x87b   :  { %143 = dma.hbm_to_vmem [thread:$0]  %s7478_s11, 53760, %s141_s1, [#allocation3]  ;;  %1297 = vrot.lane.b32.xlu0 %v1296_v53, %s6425_s5  ;;  %v1290_v56 = vrot.slane %v1276_v50, 2  ;;  %v1284_v57 = vrot.slane %v1276_v50, 1  ;;  %v1293_v58 = vrot.slane %v6922_v41, 3  ;;  %v1302_v60 = vrot.slane %v1276_v50, 4 }
 0x87c   :  { %s6429_s10 = smov 116   ;;  %vm1306_vm7 = vcmask 687104   ;;  %vm1414_vm8 = vcmask 1040384   ;;  %vm1415_vm9 = vsmask.f32 256  ;;  %vm1310_vm11 = vcmask 326656  }
 0x87d   :  { %1366 = vrot.lane.b32.xlu1 %v1365_v55, %s6429_s10  ;;  %vm6951_vm10 = vmand %vm1414_vm8, %vm1415_vm9  ;;  %vm1313_vm12 = vcmask 1014784   ;;  %vm1317_vm13 = vcmask 654336   ;;  %vm1321_vm15 = vcmask 293888   ;;  %vm1328_vm1 = vcmask 621568  }
 0x87e   :  { %vm1324_vm2 = vcmask 982016   ;;  %vm1334_vm3 = vcmask 949248  }
 0x87f   :  { %1285 = vrot.lane.b32.xlu0 %v1284_v57, %s6426_s19 }
 0x881   :  { %1291 = vrot.lane.b32.xlu1 %v1290_v56, %s6427_s0 }
 0x883   :  { %1303 = vrot.lane.b32.xlu0 %v1302_v60, %s6429_s10 }
 0x885   :  { %1294 = vrot.lane.b32.xlu1 %v1293_v58, %s6424_s28 }
 0x8cf   :  { %v1346_v59 = vpop.permute.xlu0 %1345  ;;  %v1342_v61 = vpop.permute.xlu1 %1341 }
 0x8d0   :  { %v1369_v2 = vsel %vm1306_vm7, %v6920_v40, %v1342_v61  ;;  %v1371_v14 = vsel %vm1310_vm11, %v1342_v61, %v1346_v59 }
 0x8d1   :  { %v1386_v3 = vshll.u32 %v1369_v2, 16 }
 0x8d3   :  { %v1364_v62 = vpop.permute.xlu0 %1363  ;;  %v1352_v63 = vpop.permute.xlu1 %1351  ;;  %v1388_v8 = vrot.slane %v1386_v3, 1 }
 0x8d7   :  { %v1358_v4 = vpop.permute.xlu0 %1357  ;;  %v1283_v5 = vpop.permute.xlu1 %1282 }
 0x8db   :  { %v1301_v9 = vpop.permute.xlu1 %1300  ;;  %v1279_v10 = vpop.permute.xlu0 %1278 }
 0x8dc   :  { %v1308_v11 = vsel %vm1306_vm7, %v6922_v41, %v1279_v10  ;;  %v1312_v30 = vsel %vm1310_vm11, %v1279_v10, %v1283_v5 }
 0x8dd   :  { %v6958_v46 = vsel %vm6951_vm10, %v1308_v11, %v1388_v8 }
 0x8df   :  { %v1361_v12 = vpop.permute.xlu1 %1360  ;;  %v1289_v13 = vpop.permute.xlu0 %1288 }
 0x8e0   :  { %v1381_v21 = vsel %vm1328_vm1, %v1358_v4, %v1361_v12  ;;  %v1383_v22 = vsel %vm438_vm14, %v1361_v12, %v1364_v62 }
 0x8e1   :  { %v1398_v31 = vshll.u32 %v1381_v21, 16 }
 0x8e3   :  { %v1349_v15 = vpop.permute.xlu1 %1348  ;;  %v1355_v7 = vpop.permute.xlu0 %1354  ;;  %v1400_v41 = vrot.slane %v1398_v31, 1 }
 0x8e4   :  { %v1373_v16 = vsel %vm1313_vm12, %v1371_v14, %v1349_v15  ;;  %v1375_v18 = vsel %vm1317_vm13, %v1349_v15, %v1352_v63  ;;  %v1377_v20 = vsel %vm1321_vm15, %v1352_v63, %v1355_v7 }
 0x8e5   :  { %v1389_v23 = vshll.u32 %v1373_v16, 16  ;;  %v1392_v24 = vshll.u32 %v1375_v18, 16  ;;  %v1379_v27 = vsel %vm1324_vm2, %v1377_v20, %v1358_v4 }
 0x8e6   :  { %v1395_v17 = vshll.u32 %v1379_v27, 16 }
 0x8e7   :  { %v1391_v33 = vrot.slane %v1389_v23, 1  ;;  %v1394_v34 = vrot.slane %v1392_v24, 1 }
 0x8e8   :  { %v1397_v43 = vrot.slane %v1395_v17, 1 }
 0x8ed   :  { %v1298_v26 = vpop.permute.xlu0 %1297 }
 0x8ee   :  { %v1333_v45 = vsel %vm438_vm14, %v1298_v26, %v1301_v9 }
 0x8ef   :  { %v1367_v25 = vpop.permute.xlu1 %1366 }
 0x8f0   :  { %v1385_v29 = vsel %vm1334_vm3, %v1383_v22, %v1367_v25  ;;  %v1404_v32 = vshll.u32 %v1367_v25, 16 }
 0x8f1   :  { %v1401_v35 = vshll.u32 %v1385_v29, 16  ;;  %v1286_v37 = vpop.permute.xlu0 %1285 }
 0x8f2   :  { %v1315_v28 = vsel %vm1313_vm12, %v1312_v30, %v1286_v37  ;;  %v1319_v38 = vsel %vm1317_vm13, %v1286_v37, %v1289_v13  ;;  %v1406_v42 = vrot.slane %v1404_v32, 1 }
 0x8f3   :  { %v1292_v36 = vpop.permute.xlu1 %1291  ;;  %v6973_v39 = vsel %vm6951_vm10, %v1315_v28, %v1391_v33  ;;  %v6977_v40 = vsel %vm6951_vm10, %v1319_v38, %v1394_v34  ;;  %v1403_v44 = vrot.slane %v1401_v35, 1 }
 0x8f4   :  { %v1323_v47 = vsel %vm1321_vm15, %v1289_v13, %v1292_v36 }
 0x8f5   :  { %v1304_v49 = vpop.permute.xlu0 %1303 }
 0x8f6   :  { %v1336_v1 = vsel %vm1334_vm3, %v1333_v45, %v1304_v49  ;;  %v6986_v52 = vsel %vm6951_vm10, %v1304_v49, %v1406_v42 }
 0x8f7   :  { %v1295_v48 = vpop.permute.xlu1 %1294  ;;  %v6998_v53 = vsel %vm6951_vm10, %v1336_v1, %v1403_v44 }
 0x8f8   :  { %v1326_v50 = vsel %vm1324_vm2, %v1323_v47, %v1295_v48  ;;  %v1330_v51 = vsel %vm1328_vm1, %v1295_v48, %v1298_v26 }
 0x8f9   :  { %v6990_v54 = vsel %vm6951_vm10, %v1326_v50, %v1397_v43  ;;  %v6994_v55 = vsel %vm6951_vm10, %v1330_v51, %v1400_v41 }
 0x8fa   :  { %6401 = dma.done.wait [#allocation3], 53760 }
 0x8fb   :  { %6402 = vsyncadd [#allocation3], 4294913536  ;;  %4049 = vmatprep.mubr.bf16.mxu0 %v6973_v39  ;;  %4213 = vmatprep.mubr.bf16.mxu1 %v6973_v39  ;;  %v1428_v56 = vld [vmem:[#allocation2] sm:$0xff]  ;;  %v1429_v58 = vld [vmem:[#allocation2 + $0x8] sm:$0xff]  ;;  %vm5096_vm14 = vcmask 33792  }
 0x8fc   :  { %v1432_v57 = vld [vmem:[#allocation2 + $0x20] sm:$0xff]  ;;  %v1433_v59 = vld [vmem:[#allocation2 + $0x28] sm:$0xff] }
 0x8fd   :  { %v5186_v60 = vcombine.high %v1428_v56, %v1432_v57  ;;  %v5185_v61 = vcombine.low %v1428_v56, %v1432_v57  ;;  %v1436_v62 = vld [vmem:[#allocation2 + $0x40] sm:$0xff]  ;;  %v5188_v2 = vcombine.high %v1429_v58, %v1433_v59  ;;  %v5187_v3 = vcombine.low %v1429_v58, %v1433_v59  ;;  %v1437_v5 = vld [vmem:[#allocation2 + $0x48] sm:$0xff] }
 0x8fe   :  { %v1440_v63 = vld [vmem:[#allocation2 + $0x60] sm:$0xff]  ;;  %v1441_v6 = vld [vmem:[#allocation2 + $0x68] sm:$0xff] }
 0x8ff   :  { %v5194_v4 = vcombine.high %v1436_v62, %v1440_v63  ;;  %v1444_v8 = vld [vmem:[#allocation2 + $0x80] sm:$0xff]  ;;  %4017 = vmatprep.subr.bf16.mxu0 %v5186_v60  ;;  %v5196_v9 = vcombine.high %v1437_v5, %v1441_v6  ;;  %v1445_v11 = vld [vmem:[#allocation2 + $0x88] sm:$0xff]  ;;  %4181 = vmatprep.subr.bf16.mxu1 %v5188_v2  ;;  %v5193_v13 = vcombine.low %v1436_v62, %v1440_v63 }
 0x900   :  { %v1448_v10 = vld [vmem:[#allocation2 + $0xa0] sm:$0xff]  ;;  %v1449_v12 = vld [vmem:[#allocation2 + $0xa8] sm:$0xff]  ;;  %4018 = vmatpush1.bf16.msra.mxu0 %v5185_v61  ;;  %4182 = vmatpush1.bf16.msra.mxu1 %v5187_v3  ;;  %v5195_v14 = vcombine.low %v1437_v5, %v1441_v6 }
 0x901   :  { %4019 = vmatprep.subr.bf16.mxu0 %v5194_v4  ;;  %v5202_v15 = vcombine.high %v1444_v8, %v1448_v10  ;;  %4183 = vmatprep.subr.bf16.mxu1 %v5196_v9  ;;  %v5204_v7 = vcombine.high %v1445_v11, %v1449_v12  ;;  %v1452_v16 = vld [vmem:[#allocation2 + $0xc0] sm:$0xff]  ;;  %v1453_v20 = vld [vmem:[#allocation2 + $0xc8] sm:$0xff]  ;;  %v5201_v22 = vcombine.low %v1444_v8, %v1448_v10 }
 0x902   :  { %v1456_v18 = vld [vmem:[#allocation2 + $0xe0] sm:$0xff]  ;;  %v1457_v21 = vld [vmem:[#allocation2 + $0xe8] sm:$0xff]  ;;  %v5203_v23 = vcombine.low %v1445_v11, %v1449_v12 }
 0x903   :  { %v5210_v24 = vcombine.high %v1452_v16, %v1456_v18  ;;  %v5212_v25 = vcombine.high %v1453_v20, %v1457_v21  ;;  %v1460_v26 = vld [vmem:[#allocation2 + $0x100] sm:$0xff]  ;;  %v1461_v29 = vld [vmem:[#allocation2 + $0x108] sm:$0xff]  ;;  %v5209_v31 = vcombine.low %v1452_v16, %v1456_v18  ;;  %v5211_v32 = vcombine.low %v1453_v20, %v1457_v21 }
 0x904   :  { %4020 = vmatpush1.bf16.msra.mxu0 %v5193_v13  ;;  %4184 = vmatpush1.bf16.msra.mxu1 %v5195_v14  ;;  %v1464_v27 = vld [vmem:[#allocation2 + $0x120] sm:$0xff]  ;;  %v1465_v30 = vld [vmem:[#allocation2 + $0x128] sm:$0xff] }
 0x905   :  { %4021 = vmatprep.subr.bf16.mxu0 %v5202_v15  ;;  %4185 = vmatprep.subr.bf16.mxu1 %v5204_v7  ;;  %v5218_v33 = vcombine.high %v1460_v26, %v1464_v27  ;;  %v5220_v34 = vcombine.high %v1461_v29, %v1465_v30  ;;  %v1468_v17 = vld [vmem:[#allocation2 + $0x140] sm:$0xff]  ;;  %v1469_v36 = vld [vmem:[#allocation2 + $0x148] sm:$0xff]  ;;  %v5217_v28 = vcombine.low %v1460_v26, %v1464_v27 }
 0x906   :  { %v1472_v35 = vld [vmem:[#allocation2 + $0x160] sm:$0xff]  ;;  %v1473_v37 = vld [vmem:[#allocation2 + $0x168] sm:$0xff]  ;;  %v5219_v38 = vcombine.low %v1461_v29, %v1465_v30 }
 0x907   :  { %v5226_v41 = vcombine.high %v1468_v17, %v1472_v35  ;;  %v5228_v42 = vcombine.high %v1469_v36, %v1473_v37  ;;  %v1476_v43 = vld [vmem:[#allocation2 + $0x180] sm:$0xff]  ;;  %v1477_v45 = vld [vmem:[#allocation2 + $0x188] sm:$0xff]  ;;  %v5225_v48 = vcombine.low %v1468_v17, %v1472_v35  ;;  %v5227_v49 = vcombine.low %v1469_v36, %v1473_v37 }
 0x908   :  { %4022 = vmatpush1.bf16.msra.mxu0 %v5201_v22  ;;  %4186 = vmatpush1.bf16.msra.mxu1 %v5203_v23  ;;  %v1480_v44 = vld [vmem:[#allocation2 + $0x1a0] sm:$0xff]  ;;  %v1481_v47 = vld [vmem:[#allocation2 + $0x1a8] sm:$0xff] }
 0x909   :  { %4023 = vmatprep.subr.bf16.mxu0 %v5210_v24  ;;  %4187 = vmatprep.subr.bf16.mxu1 %v5212_v25  ;;  %v5234_v50 = vcombine.high %v1476_v43, %v1480_v44  ;;  %v5236_v51 = vcombine.high %v1477_v45, %v1481_v47  ;;  %v1484_v1 = vld [vmem:[#allocation2 + $0x1c0] sm:$0xff]  ;;  %v1485_v57 = vld [vmem:[#allocation2 + $0x1c8] sm:$0xff]  ;;  %v5233_v60 = vcombine.low %v1476_v43, %v1480_v44 }
 0x90a   :  { %v1488_v56 = vld [vmem:[#allocation2 + $0x1e0] sm:$0xff]  ;;  %v1489_v58 = vld [vmem:[#allocation2 + $0x1e8] sm:$0xff]  ;;  %v5235_v59 = vcombine.low %v1477_v45, %v1481_v47 }
 0x90b   :  { %v5242_v61 = vcombine.high %v1484_v1, %v1488_v56  ;;  %v5244_v62 = vcombine.high %v1485_v57, %v1489_v58  ;;  %v1492_v63 = vld [vmem:[#allocation2 + $0x200] sm:$0xff]  ;;  %v1493_v3 = vld [vmem:[#allocation2 + $0x208] sm:$0xff]  ;;  %v5241_v5 = vcombine.low %v1484_v1, %v1488_v56  ;;  %v5243_v6 = vcombine.low %v1485_v57, %v1489_v58 }
 0x90c   :  { %4024 = vmatpush1.bf16.msra.mxu0 %v5209_v31  ;;  %4188 = vmatpush1.bf16.msra.mxu1 %v5211_v32  ;;  %v1496_v2 = vld [vmem:[#allocation2 + $0x220] sm:$0xff]  ;;  %v1497_v4 = vld [vmem:[#allocation2 + $0x228] sm:$0xff] }
 0x90d   :  { %4025 = vmatprep.subr.bf16.mxu0 %v5218_v33  ;;  %4189 = vmatprep.subr.bf16.mxu1 %v5220_v34  ;;  %v5250_v8 = vcombine.high %v1492_v63, %v1496_v2  ;;  %v5252_v9 = vcombine.high %v1493_v3, %v1497_v4  ;;  %v1500_v10 = vld [vmem:[#allocation2 + $0x240] sm:$0xff]  ;;  %v1501_v12 = vld [vmem:[#allocation2 + $0x248] sm:$0xff]  ;;  %v5249_v14 = vcombine.low %v1492_v63, %v1496_v2 }
 0x90e   :  { %v1504_v11 = vld [vmem:[#allocation2 + $0x260] sm:$0xff]  ;;  %v1505_v13 = vld [vmem:[#allocation2 + $0x268] sm:$0xff]  ;;  %v5251_v15 = vcombine.low %v1493_v3, %v1497_v4 }
 0x90f   :  { %v5258_v7 = vcombine.high %v1500_v10, %v1504_v11  ;;  %v5260_v16 = vcombine.high %v1501_v12, %v1505_v13  ;;  %v1508_v18 = vld [vmem:[#allocation2 + $0x280] sm:$0xff]  ;;  %v1509_v21 = vld [vmem:[#allocation2 + $0x288] sm:$0xff]  ;;  %v5257_v23 = vcombine.low %v1500_v10, %v1504_v11  ;;  %v5259_v24 = vcombine.low %v1501_v12, %v1505_v13 }
 0x910   :  { %4026 = vmatpush1.bf16.msra.mxu0 %v5217_v28  ;;  %4190 = vmatpush1.bf16.msra.mxu1 %v5219_v38  ;;  %v1512_v20 = vld [vmem:[#allocation2 + $0x2a0] sm:$0xff]  ;;  %v1513_v22 = vld [vmem:[#allocation2 + $0x2a8] sm:$0xff] }
 0x911   :  { %4027 = vmatprep.subr.bf16.mxu0 %v5226_v41  ;;  %4191 = vmatprep.subr.bf16.mxu1 %v5228_v42  ;;  %v5266_v25 = vcombine.high %v1508_v18, %v1512_v20  ;;  %v5268_v26 = vcombine.high %v1509_v21, %v1513_v22  ;;  %v1516_v27 = vld [vmem:[#allocation2 + $0x2c0] sm:$0xff]  ;;  %v1517_v30 = vld [vmem:[#allocation2 + $0x2c8] sm:$0xff]  ;;  %v5265_v32 = vcombine.low %v1508_v18, %v1512_v20 }
 0x912   :  { %v1520_v29 = vld [vmem:[#allocation2 + $0x2e0] sm:$0xff]  ;;  %v1521_v31 = vld [vmem:[#allocation2 + $0x2e8] sm:$0xff]  ;;  %v5267_v33 = vcombine.low %v1509_v21, %v1513_v22 }
 0x913   :  { %v5274_v34 = vcombine.high %v1516_v27, %v1520_v29  ;;  %v5276_v17 = vcombine.high %v1517_v30, %v1521_v31  ;;  %v1524_v35 = vld [vmem:[#allocation2 + $0x300] sm:$0xff]  ;;  %v1525_v37 = vld [vmem:[#allocation2 + $0x308] sm:$0xff]  ;;  %v5273_v38 = vcombine.low %v1516_v27, %v1520_v29  ;;  %v5275_v41 = vcombine.low %v1517_v30, %v1521_v31 }
 0x914   :  { %4028 = vmatpush1.bf16.msra.mxu0 %v5225_v48  ;;  %4192 = vmatpush1.bf16.msra.mxu1 %v5227_v49  ;;  %v1528_v36 = vld [vmem:[#allocation2 + $0x320] sm:$0xff]  ;;  %v1529_v28 = vld [vmem:[#allocation2 + $0x328] sm:$0xff] }
 0x915   :  { %4029 = vmatprep.subr.bf16.mxu0 %v5234_v50  ;;  %4193 = vmatprep.subr.bf16.mxu1 %v5236_v51  ;;  %v5282_v42 = vcombine.high %v1524_v35, %v1528_v36  ;;  %v5284_v43 = vcombine.high %v1525_v37, %v1529_v28  ;;  %v1532_v44 = vld [vmem:[#allocation2 + $0x340] sm:$0xff]  ;;  %v1533_v47 = vld [vmem:[#allocation2 + $0x348] sm:$0xff]  ;;  %v5281_v49 = vcombine.low %v1524_v35, %v1528_v36 }
 0x916   :  { %v1536_v45 = vld [vmem:[#allocation2 + $0x360] sm:$0xff]  ;;  %v1537_v48 = vld [vmem:[#allocation2 + $0x368] sm:$0xff]  ;;  %v5283_v50 = vcombine.low %v1525_v37, %v1529_v28 }
 0x917   :  { %v5290_v51 = vcombine.high %v1532_v44, %v1536_v45  ;;  %v5292_v1 = vcombine.high %v1533_v47, %v1537_v48  ;;  %v1540_v56 = vld [vmem:[#allocation2 + $0x380] sm:$0xff]  ;;  %v1541_v58 = vld [vmem:[#allocation2 + $0x388] sm:$0xff] }
 0x918   :  { %4030 = vmatpush1.bf16.msra.mxu0 %v5233_v60  ;;  %4194 = vmatpush1.bf16.msra.mxu1 %v5235_v59  ;;  %v1544_v57 = vld [vmem:[#allocation2 + $0x3a0] sm:$0xff]  ;;  %v1545_v60 = vld [vmem:[#allocation2 + $0x3a8] sm:$0xff]  ;;  %v5289_v59 = vcombine.low %v1532_v44, %v1536_v45 }
 0x919   :  { %4031 = vmatprep.subr.bf16.mxu0 %v5242_v61  ;;  %4195 = vmatprep.subr.bf16.mxu1 %v5244_v62  ;;  %v5291_v61 = vcombine.low %v1533_v47, %v1537_v48  ;;  %v5298_v62 = vcombine.high %v1540_v56, %v1544_v57  ;;  %v5300_v63 = vcombine.high %v1541_v58, %v1545_v60  ;;  %v1548_v2 = vld [vmem:[#allocation2 + $0x3c0] sm:$0xff]  ;;  %v1549_v4 = vld [vmem:[#allocation2 + $0x3c8] sm:$0xff] }
 0x91a   :  { %v1552_v3 = vld [vmem:[#allocation2 + $0x3e0] sm:$0xff]  ;;  %v1557_v13 = vld [vmem:[#allocation2 + $0x408] sm:$0xff] }
 0x91b   :  { %v1556_v11 = vld [vmem:[#allocation2 + $0x400] sm:$0xff]  ;;  %v1565_v22 = vld [vmem:[#allocation2 + $0x448] sm:$0xff] }
 0x91c   :  { %4032 = vmatpush1.bf16.msra.mxu0 %v5241_v5  ;;  %4196 = vmatpush1.bf16.msra.mxu1 %v5243_v6  ;;  %v1553_v5 = vld [vmem:[#allocation2 + $0x3e8] sm:$0xff]  ;;  %v5297_v6 = vcombine.low %v1540_v56, %v1544_v57  ;;  %v1560_v12 = vld [vmem:[#allocation2 + $0x420] sm:$0xff] }
 0x91d   :  { %4033 = vmatprep.subr.bf16.mxu0 %v5250_v8  ;;  %4197 = vmatprep.subr.bf16.mxu1 %v5252_v9  ;;  %v5299_v8 = vcombine.low %v1541_v58, %v1545_v60  ;;  %v5306_v9 = vcombine.high %v1548_v2, %v1552_v3  ;;  %v5308_v10 = vcombine.high %v1549_v4, %v1553_v5  ;;  %v1564_v20 = vld [vmem:[#allocation2 + $0x440] sm:$0xff]  ;;  %v1573_v31 = vld [vmem:[#allocation2 + $0x488] sm:$0xff] }
 0x91e   :  { %v1568_v21 = vld [vmem:[#allocation2 + $0x460] sm:$0xff]  ;;  %v1581_v28 = vld [vmem:[#allocation2 + $0x4c8] sm:$0xff] }
 0x91f   :  { %v1572_v29 = vld [vmem:[#allocation2 + $0x480] sm:$0xff]  ;;  %v1589_v48 = vld [vmem:[#allocation2 + $0x508] sm:$0xff] }
 0x920   :  { %4034 = vmatpush1.bf16.msra.mxu0 %v5249_v14  ;;  %4198 = vmatpush1.bf16.msra.mxu1 %v5251_v15  ;;  %v1561_v14 = vld [vmem:[#allocation2 + $0x428] sm:$0xff]  ;;  %v5305_v15 = vcombine.low %v1548_v2, %v1552_v3  ;;  %v1576_v30 = vld [vmem:[#allocation2 + $0x4a0] sm:$0xff] }
 0x921   :  { %4035 = vmatprep.subr.bf16.mxu0 %v5258_v7  ;;  %4199 = vmatprep.subr.bf16.mxu1 %v5260_v16  ;;  %v5307_v7 = vcombine.low %v1549_v4, %v1553_v5  ;;  %v5314_v16 = vcombine.high %v1556_v11, %v1560_v12  ;;  %v5316_v18 = vcombine.high %v1557_v13, %v1561_v14  ;;  %v1580_v36 = vld [vmem:[#allocation2 + $0x4c0] sm:$0xff]  ;;  %v1597_v60 = vld [vmem:[#allocation2 + $0x548] sm:$0xff] }
 0x922   :  { %v1584_v37 = vld [vmem:[#allocation2 + $0x4e0] sm:$0xff]  ;;  %v1605_v5 = vld [vmem:[#allocation2 + $0x588] sm:$0xff] }
 0x923   :  { %v1588_v45 = vld [vmem:[#allocation2 + $0x500] sm:$0xff] }
 0x924   :  { %4036 = vmatpush1.bf16.msra.mxu0 %v5257_v23  ;;  %4200 = vmatpush1.bf16.msra.mxu1 %v5259_v24  ;;  %v1569_v23 = vld [vmem:[#allocation2 + $0x468] sm:$0xff]  ;;  %v5313_v24 = vcombine.low %v1556_v11, %v1560_v12  ;;  %v1592_v47 = vld [vmem:[#allocation2 + $0x520] sm:$0xff] }
 0x925   :  { %4037 = vmatprep.subr.bf16.mxu0 %v5266_v25  ;;  %4201 = vmatprep.subr.bf16.mxu1 %v5268_v26  ;;  %v5315_v25 = vcombine.low %v1557_v13, %v1561_v14  ;;  %v5322_v26 = vcombine.high %v1564_v20, %v1568_v21  ;;  %v5324_v27 = vcombine.high %v1565_v22, %v1569_v23  ;;  %v1596_v57 = vld [vmem:[#allocation2 + $0x540] sm:$0xff]  ;;  %v1613_v14 = vld [vmem:[#allocation2 + $0x5c8] sm:$0xff] }
 0x926   :  { %v1600_v58 = vld [vmem:[#allocation2 + $0x560] sm:$0xff] }
 0x927   :  { %v1604_v3 = vld [vmem:[#allocation2 + $0x580] sm:$0xff] }
 0x928   :  { %4038 = vmatpush1.bf16.msra.mxu0 %v5265_v32  ;;  %4202 = vmatpush1.bf16.msra.mxu1 %v5267_v33  ;;  %v1577_v32 = vld [vmem:[#allocation2 + $0x4a8] sm:$0xff]  ;;  %v5321_v33 = vcombine.low %v1564_v20, %v1568_v21  ;;  %v1608_v4 = vld [vmem:[#allocation2 + $0x5a0] sm:$0xff] }
 0x929   :  { %4039 = vmatprep.subr.bf16.mxu0 %v5274_v34  ;;  %4203 = vmatprep.subr.bf16.mxu1 %v5276_v17  ;;  %v5323_v34 = vcombine.low %v1565_v22, %v1569_v23  ;;  %v5330_v17 = vcombine.high %v1572_v29, %v1576_v30  ;;  %v5332_v35 = vcombine.high %v1573_v31, %v1577_v32  ;;  %v1612_v12 = vld [vmem:[#allocation2 + $0x5c0] sm:$0xff]  ;;  %v1621_v23 = vld [vmem:[#allocation2 + $0x608] sm:$0xff] }
 0x92a   :  { %v1616_v13 = vld [vmem:[#allocation2 + $0x5e0] sm:$0xff] }
 0x92b   :  { %v1620_v21 = vld [vmem:[#allocation2 + $0x600] sm:$0xff] }
 0x92c   :  { %4040 = vmatpush1.bf16.msra.mxu0 %v5273_v38  ;;  %4204 = vmatpush1.bf16.msra.mxu1 %v5275_v41  ;;  %v1585_v38 = vld [vmem:[#allocation2 + $0x4e8] sm:$0xff]  ;;  %v5329_v41 = vcombine.low %v1572_v29, %v1576_v30  ;;  %v1624_v22 = vld [vmem:[#allocation2 + $0x620] sm:$0xff] }
 0x92d   :  { %4041 = vmatprep.subr.bf16.mxu0 %v5282_v42  ;;  %4205 = vmatprep.subr.bf16.mxu1 %v5284_v43  ;;  %v5331_v42 = vcombine.low %v1573_v31, %v1577_v32  ;;  %v5338_v43 = vcombine.high %v1580_v36, %v1584_v37  ;;  %v5340_v44 = vcombine.high %v1581_v28, %v1585_v38  ;;  %v1628_v30 = vld [vmem:[#allocation2 + $0x640] sm:$0xff]  ;;  %v1629_v32 = vld [vmem:[#allocation2 + $0x648] sm:$0xff] }
 0x92e   :  { %v1632_v31 = vld [vmem:[#allocation2 + $0x660] sm:$0xff] }
 0x930   :  { %4042 = vmatpush1.bf16.msra.mxu0 %v5281_v49  ;;  %4206 = vmatpush1.bf16.msra.mxu1 %v5283_v50  ;;  %v1593_v49 = vld [vmem:[#allocation2 + $0x528] sm:$0xff]  ;;  %v5337_v50 = vcombine.low %v1580_v36, %v1584_v37  ;;  %v1636_v37 = vld [vmem:[#allocation2 + $0x680] sm:$0xff] }
 0x931   :  { %4043 = vmatprep.subr.bf16.mxu0 %v5290_v51  ;;  %4207 = vmatprep.subr.bf16.mxu1 %v5292_v1  ;;  %v5339_v51 = vcombine.low %v1581_v28, %v1585_v38  ;;  %v5346_v1 = vcombine.high %v1588_v45, %v1592_v47  ;;  %v5348_v56 = vcombine.high %v1589_v48, %v1593_v49  ;;  %v1640_v28 = vld [vmem:[#allocation2 + $0x6a0] sm:$0xff]  ;;  %v1637_v38 = vld [vmem:[#allocation2 + $0x688] sm:$0xff] }
 0x934   :  { %4044 = vmatpush1.bf16.msra.mxu0 %v5289_v59  ;;  %4208 = vmatpush1.bf16.msra.mxu1 %v5291_v61  ;;  %v1601_v59 = vld [vmem:[#allocation2 + $0x568] sm:$0xff]  ;;  %v5345_v61 = vcombine.low %v1588_v45, %v1592_v47  ;;  %v1644_v47 = vld [vmem:[#allocation2 + $0x6c0] sm:$0xff] }
 0x935   :  { %4045 = vmatprep.subr.bf16.mxu0 %v5298_v62  ;;  %4209 = vmatprep.subr.bf16.mxu1 %v5300_v63  ;;  %v5347_v62 = vcombine.low %v1589_v48, %v1593_v49  ;;  %v5354_v63 = vcombine.high %v1596_v57, %v1600_v58  ;;  %v5356_v2 = vcombine.high %v1597_v60, %v1601_v59  ;;  %v1648_v48 = vld [vmem:[#allocation2 + $0x6e0] sm:$0xff]  ;;  %v1645_v49 = vld [vmem:[#allocation2 + $0x6c8] sm:$0xff] }
 0x938   :  { %4046 = vmatpush1.bf16.msra.mxu0 %v5297_v6  ;;  %4210 = vmatpush1.bf16.msra.mxu1 %v5299_v8  ;;  %v1609_v6 = vld [vmem:[#allocation2 + $0x5a8] sm:$0xff]  ;;  %v5353_v8 = vcombine.low %v1596_v57, %v1600_v58  ;;  %v1652_v58 = vld [vmem:[#allocation2 + $0x700] sm:$0xff] }
 0x939   :  { %4047 = vmatprep.subr.bf16.mxu0 %v5306_v9  ;;  %4211 = vmatprep.subr.bf16.mxu1 %v5308_v10  ;;  %v5355_v9 = vcombine.low %v1597_v60, %v1601_v59  ;;  %v5362_v10 = vcombine.high %v1604_v3, %v1608_v4  ;;  %v5364_v11 = vcombine.high %v1605_v5, %v1609_v6  ;;  %v1656_v60 = vld [vmem:[#allocation2 + $0x720] sm:$0xff]  ;;  %v1653_v59 = vld [vmem:[#allocation2 + $0x708] sm:$0xff] }
 0x93c   :  { %4048 = vmatpush1.bf16.msra.mxu0 %v5305_v15  ;;  %4212 = vmatpush1.bf16.msra.mxu1 %v5307_v7  ;;  %v1617_v15 = vld [vmem:[#allocation2 + $0x5e8] sm:$0xff]  ;;  %v5361_v7 = vcombine.low %v1604_v3, %v1608_v4  ;;  %v1660_v4 = vld [vmem:[#allocation2 + $0x740] sm:$0xff] }
 0x93d   :  { %4058 = vmatprep.subr.bf16.mxu0 %v5314_v16  ;;  %4222 = vmatprep.subr.bf16.mxu1 %v5316_v18  ;;  %v5363_v16 = vcombine.low %v1605_v5, %v1609_v6  ;;  %v5370_v18 = vcombine.high %v1612_v12, %v1616_v13  ;;  %v5372_v20 = vcombine.high %v1613_v14, %v1617_v15  ;;  %v1664_v5 = vld [vmem:[#allocation2 + $0x760] sm:$0xff]  ;;  %v1661_v6 = vld [vmem:[#allocation2 + $0x748] sm:$0xff] }
 0x93f   :  { %4050 = vmatmul.mubr.bf16.vlgmr.msra.gmra.mrb[28].mxu0 %v6958_v46  ;;  %4214 = vmatmul.mubr.bf16.vlgmr.msra.gmra.mrb[44].mxu1 %v6958_v46 }
 0x940   :  { %4059 = vmatpush1.bf16.msra.mxu0 %v5313_v24  ;;  %4223 = vmatpush1.bf16.msra.mxu1 %v5315_v25  ;;  %v1625_v24 = vld [vmem:[#allocation2 + $0x628] sm:$0xff]  ;;  %v5369_v25 = vcombine.low %v1612_v12, %v1616_v13  ;;  %v1668_v13 = vld [vmem:[#allocation2 + $0x780] sm:$0xff] }
 0x941   :  { %4060 = vmatprep.subr.bf16.mxu0 %v5322_v26  ;;  %4224 = vmatprep.subr.bf16.mxu1 %v5324_v27  ;;  %v5371_v26 = vcombine.low %v1613_v14, %v1617_v15  ;;  %v5378_v27 = vcombine.high %v1620_v21, %v1624_v22  ;;  %v5380_v29 = vcombine.high %v1621_v23, %v1625_v24  ;;  %v1672_v14 = vld [vmem:[#allocation2 + $0x7a0] sm:$0xff]  ;;  %v1669_v15 = vld [vmem:[#allocation2 + $0x788] sm:$0xff] }
 0x942   :  { %4090 = vmatprep.mubr.bf16.mxu0 %v6990_v54  ;;  %4254 = vmatprep.mubr.bf16.mxu1 %v6990_v54 }
 0x944   :  { %4061 = vmatpush1.bf16.msra.mxu0 %v5321_v33  ;;  %4225 = vmatpush1.bf16.msra.mxu1 %v5323_v34  ;;  %v1633_v33 = vld [vmem:[#allocation2 + $0x668] sm:$0xff]  ;;  %v5377_v34 = vcombine.low %v1620_v21, %v1624_v22  ;;  %v1676_v22 = vld [vmem:[#allocation2 + $0x7c0] sm:$0xff] }
 0x945   :  { %4062 = vmatprep.subr.bf16.mxu0 %v5330_v17  ;;  %4226 = vmatprep.subr.bf16.mxu1 %v5332_v35  ;;  %v5379_v17 = vcombine.low %v1621_v23, %v1625_v24  ;;  %v5386_v35 = vcombine.high %v1628_v30, %v1632_v31  ;;  %v5388_v36 = vcombine.high %v1629_v32, %v1633_v33  ;;  %v1680_v23 = vld [vmem:[#allocation2 + $0x7e0] sm:$0xff]  ;;  %v1677_v24 = vld [vmem:[#allocation2 + $0x7c8] sm:$0xff] }
 0x948   :  { %4063 = vmatpush1.bf16.msra.mxu0 %v5329_v41  ;;  %4227 = vmatpush1.bf16.msra.mxu1 %v5331_v42  ;;  %v1641_v41 = vld [vmem:[#allocation2 + $0x6a8] sm:$0xff]  ;;  %v5385_v42 = vcombine.low %v1628_v30, %v1632_v31  ;;  %v1684_v31 = vld [vmem:[#allocation2 + $0x800] sm:$0xff] }
 0x949   :  { %4064 = vmatprep.subr.bf16.mxu0 %v5338_v43  ;;  %4228 = vmatprep.subr.bf16.mxu1 %v5340_v44  ;;  %v5387_v43 = vcombine.low %v1629_v32, %v1633_v33  ;;  %v5394_v44 = vcombine.high %v1636_v37, %v1640_v28  ;;  %v5396_v45 = vcombine.high %v1637_v38, %v1641_v41  ;;  %v1688_v32 = vld [vmem:[#allocation2 + $0x820] sm:$0xff]  ;;  %v1685_v33 = vld [vmem:[#allocation2 + $0x808] sm:$0xff] }
 0x94c   :  { %4065 = vmatpush1.bf16.msra.mxu0 %v5337_v50  ;;  %4229 = vmatpush1.bf16.msra.mxu1 %v5339_v51  ;;  %v1649_v50 = vld [vmem:[#allocation2 + $0x6e8] sm:$0xff]  ;;  %v5393_v51 = vcombine.low %v1636_v37, %v1640_v28  ;;  %v1692_v28 = vld [vmem:[#allocation2 + $0x840] sm:$0xff] }
 0x94d   :  { %4066 = vmatprep.subr.bf16.mxu0 %v5346_v1  ;;  %4230 = vmatprep.subr.bf16.mxu1 %v5348_v56  ;;  %v5395_v1 = vcombine.low %v1637_v38, %v1641_v41  ;;  %v5402_v56 = vcombine.high %v1644_v47, %v1648_v48  ;;  %v5404_v57 = vcombine.high %v1645_v49, %v1649_v50  ;;  %v1696_v38 = vld [vmem:[#allocation2 + $0x860] sm:$0xff]  ;;  %v1693_v41 = vld [vmem:[#allocation2 + $0x848] sm:$0xff] }
 0x950   :  { %4067 = vmatpush1.bf16.msra.mxu0 %v5345_v61  ;;  %4231 = vmatpush1.bf16.msra.mxu1 %v5347_v62  ;;  %v1657_v61 = vld [vmem:[#allocation2 + $0x728] sm:$0xff]  ;;  %v5401_v62 = vcombine.low %v1644_v47, %v1648_v48  ;;  %v1700_v48 = vld [vmem:[#allocation2 + $0x880] sm:$0xff] }
 0x951   :  { %4068 = vmatprep.subr.bf16.mxu0 %v5354_v63  ;;  %4232 = vmatprep.subr.bf16.mxu1 %v5356_v2  ;;  %v5403_v63 = vcombine.low %v1645_v49, %v1649_v50  ;;  %v5410_v2 = vcombine.high %v1652_v58, %v1656_v60  ;;  %v5412_v3 = vcombine.high %v1653_v59, %v1657_v61  ;;  %v1704_v49 = vld [vmem:[#allocation2 + $0x8a0] sm:$0xff]  ;;  %v1701_v50 = vld [vmem:[#allocation2 + $0x888] sm:$0xff] }
 0x954   :  { %4069 = vmatpush1.bf16.msra.mxu0 %v5353_v8  ;;  %4233 = vmatpush1.bf16.msra.mxu1 %v5355_v9  ;;  %v1665_v8 = vld [vmem:[#allocation2 + $0x768] sm:$0xff]  ;;  %v5409_v9 = vcombine.low %v1652_v58, %v1656_v60  ;;  %v1708_v60 = vld [vmem:[#allocation2 + $0x8c0] sm:$0xff] }
 0x955   :  { %4070 = vmatprep.subr.bf16.mxu0 %v5362_v10  ;;  %4234 = vmatprep.subr.bf16.mxu1 %v5364_v11  ;;  %v5411_v10 = vcombine.low %v1653_v59, %v1657_v61  ;;  %v5418_v11 = vcombine.high %v1660_v4, %v1664_v5  ;;  %v5420_v12 = vcombine.high %v1661_v6, %v1665_v8  ;;  %v1712_v59 = vld [vmem:[#allocation2 + $0x8e0] sm:$0xff]  ;;  %v1709_v61 = vld [vmem:[#allocation2 + $0x8c8] sm:$0xff] }
 0x958   :  { %4071 = vmatpush1.bf16.msra.mxu0 %v5361_v7  ;;  %4235 = vmatpush1.bf16.msra.mxu1 %v5363_v16  ;;  %v1673_v7 = vld [vmem:[#allocation2 + $0x7a8] sm:$0xff]  ;;  %v5417_v16 = vcombine.low %v1660_v4, %v1664_v5  ;;  %v1716_v5 = vld [vmem:[#allocation2 + $0x900] sm:$0xff] }
 0x959   :  { %4072 = vmatprep.subr.bf16.mxu0 %v5370_v18  ;;  %4236 = vmatprep.subr.bf16.mxu1 %v5372_v20  ;;  %v5419_v18 = vcombine.low %v1661_v6, %v1665_v8  ;;  %v5426_v20 = vcombine.high %v1668_v13, %v1672_v14  ;;  %v5428_v21 = vcombine.high %v1669_v15, %v1673_v7  ;;  %v1720_v6 = vld [vmem:[#allocation2 + $0x920] sm:$0xff]  ;;  %v1717_v8 = vld [vmem:[#allocation2 + $0x908] sm:$0xff] }
 0x95c   :  { %4073 = vmatpush1.bf16.msra.mxu0 %v5369_v25  ;;  %4237 = vmatpush1.bf16.msra.mxu1 %v5371_v26  ;;  %v1681_v25 = vld [vmem:[#allocation2 + $0x7e8] sm:$0xff]  ;;  %v5425_v26 = vcombine.low %v1668_v13, %v1672_v14  ;;  %v1724_v14 = vld [vmem:[#allocation2 + $0x940] sm:$0xff] }
 0x95d   :  { %4074 = vmatprep.subr.bf16.mxu0 %v5378_v27  ;;  %4238 = vmatprep.subr.bf16.mxu1 %v5380_v29  ;;  %v5427_v27 = vcombine.low %v1669_v15, %v1673_v7  ;;  %v5434_v29 = vcombine.high %v1676_v22, %v1680_v23  ;;  %v5436_v30 = vcombine.high %v1677_v24, %v1681_v25  ;;  %v1728_v15 = vld [vmem:[#allocation2 + $0x960] sm:$0xff]  ;;  %v1725_v7 = vld [vmem:[#allocation2 + $0x948] sm:$0xff] }
 0x960   :  { %4075 = vmatpush1.bf16.msra.mxu0 %v5377_v34  ;;  %4239 = vmatpush1.bf16.msra.mxu1 %v5379_v17  ;;  %v1689_v34 = vld [vmem:[#allocation2 + $0x828] sm:$0xff]  ;;  %v5433_v17 = vcombine.low %v1676_v22, %v1680_v23  ;;  %v1732_v23 = vld [vmem:[#allocation2 + $0x980] sm:$0xff] }
 0x961   :  { %4076 = vmatprep.subr.bf16.mxu0 %v5386_v35  ;;  %4240 = vmatprep.subr.bf16.mxu1 %v5388_v36  ;;  %v5435_v35 = vcombine.low %v1677_v24, %v1681_v25  ;;  %v5442_v36 = vcombine.high %v1684_v31, %v1688_v32  ;;  %v5444_v37 = vcombine.high %v1685_v33, %v1689_v34  ;;  %v1736_v24 = vld [vmem:[#allocation2 + $0x9a0] sm:$0xff]  ;;  %v1733_v25 = vld [vmem:[#allocation2 + $0x988] sm:$0xff] }
 0x964   :  { %4077 = vmatpush1.bf16.msra.mxu0 %v5385_v42  ;;  %4241 = vmatpush1.bf16.msra.mxu1 %v5387_v43  ;;  %v1697_v42 = vld [vmem:[#allocation2 + $0x868] sm:$0xff]  ;;  %v5441_v43 = vcombine.low %v1684_v31, %v1688_v32  ;;  %v1740_v32 = vld [vmem:[#allocation2 + $0x9c0] sm:$0xff] }
 0x965   :  { %4078 = vmatprep.subr.bf16.mxu0 %v5394_v44  ;;  %4242 = vmatprep.subr.bf16.mxu1 %v5396_v45  ;;  %v5443_v44 = vcombine.low %v1685_v33, %v1689_v34  ;;  %v5450_v45 = vcombine.high %v1692_v28, %v1696_v38  ;;  %v5452_v47 = vcombine.high %v1693_v41, %v1697_v42  ;;  %v1744_v33 = vld [vmem:[#allocation2 + $0x9e0] sm:$0xff]  ;;  %v1741_v34 = vld [vmem:[#allocation2 + $0x9c8] sm:$0xff] }
 0x968   :  { %4079 = vmatpush1.bf16.msra.mxu0 %v5393_v51  ;;  %4243 = vmatpush1.bf16.msra.mxu1 %v5395_v1  ;;  %v1705_v51 = vld [vmem:[#allocation2 + $0x8a8] sm:$0xff]  ;;  %v5449_v1 = vcombine.low %v1692_v28, %v1696_v38  ;;  %v1748_v38 = vld [vmem:[#allocation2 + $0xa00] sm:$0xff] }
 0x969   :  { %4080 = vmatprep.subr.bf16.mxu0 %v5402_v56  ;;  %4244 = vmatprep.subr.bf16.mxu1 %v5404_v57  ;;  %v5451_v56 = vcombine.low %v1693_v41, %v1697_v42  ;;  %v5458_v57 = vcombine.high %v1700_v48, %v1704_v49  ;;  %v5460_v58 = vcombine.high %v1701_v50, %v1705_v51  ;;  %v1752_v41 = vld [vmem:[#allocation2 + $0xa20] sm:$0xff]  ;;  %v1749_v42 = vld [vmem:[#allocation2 + $0xa08] sm:$0xff] }
 0x96c   :  { %4081 = vmatpush1.bf16.msra.mxu0 %v5401_v62  ;;  %4245 = vmatpush1.bf16.msra.mxu1 %v5403_v63  ;;  %v1713_v62 = vld [vmem:[#allocation2 + $0x8e8] sm:$0xff]  ;;  %v5457_v63 = vcombine.low %v1700_v48, %v1704_v49  ;;  %v1756_v49 = vld [vmem:[#allocation2 + $0xa40] sm:$0xff] }
 0x96d   :  { %4082 = vmatprep.subr.bf16.mxu0 %v5410_v2  ;;  %4246 = vmatprep.subr.bf16.mxu1 %v5412_v3  ;;  %v5459_v2 = vcombine.low %v1701_v50, %v1705_v51  ;;  %v5466_v3 = vcombine.high %v1708_v60, %v1712_v59  ;;  %v5468_v4 = vcombine.high %v1709_v61, %v1713_v62  ;;  %v1760_v50 = vld [vmem:[#allocation2 + $0xa60] sm:$0xff]  ;;  %v1757_v51 = vld [vmem:[#allocation2 + $0xa48] sm:$0xff] }
 0x970   :  { %4083 = vmatpush1.bf16.msra.mxu0 %v5409_v9  ;;  %4247 = vmatpush1.bf16.msra.mxu1 %v5411_v10  ;;  %v1721_v9 = vld [vmem:[#allocation2 + $0x928] sm:$0xff]  ;;  %v5465_v10 = vcombine.low %v1708_v60, %v1712_v59  ;;  %v1764_v59 = vld [vmem:[#allocation2 + $0xa80] sm:$0xff] }
 0x971   :  { %4084 = vmatprep.subr.bf16.mxu0 %v5418_v11  ;;  %4248 = vmatprep.subr.bf16.mxu1 %v5420_v12  ;;  %v5467_v11 = vcombine.low %v1709_v61, %v1713_v62  ;;  %v5474_v12 = vcombine.high %v1716_v5, %v1720_v6  ;;  %v5476_v13 = vcombine.high %v1717_v8, %v1721_v9  ;;  %v1768_v61 = vld [vmem:[#allocation2 + $0xaa0] sm:$0xff]  ;;  %v1765_v62 = vld [vmem:[#allocation2 + $0xa88] sm:$0xff] }
 0x974   :  { %4085 = vmatpush1.bf16.msra.mxu0 %v5417_v16  ;;  %4249 = vmatpush1.bf16.msra.mxu1 %v5419_v18  ;;  %v1729_v16 = vld [vmem:[#allocation2 + $0x968] sm:$0xff]  ;;  %v5473_v18 = vcombine.low %v1716_v5, %v1720_v6  ;;  %v1772_v6 = vld [vmem:[#allocation2 + $0xac0] sm:$0xff] }
 0x975   :  { %4086 = vmatprep.subr.bf16.mxu0 %v5426_v20  ;;  %4250 = vmatprep.subr.bf16.mxu1 %v5428_v21  ;;  %v5475_v20 = vcombine.low %v1717_v8, %v1721_v9  ;;  %v5482_v21 = vcombine.high %v1724_v14, %v1728_v15  ;;  %v5484_v22 = vcombine.high %v1725_v7, %v1729_v16  ;;  %v1776_v8 = vld [vmem:[#allocation2 + $0xae0] sm:$0xff]  ;;  %v1773_v9 = vld [vmem:[#allocation2 + $0xac8] sm:$0xff] }
 0x978   :  { %4087 = vmatpush1.bf16.msra.mxu0 %v5425_v26  ;;  %4251 = vmatpush1.bf16.msra.mxu1 %v5427_v27  ;;  %v1737_v26 = vld [vmem:[#allocation2 + $0x9a8] sm:$0xff]  ;;  %v5481_v27 = vcombine.low %v1724_v14, %v1728_v15  ;;  %v1780_v15 = vld [vmem:[#allocation2 + $0xb00] sm:$0xff] }
 0x979   :  { %4088 = vmatprep.subr.bf16.mxu0 %v5434_v29  ;;  %4252 = vmatprep.subr.bf16.mxu1 %v5436_v30  ;;  %v5483_v29 = vcombine.low %v1725_v7, %v1729_v16  ;;  %v5490_v30 = vcombine.high %v1732_v23, %v1736_v24  ;;  %v5492_v31 = vcombine.high %v1733_v25, %v1737_v26  ;;  %v1784_v7 = vld [vmem:[#allocation2 + $0xb20] sm:$0xff]  ;;  %v1781_v16 = vld [vmem:[#allocation2 + $0xb08] sm:$0xff] }
 0x97c   :  { %4089 = vmatpush1.bf16.msra.mxu0 %v5433_v17  ;;  %4253 = vmatpush1.bf16.msra.mxu1 %v5435_v35  ;;  %v1745_v17 = vld [vmem:[#allocation2 + $0x9e8] sm:$0xff]  ;;  %v5489_v35 = vcombine.low %v1732_v23, %v1736_v24  ;;  %v1788_v24 = vld [vmem:[#allocation2 + $0xb40] sm:$0xff] }
 0x97d   :  { %4099 = vmatprep.subr.bf16.mxu0 %v5442_v36  ;;  %4263 = vmatprep.subr.bf16.mxu1 %v5444_v37  ;;  %v5491_v36 = vcombine.low %v1733_v25, %v1737_v26  ;;  %v5498_v37 = vcombine.high %v1740_v32, %v1744_v33  ;;  %v5500_v28 = vcombine.high %v1741_v34, %v1745_v17  ;;  %v1792_v25 = vld [vmem:[#allocation2 + $0xb60] sm:$0xff]  ;;  %v1789_v26 = vld [vmem:[#allocation2 + $0xb48] sm:$0xff] }
 0x97f   :  { %4091 = vmatmul.mubr.bf16.vlgmr.msra.gmra.mrb[28].mxu0 %v6977_v40  ;;  %4255 = vmatmul.mubr.bf16.vlgmr.msra.gmra.mrb[44].mxu1 %v6977_v40 }
 0x980   :  { %4100 = vmatpush1.bf16.msra.mxu0 %v5441_v43  ;;  %4264 = vmatpush1.bf16.msra.mxu1 %v5443_v44  ;;  %v1753_v43 = vld [vmem:[#allocation2 + $0xa28] sm:$0xff]  ;;  %v5497_v44 = vcombine.low %v1740_v32, %v1744_v33  ;;  %v1796_v33 = vld [vmem:[#allocation2 + $0xb80] sm:$0xff] }
 0x981   :  { %4101 = vmatprep.subr.bf16.mxu0 %v5450_v45  ;;  %4265 = vmatprep.subr.bf16.mxu1 %v5452_v47  ;;  %v5499_v45 = vcombine.low %v1741_v34, %v1745_v17  ;;  %v5506_v47 = vcombine.high %v1748_v38, %v1752_v41  ;;  %v5508_v48 = vcombine.high %v1749_v42, %v1753_v43  ;;  %v1800_v34 = vld [vmem:[#allocation2 + $0xba0] sm:$0xff]  ;;  %v1797_v17 = vld [vmem:[#allocation2 + $0xb88] sm:$0xff] }
 0x982   :  { %4131 = vmatprep.mubr.bf16.mxu0 %v6998_v53  ;;  %4295 = vmatprep.mubr.bf16.mxu1 %v6998_v53 }
 0x984   :  { %4102 = vmatpush1.bf16.msra.mxu0 %v5449_v1  ;;  %4266 = vmatpush1.bf16.msra.mxu1 %v5451_v56  ;;  %v1761_v1 = vld [vmem:[#allocation2 + $0xa68] sm:$0xff]  ;;  %v5505_v56 = vcombine.low %v1748_v38, %v1752_v41  ;;  %v1804_v41 = vld [vmem:[#allocation2 + $0xbc0] sm:$0xff] }
 0x985   :  { %4103 = vmatprep.subr.bf16.mxu0 %v5458_v57  ;;  %4267 = vmatprep.subr.bf16.mxu1 %v5460_v58  ;;  %v5507_v57 = vcombine.low %v1749_v42, %v1753_v43  ;;  %v5514_v58 = vcombine.high %v1756_v49, %v1760_v50  ;;  %v5516_v60 = vcombine.high %v1757_v51, %v1761_v1  ;;  %v1808_v42 = vld [vmem:[#allocation2 + $0xbe0] sm:$0xff]  ;;  %v1805_v43 = vld [vmem:[#allocation2 + $0xbc8] sm:$0xff] }
 0x988   :  { %4104 = vmatpush1.bf16.msra.mxu0 %v5457_v63  ;;  %4268 = vmatpush1.bf16.msra.mxu1 %v5459_v2  ;;  %v1769_v63 = vld [vmem:[#allocation2 + $0xaa8] sm:$0xff]  ;;  %v5513_v2 = vcombine.low %v1756_v49, %v1760_v50  ;;  %v1812_v50 = vld [vmem:[#allocation2 + $0xc00] sm:$0xff] }
 0x989   :  { %4105 = vmatprep.subr.bf16.mxu0 %v5466_v3  ;;  %4269 = vmatprep.subr.bf16.mxu1 %v5468_v4  ;;  %v5515_v3 = vcombine.low %v1757_v51, %v1761_v1  ;;  %v5522_v4 = vcombine.high %v1764_v59, %v1768_v61  ;;  %v5524_v5 = vcombine.high %v1765_v62, %v1769_v63  ;;  %v1816_v51 = vld [vmem:[#allocation2 + $0xc20] sm:$0xff]  ;;  %v1813_v1 = vld [vmem:[#allocation2 + $0xc08] sm:$0xff] }
 0x98c   :  { %4106 = vmatpush1.bf16.msra.mxu0 %v5465_v10  ;;  %4270 = vmatpush1.bf16.msra.mxu1 %v5467_v11  ;;  %v1777_v10 = vld [vmem:[#allocation2 + $0xae8] sm:$0xff]  ;;  %v5521_v11 = vcombine.low %v1764_v59, %v1768_v61  ;;  %v1820_v61 = vld [vmem:[#allocation2 + $0xc40] sm:$0xff] }
 0x98d   :  { %4107 = vmatprep.subr.bf16.mxu0 %v5474_v12  ;;  %4271 = vmatprep.subr.bf16.mxu1 %v5476_v13  ;;  %v5523_v12 = vcombine.low %v1765_v62, %v1769_v63  ;;  %v5530_v13 = vcombine.high %v1772_v6, %v1776_v8  ;;  %v5532_v14 = vcombine.high %v1773_v9, %v1777_v10  ;;  %v1824_v62 = vld [vmem:[#allocation2 + $0xc60] sm:$0xff]  ;;  %v1821_v63 = vld [vmem:[#allocation2 + $0xc48] sm:$0xff] }
 0x990   :  { %4108 = vmatpush1.bf16.msra.mxu0 %v5473_v18  ;;  %4272 = vmatpush1.bf16.msra.mxu1 %v5475_v20  ;;  %v1785_v18 = vld [vmem:[#allocation2 + $0xb28] sm:$0xff]  ;;  %v5529_v20 = vcombine.low %v1772_v6, %v1776_v8  ;;  %v1828_v8 = vld [vmem:[#allocation2 + $0xc80] sm:$0xff] }
 0x991   :  { %4109 = vmatprep.subr.bf16.mxu0 %v5482_v21  ;;  %4273 = vmatprep.subr.bf16.mxu1 %v5484_v22  ;;  %v5531_v21 = vcombine.low %v1773_v9, %v1777_v10  ;;  %v5538_v22 = vcombine.high %v1780_v15, %v1784_v7  ;;  %v5540_v23 = vcombine.high %v1781_v16, %v1785_v18  ;;  %v1832_v9 = vld [vmem:[#allocation2 + $0xca0] sm:$0xff]  ;;  %v1829_v10 = vld [vmem:[#allocation2 + $0xc88] sm:$0xff] }
 0x994   :  { %4110 = vmatpush1.bf16.msra.mxu0 %v5481_v27  ;;  %4274 = vmatpush1.bf16.msra.mxu1 %v5483_v29  ;;  %v1793_v27 = vld [vmem:[#allocation2 + $0xb68] sm:$0xff]  ;;  %v5537_v29 = vcombine.low %v1780_v15, %v1784_v7  ;;  %v1836_v7 = vld [vmem:[#allocation2 + $0xcc0] sm:$0xff] }
 0x995   :  { %4111 = vmatprep.subr.bf16.mxu0 %v5490_v30  ;;  %4275 = vmatprep.subr.bf16.mxu1 %v5492_v31  ;;  %v5539_v30 = vcombine.low %v1781_v16, %v1785_v18  ;;  %v5546_v31 = vcombine.high %v1788_v24, %v1792_v25  ;;  %v5548_v32 = vcombine.high %v1789_v26, %v1793_v27  ;;  %v1840_v16 = vld [vmem:[#allocation2 + $0xce0] sm:$0xff]  ;;  %v1837_v18 = vld [vmem:[#allocation2 + $0xcc8] sm:$0xff] }
 0x998   :  { %4112 = vmatpush1.bf16.msra.mxu0 %v5489_v35  ;;  %4276 = vmatpush1.bf16.msra.mxu1 %v5491_v36  ;;  %v1801_v35 = vld [vmem:[#allocation2 + $0xba8] sm:$0xff]  ;;  %v5545_v36 = vcombine.low %v1788_v24, %v1792_v25  ;;  %v1844_v25 = vld [vmem:[#allocation2 + $0xd00] sm:$0xff] }
 0x999   :  { %4113 = vmatprep.subr.bf16.mxu0 %v5498_v37  ;;  %4277 = vmatprep.subr.bf16.mxu1 %v5500_v28  ;;  %v5547_v37 = vcombine.low %v1789_v26, %v1793_v27  ;;  %v5554_v28 = vcombine.high %v1796_v33, %v1800_v34  ;;  %v5556_v38 = vcombine.high %v1797_v17, %v1801_v35  ;;  %v1845_v26 = vld [vmem:[#allocation2 + $0xd08] sm:$0xff] }
 0x99a   :  { %v5593_v27 = vcombine.low %v1836_v7, %v1840_v16 }
 0x99c   :  { %4114 = vmatpush1.bf16.msra.mxu0 %v5497_v44  ;;  %4278 = vmatpush1.bf16.msra.mxu1 %v5499_v45  ;;  %v1809_v44 = vld [vmem:[#allocation2 + $0xbe8] sm:$0xff]  ;;  %v5553_v45 = vcombine.low %v1796_v33, %v1800_v34  ;;  %v5603_v33 = vcombine.low %v1845_v26, %v1845_v26  ;;  %v1430_v34 = vld [vmem:[#allocation2 + $0x10] sm:$0xff] }
 0x99d   :  { %4115 = vmatprep.subr.bf16.mxu0 %v5506_v47  ;;  %4279 = vmatprep.subr.bf16.mxu1 %v5508_v48  ;;  %v5555_v47 = vcombine.low %v1797_v17, %v1801_v35  ;;  %v5562_v48 = vcombine.high %v1804_v41, %v1808_v42  ;;  %v5564_v49 = vcombine.high %v1805_v43, %v1809_v44  ;;  %v1434_v17 = vld [vmem:[#allocation2 + $0x30] sm:$0xff]  ;;  %v1431_v35 = vld [vmem:[#allocation2 + $0x18] sm:$0xff] }
 0x9a0   :  { %4116 = vmatpush1.bf16.msra.mxu0 %v5505_v56  ;;  %4280 = vmatpush1.bf16.msra.mxu1 %v5507_v57  ;;  %v1817_v56 = vld [vmem:[#allocation2 + $0xc28] sm:$0xff]  ;;  %v5561_v57 = vcombine.low %v1804_v41, %v1808_v42  ;;  %v1438_v42 = vld [vmem:[#allocation2 + $0x50] sm:$0xff] }
 0x9a1   :  { %4117 = vmatprep.subr.bf16.mxu0 %v5514_v58  ;;  %4281 = vmatprep.subr.bf16.mxu1 %v5516_v60  ;;  %v5563_v58 = vcombine.low %v1805_v43, %v1809_v44  ;;  %v5570_v60 = vcombine.high %v1812_v50, %v1816_v51  ;;  %v5572_v59 = vcombine.high %v1813_v1, %v1817_v56  ;;  %v1442_v43 = vld [vmem:[#allocation2 + $0x70] sm:$0xff]  ;;  %v1439_v44 = vld [vmem:[#allocation2 + $0x58] sm:$0xff] }
 0x9a4   :  { %4118 = vmatpush1.bf16.msra.mxu0 %v5513_v2  ;;  %4282 = vmatpush1.bf16.msra.mxu1 %v5515_v3  ;;  %v1825_v2 = vld [vmem:[#allocation2 + $0xc68] sm:$0xff]  ;;  %v5569_v3 = vcombine.low %v1812_v50, %v1816_v51  ;;  %v1446_v51 = vld [vmem:[#allocation2 + $0x90] sm:$0xff] }
 0x9a5   :  { %4119 = vmatprep.subr.bf16.mxu0 %v5522_v4  ;;  %4283 = vmatprep.subr.bf16.mxu1 %v5524_v5  ;;  %v5571_v4 = vcombine.low %v1813_v1, %v1817_v56  ;;  %v5578_v5 = vcombine.high %v1820_v61, %v1824_v62  ;;  %v5580_v6 = vcombine.high %v1821_v63, %v1825_v2  ;;  %v1450_v1 = vld [vmem:[#allocation2 + $0xb0] sm:$0xff]  ;;  %v1447_v56 = vld [vmem:[#allocation2 + $0x98] sm:$0xff] }
 0x9a8   :  { %4120 = vmatpush1.bf16.msra.mxu0 %v5521_v11  ;;  %4284 = vmatpush1.bf16.msra.mxu1 %v5523_v12  ;;  %v1833_v11 = vld [vmem:[#allocation2 + $0xca8] sm:$0xff]  ;;  %v5577_v12 = vcombine.low %v1820_v61, %v1824_v62  ;;  %v1454_v62 = vld [vmem:[#allocation2 + $0xd0] sm:$0xff] }
 0x9a9   :  { %4121 = vmatprep.subr.bf16.mxu0 %v5530_v13  ;;  %4285 = vmatprep.subr.bf16.mxu1 %v5532_v14  ;;  %v5579_v13 = vcombine.low %v1821_v63, %v1825_v2  ;;  %v5586_v14 = vcombine.high %v1828_v8, %v1832_v9  ;;  %v5588_v15 = vcombine.high %v1829_v10, %v1833_v11  ;;  %v1458_v63 = vld [vmem:[#allocation2 + $0xf0] sm:$0xff]  ;;  %v1455_v2 = vld [vmem:[#allocation2 + $0xd8] sm:$0xff] }
 0x9ac   :  { %4122 = vmatpush1.bf16.msra.mxu0 %v5529_v20  ;;  %4286 = vmatpush1.bf16.msra.mxu1 %v5531_v21  ;;  %v1841_v20 = vld [vmem:[#allocation2 + $0xce8] sm:$0xff]  ;;  %v5585_v21 = vcombine.low %v1828_v8, %v1832_v9  ;;  %v1462_v9 = vld [vmem:[#allocation2 + $0x110] sm:$0xff] }
 0x9ad   :  { %4123 = vmatprep.subr.bf16.mxu0 %v5538_v22  ;;  %4287 = vmatprep.subr.bf16.mxu1 %v5540_v23  ;;  %v5587_v22 = vcombine.low %v1829_v10, %v1833_v11  ;;  %v5594_v23 = vcombine.high %v1836_v7, %v1840_v16  ;;  %v5596_v24 = vcombine.high %v1837_v18, %v1841_v20  ;;  %v1466_v10 = vld [vmem:[#allocation2 + $0x130] sm:$0xff]  ;;  %v1463_v11 = vld [vmem:[#allocation2 + $0x118] sm:$0xff] }
 0x9ae   :  { %v1470_v7 = vld [vmem:[#allocation2 + $0x150] sm:$0xff] }
 0x9af   :  { %v1474_v16 = vld [vmem:[#allocation2 + $0x170] sm:$0xff] }
 0x9b0   :  { %4124 = vmatpush1.bf16.msra.mxu0 %v5537_v29  ;;  %4288 = vmatpush1.bf16.msra.mxu1 %v5539_v30  ;;  %v5595_v29 = vcombine.low %v1837_v18, %v1841_v20  ;;  %v5602_v30 = vcombine.high %v1844_v25, %v1844_v25  ;;  %v1471_v18 = vld [vmem:[#allocation2 + $0x158] sm:$0xff] }
 0x9b1   :  { %4125 = vmatprep.subr.bf16.mxu0 %v5546_v31  ;;  %4289 = vmatprep.subr.bf16.mxu1 %v5548_v32  ;;  %v5601_v31 = vcombine.low %v1844_v25, %v1844_v25  ;;  %v5604_v32 = vcombine.high %v1845_v26, %v1845_v26  ;;  %v1475_v20 = vld [vmem:[#allocation2 + $0x178] sm:$0xff]  ;;  %v1478_v25 = vld [vmem:[#allocation2 + $0x190] sm:$0xff] }
 0x9b2   :  { %v1482_v26 = vld [vmem:[#allocation2 + $0x1b0] sm:$0xff] }
 0x9b4   :  { %4126 = vmatpush1.bf16.msra.mxu0 %v5545_v36  ;;  %4290 = vmatpush1.bf16.msra.mxu1 %v5547_v37  ;;  %v1435_v36 = vld [vmem:[#allocation2 + $0x38] sm:$0xff]  ;;  %v3994_v37 = vsel %vm1066_vm4, %v5601_v31, 0  ;;  %v5231_v31 = vcombine.low %v1471_v18, %v1475_v20 }
 0x9b5   :  { %4127 = vmatprep.subr.bf16.mxu0 %v5554_v28  ;;  %4291 = vmatprep.subr.bf16.mxu1 %v5556_v38  ;;  %v5190_v28 = vcombine.high %v1430_v34, %v1434_v17  ;;  %v4000_v38 = vsel %vm1066_vm4, %v5603_v33, 0  ;;  %v5192_v41 = vcombine.high %v1431_v35, %v1435_v36 }
 0x9b8   :  { %4128 = vmatpush1.bf16.msra.mxu0 %v5553_v45  ;;  %4292 = vmatpush1.bf16.msra.mxu1 %v5555_v47  ;;  %v1443_v45 = vld [vmem:[#allocation2 + $0x78] sm:$0xff]  ;;  %v5189_v47 = vcombine.low %v1430_v34, %v1434_v17  ;;  %v1486_v34 = vld [vmem:[#allocation2 + $0x1d0] sm:$0xff] }
 0x9b9   :  { %4129 = vmatprep.subr.bf16.mxu0 %v5562_v48  ;;  %4293 = vmatprep.subr.bf16.mxu1 %v5564_v49  ;;  %v5191_v48 = vcombine.low %v1431_v35, %v1435_v36  ;;  %v5198_v49 = vcombine.high %v1438_v42, %v1442_v43  ;;  %v5200_v50 = vcombine.high %v1439_v44, %v1443_v45  ;;  %v1490_v17 = vld [vmem:[#allocation2 + $0x1f0] sm:$0xff]  ;;  %v1487_v35 = vld [vmem:[#allocation2 + $0x1d8] sm:$0xff] }
 0x9ba   :  { %v1491_v36 = vld [vmem:[#allocation2 + $0x1f8] sm:$0xff] }
 0x9bc   :  { %4130 = vmatpush1.bf16.msra.mxu0 %v5561_v57  ;;  %4294 = vmatpush1.bf16.msra.mxu1 %v5563_v58  ;;  %v1451_v57 = vld [vmem:[#allocation2 + $0xb8] sm:$0xff]  ;;  %v5197_v58 = vcombine.low %v1438_v42, %v1442_v43  ;;  %v1494_v42 = vld [vmem:[#allocation2 + $0x210] sm:$0xff] }
 0x9bd   :  { %4140 = vmatprep.subr.bf16.mxu0 %v5570_v60  ;;  %4304 = vmatprep.subr.bf16.mxu1 %v5572_v59  ;;  %v5199_v60 = vcombine.low %v1439_v44, %v1443_v45  ;;  %v5206_v59 = vcombine.high %v1446_v51, %v1450_v1  ;;  %v5208_v61 = vcombine.high %v1447_v56, %v1451_v57  ;;  %v1498_v43 = vld [vmem:[#allocation2 + $0x230] sm:$0xff]  ;;  %v1495_v44 = vld [vmem:[#allocation2 + $0x218] sm:$0xff] }
 0x9be   :  { %v1499_v45 = vld [vmem:[#allocation2 + $0x238] sm:$0xff] }
 0x9bf   :  { %4132 = vmatmul.mubr.bf16.vlgmr.msra.gmra.mrb[28].mxu0 %v6994_v55  ;;  %4296 = vmatmul.mubr.bf16.vlgmr.msra.gmra.mrb[44].mxu1 %v6994_v55 }
 0x9c0   :  { %4141 = vmatpush1.bf16.msra.mxu0 %v5569_v3  ;;  %4305 = vmatpush1.bf16.msra.mxu1 %v5571_v4  ;;  %v1459_v3 = vld [vmem:[#allocation2 + $0xf8] sm:$0xff]  ;;  %v5205_v4 = vcombine.low %v1446_v51, %v1450_v1  ;;  %v1502_v51 = vld [vmem:[#allocation2 + $0x250] sm:$0xff] }
 0x9c1   :  { %4142 = vmatprep.subr.bf16.mxu0 %v5578_v5  ;;  %4306 = vmatprep.subr.bf16.mxu1 %v5580_v6  ;;  %v5207_v5 = vcombine.low %v1447_v56, %v1451_v57  ;;  %v5214_v6 = vcombine.high %v1454_v62, %v1458_v63  ;;  %v5216_v8 = vcombine.high %v1455_v2, %v1459_v3  ;;  %v1506_v1 = vld [vmem:[#allocation2 + $0x270] sm:$0xff]  ;;  %v1503_v56 = vld [vmem:[#allocation2 + $0x258] sm:$0xff] }
 0x9c2   :  { %4172 = vmatprep.mubr.bf16.mxu0 %v6414_v0  ;;  %4336 = vmatprep.mubr.bf16.mxu1 %v6414_v0  ;;  %v1507_v57 = vld [vmem:[#allocation2 + $0x278] sm:$0xff] }
 0x9c4   :  { %4143 = vmatpush1.bf16.msra.mxu0 %v5577_v12  ;;  %4307 = vmatpush1.bf16.msra.mxu1 %v5579_v13  ;;  %v1467_v12 = vld [vmem:[#allocation2 + $0x138] sm:$0xff]  ;;  %v5213_v13 = vcombine.low %v1454_v62, %v1458_v63  ;;  %v1510_v62 = vld [vmem:[#allocation2 + $0x290] sm:$0xff] }
 0x9c5   :  { %4144 = vmatprep.subr.bf16.mxu0 %v5586_v14  ;;  %4308 = vmatprep.subr.bf16.mxu1 %v5588_v15  ;;  %v5215_v14 = vcombine.low %v1455_v2, %v1459_v3  ;;  %v5222_v15 = vcombine.high %v1462_v9, %v1466_v10  ;;  %v1514_v63 = vld [vmem:[#allocation2 + $0x2b0] sm:$0xff]  ;;  %v1511_v2 = vld [vmem:[#allocation2 + $0x298] sm:$0xff] }
 0x9c6   :  { %v1515_v3 = vld [vmem:[#allocation2 + $0x2b8] sm:$0xff] }
 0x9c8   :  { %4145 = vmatpush1.bf16.msra.mxu0 %v5585_v21  ;;  %4309 = vmatpush1.bf16.msra.mxu1 %v5587_v22  ;;  %v5221_v21 = vcombine.low %v1462_v9, %v1466_v10  ;;  %v5223_v22 = vcombine.low %v1463_v11, %v1467_v12  ;;  %v1518_v9 = vld [vmem:[#allocation2 + $0x2d0] sm:$0xff] }
 0x9c9   :  { %4146 = vmatprep.subr.bf16.mxu0 %v5594_v23  ;;  %4310 = vmatprep.subr.bf16.mxu1 %v5596_v24  ;;  %v5230_v23 = vcombine.high %v1470_v7, %v1474_v16  ;;  %v5232_v24 = vcombine.high %v1471_v18, %v1475_v20  ;;  %v1522_v10 = vld [vmem:[#allocation2 + $0x2f0] sm:$0xff]  ;;  %v1527_v18 = vld [vmem:[#allocation2 + $0x318] sm:$0xff] }
 0x9ca   :  { %v1531_v20 = vld [vmem:[#allocation2 + $0x338] sm:$0xff] }
 0x9cc   :  { %4147 = vmatpush1.bf16.msra.mxu0 %v5593_v27  ;;  %4311 = vmatpush1.bf16.msra.mxu1 %v5595_v29  ;;  %v1479_v27 = vld [vmem:[#allocation2 + $0x198] sm:$0xff] }
 0x9cd   :  { %5609 = vmatprep.subr.msk.bf16.mxu0 %vm1066_vm4, %v5602_v30  ;;  %5611 = vmatprep.subr.msk.bf16.mxu1 %vm1066_vm4, %v5604_v32  ;;  %v1483_v29 = vld [vmem:[#allocation2 + $0x1b8] sm:$0xff]  ;;  %v5229_v30 = vcombine.low %v1470_v7, %v1474_v16  ;;  %v5238_v32 = vcombine.high %v1478_v25, %v1482_v26  ;;  %v1526_v7 = vld [vmem:[#allocation2 + $0x310] sm:$0xff] }
 0x9ce   :  { %v5240_v33 = vcombine.high %v1479_v27, %v1483_v29  ;;  %v1530_v16 = vld [vmem:[#allocation2 + $0x330] sm:$0xff] }
 0x9d0   :  { %4149 = vmatpush1.bf16.msra.mxu0 %v3994_v37  ;;  %4313 = vmatpush1.bf16.msra.mxu1 %v4000_v38  ;;  %v5237_v37 = vcombine.low %v1478_v25, %v1482_v26  ;;  %v5246_v38 = vcombine.high %v1486_v34, %v1490_v17  ;;  %v1534_v25 = vld [vmem:[#allocation2 + $0x350] sm:$0xff] }
 0x9d1   :  { %4345 = vmatprep.subr.bf16.mxu0 %v5190_v28  ;;  %4509 = vmatprep.subr.bf16.mxu1 %v5192_v41  ;;  %v5239_v28 = vcombine.low %v1479_v27, %v1483_v29  ;;  %v5248_v41 = vcombine.high %v1487_v35, %v1491_v36  ;;  %v1538_v26 = vld [vmem:[#allocation2 + $0x370] sm:$0xff]  ;;  %v1535_v27 = vld [vmem:[#allocation2 + $0x358] sm:$0xff] }
 0x9d2   :  { %v1539_v29 = vld [vmem:[#allocation2 + $0x378] sm:$0xff] }
 0x9d3   :  { %5610 = vmatmul.mubr.msk.bf16.vlgmr.msra.gmra.mrb[28].mxu0 %vm1061_vm6, %v6986_v52  ;;  %5612 = vmatmul.mubr.msk.bf16.vlgmr.msra.gmra.mrb[44].mxu1 %vm1061_vm6, %v6986_v52 }
 0x9d4   :  { %4346 = vmatpush1.bf16.msra.mxu0 %v5189_v47  ;;  %4510 = vmatpush1.bf16.msra.mxu1 %v5191_v48  ;;  %v5245_v47 = vcombine.low %v1486_v34, %v1490_v17  ;;  %v5247_v48 = vcombine.low %v1487_v35, %v1491_v36  ;;  %v1542_v34 = vld [vmem:[#allocation2 + $0x390] sm:$0xff]  ;;  %v1543_v35 = vld [vmem:[#allocation2 + $0x398] sm:$0xff] }
 0x9d5   :  { %4347 = vmatprep.subr.bf16.mxu0 %v5198_v49  ;;  %4511 = vmatprep.subr.bf16.mxu1 %v5200_v50  ;;  %v5254_v49 = vcombine.high %v1494_v42, %v1498_v43  ;;  %v5256_v50 = vcombine.high %v1495_v44, %v1499_v45  ;;  %v1546_v17 = vld [vmem:[#allocation2 + $0x3b0] sm:$0xff]  ;;  %v1547_v36 = vld [vmem:[#allocation2 + $0x3b8] sm:$0xff] }
 0x9d6   :  { %4377 = vmatprep.mubr.bf16.mxu0 %v6973_v39  ;;  %4541 = vmatprep.mubr.bf16.mxu1 %v6973_v39  ;;  %v5224_v39 = vcombine.high %v1463_v11, %v1467_v12  ;;  %v1519_v11 = vld [vmem:[#allocation2 + $0x2d8] sm:$0xff] }
 0x9d7   :  { %v1523_v12 = vld [vmem:[#allocation2 + $0x2f8] sm:$0xff] }
 0x9d8   :  { %4348 = vmatpush1.bf16.msra.mxu0 %v5197_v58  ;;  %4512 = vmatpush1.bf16.msra.mxu1 %v5199_v60  ;;  %v5253_v58 = vcombine.low %v1494_v42, %v1498_v43  ;;  %v5255_v60 = vcombine.low %v1495_v44, %v1499_v45  ;;  %v1550_v42 = vld [vmem:[#allocation2 + $0x3d0] sm:$0xff]  ;;  %v1551_v44 = vld [vmem:[#allocation2 + $0x3d8] sm:$0xff] }
 0x9d9   :  { %4349 = vmatprep.subr.bf16.mxu0 %v5206_v59  ;;  %4513 = vmatprep.subr.bf16.mxu1 %v5208_v61  ;;  %v5262_v59 = vcombine.high %v1502_v51, %v1506_v1  ;;  %v5264_v61 = vcombine.high %v1503_v56, %v1507_v57  ;;  %v1554_v43 = vld [vmem:[#allocation2 + $0x3f0] sm:$0xff]  ;;  %v1555_v45 = vld [vmem:[#allocation2 + $0x3f8] sm:$0xff] }
 0x9dc   :  { %4350 = vmatpush1.bf16.msra.mxu0 %v5205_v4  ;;  %4514 = vmatpush1.bf16.msra.mxu1 %v5207_v5  ;;  %v5261_v4 = vcombine.low %v1502_v51, %v1506_v1  ;;  %v5263_v5 = vcombine.low %v1503_v56, %v1507_v57  ;;  %v1558_v51 = vld [vmem:[#allocation2 + $0x410] sm:$0xff]  ;;  %v1559_v56 = vld [vmem:[#allocation2 + $0x418] sm:$0xff] }
 0x9dd   :  { %4351 = vmatprep.subr.bf16.mxu0 %v5214_v6  ;;  %4515 = vmatprep.subr.bf16.mxu1 %v5216_v8  ;;  %v5270_v6 = vcombine.high %v1510_v62, %v1514_v63  ;;  %v5272_v8 = vcombine.high %v1511_v2, %v1515_v3  ;;  %v1562_v1 = vld [vmem:[#allocation2 + $0x430] sm:$0xff]  ;;  %v1563_v57 = vld [vmem:[#allocation2 + $0x438] sm:$0xff] }
 0x9e0   :  { %4352 = vmatpush1.bf16.msra.mxu0 %v5213_v13  ;;  %4516 = vmatpush1.bf16.msra.mxu1 %v5215_v14  ;;  %v5269_v13 = vcombine.low %v1510_v62, %v1514_v63  ;;  %v5271_v14 = vcombine.low %v1511_v2, %v1515_v3  ;;  %v1566_v62 = vld [vmem:[#allocation2 + $0x450] sm:$0xff]  ;;  %v1567_v2 = vld [vmem:[#allocation2 + $0x458] sm:$0xff] }
 0x9e1   :  { %4353 = vmatprep.subr.bf16.mxu0 %v5222_v15  ;;  %4517 = vmatprep.subr.bf16.mxu1 %v5224_v39  ;;  %v5278_v15 = vcombine.high %v1518_v9, %v1522_v10  ;;  %v5280_v39 = vcombine.high %v1519_v11, %v1523_v12  ;;  %v1570_v63 = vld [vmem:[#allocation2 + $0x470] sm:$0xff]  ;;  %v1571_v3 = vld [vmem:[#allocation2 + $0x478] sm:$0xff] }
 0x9e4   :  { %4354 = vmatpush1.bf16.msra.mxu0 %v5221_v21  ;;  %4518 = vmatpush1.bf16.msra.mxu1 %v5223_v22  ;;  %v5277_v21 = vcombine.low %v1518_v9, %v1522_v10  ;;  %v5279_v22 = vcombine.low %v1519_v11, %v1523_v12  ;;  %v1574_v9 = vld [vmem:[#allocation2 + $0x490] sm:$0xff]  ;;  %v1575_v11 = vld [vmem:[#allocation2 + $0x498] sm:$0xff] }
 0x9e5   :  { %4355 = vmatprep.subr.bf16.mxu0 %v5230_v23  ;;  %4519 = vmatprep.subr.bf16.mxu1 %v5232_v24  ;;  %v5286_v23 = vcombine.high %v1526_v7, %v1530_v16  ;;  %v5288_v24 = vcombine.high %v1527_v18, %v1531_v20  ;;  %v1578_v10 = vld [vmem:[#allocation2 + $0x4b0] sm:$0xff]  ;;  %v1579_v12 = vld [vmem:[#allocation2 + $0x4b8] sm:$0xff] }
 0x9e8   :  { %4356 = vmatpush1.bf16.msra.mxu0 %v5229_v30  ;;  %4520 = vmatpush1.bf16.msra.mxu1 %v5231_v31  ;;  %v5285_v30 = vcombine.low %v1526_v7, %v1530_v16  ;;  %v5287_v31 = vcombine.low %v1527_v18, %v1531_v20  ;;  %v1582_v7 = vld [vmem:[#allocation2 + $0x4d0] sm:$0xff]  ;;  %v1583_v18 = vld [vmem:[#allocation2 + $0x4d8] sm:$0xff] }
 0x9e9   :  { %4357 = vmatprep.subr.bf16.mxu0 %v5238_v32  ;;  %4521 = vmatprep.subr.bf16.mxu1 %v5240_v33  ;;  %v5294_v32 = vcombine.high %v1534_v25, %v1538_v26  ;;  %v5296_v33 = vcombine.high %v1535_v27, %v1539_v29  ;;  %v1586_v16 = vld [vmem:[#allocation2 + $0x4f0] sm:$0xff]  ;;  %v1587_v20 = vld [vmem:[#allocation2 + $0x4f8] sm:$0xff] }
 0x9ec   :  { %4358 = vmatpush1.bf16.msra.mxu0 %v5237_v37  ;;  %4522 = vmatpush1.bf16.msra.mxu1 %v5239_v28  ;;  %v5293_v37 = vcombine.low %v1534_v25, %v1538_v26  ;;  %v5295_v28 = vcombine.low %v1535_v27, %v1539_v29  ;;  %v1594_v25 = vld [vmem:[#allocation2 + $0x530] sm:$0xff]  ;;  %v1591_v26 = vld [vmem:[#allocation2 + $0x518] sm:$0xff]  ;;  %v5341_v29 = vcombine.low %v1582_v7, %v1586_v16 }
 0x9ed   :  { %4359 = vmatprep.subr.bf16.mxu0 %v5246_v38  ;;  %4523 = vmatprep.subr.bf16.mxu1 %v5248_v41  ;;  %v5302_v38 = vcombine.high %v1542_v34, %v1546_v17  ;;  %v5304_v41 = vcombine.high %v1543_v35, %v1547_v36  ;;  %v1595_v27 = vld [vmem:[#allocation2 + $0x538] sm:$0xff] }
 0x9f0   :  { %4360 = vmatpush1.bf16.msra.mxu0 %v5245_v47  ;;  %4524 = vmatpush1.bf16.msra.mxu1 %v5247_v48  ;;  %v5301_v47 = vcombine.low %v1542_v34, %v1546_v17  ;;  %v5303_v48 = vcombine.low %v1543_v35, %v1547_v36  ;;  %v1599_v34 = vld [vmem:[#allocation2 + $0x558] sm:$0xff]  ;;  %v5351_v36 = vcombine.low %v1591_v26, %v1595_v27 }
 0x9f1   :  { %4361 = vmatprep.subr.bf16.mxu0 %v5254_v49  ;;  %4525 = vmatprep.subr.bf16.mxu1 %v5256_v50  ;;  %v5310_v49 = vcombine.high %v1550_v42, %v1554_v43  ;;  %v5312_v50 = vcombine.high %v1551_v44, %v1555_v45  ;;  %v1603_v17 = vld [vmem:[#allocation2 + $0x578] sm:$0xff] }
 0x9f4   :  { %4362 = vmatpush1.bf16.msra.mxu0 %v5253_v58  ;;  %4526 = vmatpush1.bf16.msra.mxu1 %v5255_v60  ;;  %v5309_v58 = vcombine.low %v1550_v42, %v1554_v43  ;;  %v5311_v60 = vcombine.low %v1551_v44, %v1555_v45  ;;  %v1607_v42 = vld [vmem:[#allocation2 + $0x598] sm:$0xff]  ;;  %v5359_v45 = vcombine.low %v1599_v34, %v1603_v17 }
 0x9f5   :  { %4363 = vmatprep.subr.bf16.mxu0 %v5262_v59  ;;  %4527 = vmatprep.subr.bf16.mxu1 %v5264_v61  ;;  %v5318_v59 = vcombine.high %v1558_v51, %v1562_v1  ;;  %v5320_v61 = vcombine.high %v1559_v56, %v1563_v57  ;;  %v1611_v43 = vld [vmem:[#allocation2 + $0x5b8] sm:$0xff] }
 0x9f8   :  { %4364 = vmatpush1.bf16.msra.mxu0 %v5261_v4  ;;  %4528 = vmatpush1.bf16.msra.mxu1 %v5263_v5  ;;  %v5317_v4 = vcombine.low %v1558_v51, %v1562_v1  ;;  %v5319_v5 = vcombine.low %v1559_v56, %v1563_v57  ;;  %v1615_v51 = vld [vmem:[#allocation2 + $0x5d8] sm:$0xff]  ;;  %v5367_v57 = vcombine.low %v1607_v42, %v1611_v43 }
 0x9f9   :  { %4365 = vmatprep.subr.bf16.mxu0 %v5270_v6  ;;  %4529 = vmatprep.subr.bf16.mxu1 %v5272_v8  ;;  %v5326_v6 = vcombine.high %v1566_v62, %v1570_v63  ;;  %v5328_v8 = vcombine.high %v1567_v2, %v1571_v3  ;;  %v1619_v1 = vld [vmem:[#allocation2 + $0x5f8] sm:$0xff] }
 0x9fc   :  { %4366 = vmatpush1.bf16.msra.mxu0 %v5269_v13  ;;  %4530 = vmatpush1.bf16.msra.mxu1 %v5271_v14  ;;  %v5325_v13 = vcombine.low %v1566_v62, %v1570_v63  ;;  %v5327_v14 = vcombine.low %v1567_v2, %v1571_v3  ;;  %v1623_v62 = vld [vmem:[#allocation2 + $0x618] sm:$0xff]  ;;  %v5375_v3 = vcombine.low %v1615_v51, %v1619_v1 }
 0x9fd   :  { %4367 = vmatprep.subr.bf16.mxu0 %v5278_v15  ;;  %4531 = vmatprep.subr.bf16.mxu1 %v5280_v39  ;;  %v5334_v15 = vcombine.high %v1574_v9, %v1578_v10  ;;  %v5336_v39 = vcombine.high %v1575_v11, %v1579_v12  ;;  %v1627_v63 = vld [vmem:[#allocation2 + $0x638] sm:$0xff] }
 0xa00   :  { %4368 = vmatpush1.bf16.msra.mxu0 %v5277_v21  ;;  %4532 = vmatpush1.bf16.msra.mxu1 %v5279_v22  ;;  %v5333_v21 = vcombine.low %v1574_v9, %v1578_v10  ;;  %v5342_v22 = vcombine.high %v1582_v7, %v1586_v16  ;;  %v1631_v9 = vld [vmem:[#allocation2 + $0x658] sm:$0xff] }
 0xa01   :  { %4369 = vmatprep.subr.bf16.mxu0 %v5286_v23  ;;  %4533 = vmatprep.subr.bf16.mxu1 %v5288_v24  ;;  %v5344_v23 = vcombine.high %v1583_v18, %v1587_v20  ;;  %v1590_v24 = vld [vmem:[#allocation2 + $0x510] sm:$0xff]  ;;  %v1635_v10 = vld [vmem:[#allocation2 + $0x678] sm:$0xff] }
 0xa02   :  { %v5349_v35 = vcombine.low %v1590_v24, %v1594_v25  ;;  %v1639_v7 = vld [vmem:[#allocation2 + $0x698] sm:$0xff] }
 0xa03   :  { %v1643_v16 = vld [vmem:[#allocation2 + $0x6b8] sm:$0xff] }
 0xa04   :  { %4370 = vmatpush1.bf16.msra.mxu0 %v5285_v30  ;;  %4534 = vmatpush1.bf16.msra.mxu1 %v5287_v31  ;;  %v5343_v30 = vcombine.low %v1583_v18, %v1587_v20  ;;  %v5350_v31 = vcombine.high %v1590_v24, %v1594_v25  ;;  %v5391_v20 = vcombine.low %v1631_v9, %v1635_v10  ;;  %v1647_v24 = vld [vmem:[#allocation2 + $0x6d8] sm:$0xff] }
 0xa05   :  { %4371 = vmatprep.subr.bf16.mxu0 %v5294_v32  ;;  %4535 = vmatprep.subr.bf16.mxu1 %v5296_v33  ;;  %v1598_v32 = vld [vmem:[#allocation2 + $0x550] sm:$0xff]  ;;  %v1651_v25 = vld [vmem:[#allocation2 + $0x6f8] sm:$0xff] }
 0xa06   :  { %v1602_v33 = vld [vmem:[#allocation2 + $0x570] sm:$0xff] }
 0xa07   :  { %v5357_v44 = vcombine.low %v1598_v32, %v1602_v33 }
 0xa08   :  { %4372 = vmatpush1.bf16.msra.mxu0 %v5293_v37  ;;  %4536 = vmatpush1.bf16.msra.mxu1 %v5295_v28  ;;  %v5358_v37 = vcombine.high %v1598_v32, %v1602_v33  ;;  %v5360_v28 = vcombine.high %v1599_v34, %v1603_v17  ;;  %v1655_v32 = vld [vmem:[#allocation2 + $0x718] sm:$0xff]  ;;  %v5407_v17 = vcombine.low %v1647_v24, %v1651_v25 }
 0xa09   :  { %4373 = vmatprep.subr.bf16.mxu0 %v5302_v38  ;;  %4537 = vmatprep.subr.bf16.mxu1 %v5304_v41  ;;  %v1606_v38 = vld [vmem:[#allocation2 + $0x590] sm:$0xff]  ;;  %v1659_v33 = vld [vmem:[#allocation2 + $0x738] sm:$0xff] }
 0xa0a   :  { %v1610_v41 = vld [vmem:[#allocation2 + $0x5b0] sm:$0xff] }
 0xa0b   :  { %v5365_v56 = vcombine.low %v1606_v38, %v1610_v41 }
 0xa0c   :  { %4374 = vmatpush1.bf16.msra.mxu0 %v5301_v47  ;;  %4538 = vmatpush1.bf16.msra.mxu1 %v5303_v48  ;;  %v5366_v47 = vcombine.high %v1606_v38, %v1610_v41  ;;  %v5368_v48 = vcombine.high %v1607_v42, %v1611_v43  ;;  %v1663_v38 = vld [vmem:[#allocation2 + $0x758] sm:$0xff]  ;;  %v5415_v43 = vcombine.low %v1655_v32, %v1659_v33 }
 0xa0d   :  { %4375 = vmatprep.subr.bf16.mxu0 %v5310_v49  ;;  %4539 = vmatprep.subr.bf16.mxu1 %v5312_v50  ;;  %v1614_v49 = vld [vmem:[#allocation2 + $0x5d0] sm:$0xff]  ;;  %v1667_v41 = vld [vmem:[#allocation2 + $0x778] sm:$0xff] }
 0xa0e   :  { %v1618_v50 = vld [vmem:[#allocation2 + $0x5f0] sm:$0xff] }
 0xa0f   :  { %v5373_v2 = vcombine.low %v1614_v49, %v1618_v50 }
 0xa10   :  { %4376 = vmatpush1.bf16.msra.mxu0 %v5309_v58  ;;  %4540 = vmatpush1.bf16.msra.mxu1 %v5311_v60  ;;  %v5374_v58 = vcombine.high %v1614_v49, %v1618_v50  ;;  %v5376_v60 = vcombine.high %v1615_v51, %v1619_v1  ;;  %v1671_v49 = vld [vmem:[#allocation2 + $0x798] sm:$0xff]  ;;  %v5423_v1 = vcombine.low %v1663_v38, %v1667_v41 }
 0xa11   :  { %4386 = vmatprep.subr.bf16.mxu0 %v5318_v59  ;;  %4550 = vmatprep.subr.bf16.mxu1 %v5320_v61  ;;  %v1622_v59 = vld [vmem:[#allocation2 + $0x610] sm:$0xff]  ;;  %v1675_v50 = vld [vmem:[#allocation2 + $0x7b8] sm:$0xff] }
 0xa12   :  { %v1626_v61 = vld [vmem:[#allocation2 + $0x630] sm:$0xff] }
 0xa13   :  { %4378 = vmatmul.mubr.bf16.vlgmr.msra.gmra.mrb[32].mxu0 %v6958_v46  ;;  %4542 = vmatmul.mubr.bf16.vlgmr.msra.gmra.mrb[48].mxu1 %v6958_v46  ;;  %v5335_v46 = vcombine.low %v1575_v11, %v1579_v12  ;;  %v5381_v11 = vcombine.low %v1622_v59, %v1626_v61  ;;  %v5383_v12 = vcombine.low %v1623_v62, %v1627_v63 }
 0xa14   :  { %4387 = vmatpush1.bf16.msra.mxu0 %v5317_v4  ;;  %4551 = vmatpush1.bf16.msra.mxu1 %v5319_v5  ;;  %v5382_v4 = vcombine.high %v1622_v59, %v1626_v61  ;;  %v5384_v5 = vcombine.high %v1623_v62, %v1627_v63  ;;  %v1679_v59 = vld [vmem:[#allocation2 + $0x7d8] sm:$0xff]  ;;  %v5431_v63 = vcombine.low %v1671_v49, %v1675_v50 }
 0xa15   :  { %4388 = vmatprep.subr.bf16.mxu0 %v5326_v6  ;;  %4552 = vmatprep.subr.bf16.mxu1 %v5328_v8  ;;  %v1630_v6 = vld [vmem:[#allocation2 + $0x650] sm:$0xff]  ;;  %v1683_v61 = vld [vmem:[#allocation2 + $0x7f8] sm:$0xff] }
 0xa16   :  { %4418 = vmatprep.mubr.bf16.mxu0 %v6990_v54  ;;  %4582 = vmatprep.mubr.bf16.mxu1 %v6990_v54  ;;  %v5352_v54 = vcombine.high %v1591_v26, %v1595_v27  ;;  %v1634_v8 = vld [vmem:[#allocation2 + $0x670] sm:$0xff]  ;;  %v5399_v27 = vcombine.low %v1639_v7, %v1643_v16 }
 0xa17   :  { %v5389_v18 = vcombine.low %v1630_v6, %v1634_v8 }
 0xa18   :  { %4389 = vmatpush1.bf16.msra.mxu0 %v5325_v13  ;;  %4553 = vmatpush1.bf16.msra.mxu1 %v5327_v14  ;;  %v5390_v13 = vcombine.high %v1630_v6, %v1634_v8  ;;  %v5392_v14 = vcombine.high %v1631_v9, %v1635_v10  ;;  %v1687_v6 = vld [vmem:[#allocation2 + $0x818] sm:$0xff]  ;;  %v5439_v10 = vcombine.low %v1679_v59, %v1683_v61 }
 0xa19   :  { %4390 = vmatprep.subr.bf16.mxu0 %v5334_v15  ;;  %4554 = vmatprep.subr.bf16.mxu1 %v5336_v39  ;;  %v1638_v15 = vld [vmem:[#allocation2 + $0x690] sm:$0xff]  ;;  %v1691_v8 = vld [vmem:[#allocation2 + $0x838] sm:$0xff] }
 0xa1a   :  { %v1642_v39 = vld [vmem:[#allocation2 + $0x6b0] sm:$0xff] }
 0xa1b   :  { %v5397_v26 = vcombine.low %v1638_v15, %v1642_v39 }
 0xa1c   :  { %4391 = vmatpush1.bf16.msra.mxu0 %v5333_v21  ;;  %4555 = vmatpush1.bf16.msra.mxu1 %v5335_v46  ;;  %v5398_v21 = vcombine.high %v1638_v15, %v1642_v39  ;;  %v5400_v46 = vcombine.high %v1639_v7, %v1643_v16  ;;  %v1695_v15 = vld [vmem:[#allocation2 + $0x858] sm:$0xff]  ;;  %v5447_v16 = vcombine.low %v1687_v6, %v1691_v8 }
 0xa1d   :  { %4392 = vmatprep.subr.bf16.mxu0 %v5342_v22  ;;  %4556 = vmatprep.subr.bf16.mxu1 %v5344_v23  ;;  %v1646_v22 = vld [vmem:[#allocation2 + $0x6d0] sm:$0xff]  ;;  %v1699_v39 = vld [vmem:[#allocation2 + $0x878] sm:$0xff] }
 0xa1e   :  { %v1650_v23 = vld [vmem:[#allocation2 + $0x6f0] sm:$0xff] }
 0xa1f   :  { %v5405_v34 = vcombine.low %v1646_v22, %v1650_v23 }
 0xa20   :  { %4393 = vmatpush1.bf16.msra.mxu0 %v5341_v29  ;;  %4557 = vmatpush1.bf16.msra.mxu1 %v5343_v30  ;;  %v5406_v29 = vcombine.high %v1646_v22, %v1650_v23  ;;  %v5408_v30 = vcombine.high %v1647_v24, %v1651_v25  ;;  %v1703_v22 = vld [vmem:[#allocation2 + $0x898] sm:$0xff]  ;;  %v5455_v25 = vcombine.low %v1695_v15, %v1699_v39 }
 0xa21   :  { %4394 = vmatprep.subr.bf16.mxu0 %v5350_v31  ;;  %4558 = vmatprep.subr.bf16.mxu1 %v5352_v54  ;;  %v1654_v31 = vld [vmem:[#allocation2 + $0x710] sm:$0xff]  ;;  %v1707_v23 = vld [vmem:[#allocation2 + $0x8b8] sm:$0xff] }
 0xa22   :  { %v1658_v54 = vld [vmem:[#allocation2 + $0x730] sm:$0xff] }
 0xa23   :  { %v5413_v42 = vcombine.low %v1654_v31, %v1658_v54 }
 0xa24   :  { %4395 = vmatpush1.bf16.msra.mxu0 %v5349_v35  ;;  %4559 = vmatpush1.bf16.msra.mxu1 %v5351_v36  ;;  %v5414_v35 = vcombine.high %v1654_v31, %v1658_v54  ;;  %v5416_v36 = vcombine.high %v1655_v32, %v1659_v33  ;;  %v1711_v31 = vld [vmem:[#allocation2 + $0x8d8] sm:$0xff] }
 0xa25   :  { %4396 = vmatprep.subr.bf16.mxu0 %v5358_v37  ;;  %4560 = vmatprep.subr.bf16.mxu1 %v5360_v28  ;;  %v1662_v37 = vld [vmem:[#allocation2 + $0x750] sm:$0xff]  ;;  %v1715_v54 = vld [vmem:[#allocation2 + $0x8f8] sm:$0xff] }
 0xa26   :  { %v1666_v28 = vld [vmem:[#allocation2 + $0x770] sm:$0xff] }
 0xa27   :  { %v5421_v51 = vcombine.low %v1662_v37, %v1666_v28 }
 0xa28   :  { %4397 = vmatpush1.bf16.msra.mxu0 %v5357_v44  ;;  %4561 = vmatpush1.bf16.msra.mxu1 %v5359_v45  ;;  %v5422_v44 = vcombine.high %v1662_v37, %v1666_v28  ;;  %v5424_v45 = vcombine.high %v1663_v38, %v1667_v41  ;;  %v1723_v37 = vld [vmem:[#allocation2 + $0x938] sm:$0xff]  ;;  %v5471_v38 = vcombine.low %v1711_v31, %v1715_v54 }
 0xa29   :  { %4398 = vmatprep.subr.bf16.mxu0 %v5366_v47  ;;  %4562 = vmatprep.subr.bf16.mxu1 %v5368_v48  ;;  %v1670_v47 = vld [vmem:[#allocation2 + $0x790] sm:$0xff] }
 0xa2a   :  { %v1674_v48 = vld [vmem:[#allocation2 + $0x7b0] sm:$0xff] }
 0xa2b   :  { %v5429_v62 = vcombine.low %v1670_v47, %v1674_v48 }
 0xa2c   :  { %4399 = vmatpush1.bf16.msra.mxu0 %v5365_v56  ;;  %4563 = vmatpush1.bf16.msra.mxu1 %v5367_v57  ;;  %v5430_v56 = vcombine.high %v1670_v47, %v1674_v48  ;;  %v5432_v57 = vcombine.high %v1671_v49, %v1675_v50 }
 0xa2d   :  { %4400 = vmatprep.subr.bf16.mxu0 %v5374_v58  ;;  %4564 = vmatprep.subr.bf16.mxu1 %v5376_v60  ;;  %v1678_v58 = vld [vmem:[#allocation2 + $0x7d0] sm:$0xff] }
 0xa2e   :  { %v1682_v60 = vld [vmem:[#allocation2 + $0x7f0] sm:$0xff] }
 0xa2f   :  { %v5437_v9 = vcombine.low %v1678_v58, %v1682_v60 }
 0xa30   :  { %4401 = vmatpush1.bf16.msra.mxu0 %v5373_v2  ;;  %4565 = vmatpush1.bf16.msra.mxu1 %v5375_v3  ;;  %v5438_v2 = vcombine.high %v1678_v58, %v1682_v60  ;;  %v5440_v3 = vcombine.high %v1679_v59, %v1683_v61 }
 0xa31   :  { %4402 = vmatprep.subr.bf16.mxu0 %v5382_v4  ;;  %4566 = vmatprep.subr.bf16.mxu1 %v5384_v5  ;;  %v1686_v4 = vld [vmem:[#allocation2 + $0x810] sm:$0xff] }
 0xa32   :  { %v1690_v5 = vld [vmem:[#allocation2 + $0x830] sm:$0xff] }
 0xa33   :  { %v5445_v7 = vcombine.low %v1686_v4, %v1690_v5 }
 0xa34   :  { %4403 = vmatpush1.bf16.msra.mxu0 %v5381_v11  ;;  %4567 = vmatpush1.bf16.msra.mxu1 %v5383_v12  ;;  %v5446_v11 = vcombine.high %v1686_v4, %v1690_v5  ;;  %v5448_v12 = vcombine.high %v1687_v6, %v1691_v8 }
 0xa35   :  { %4404 = vmatprep.subr.bf16.mxu0 %v5390_v13  ;;  %4568 = vmatprep.subr.bf16.mxu1 %v5392_v14  ;;  %v1694_v13 = vld [vmem:[#allocation2 + $0x850] sm:$0xff] }
 0xa36   :  { %v1698_v14 = vld [vmem:[#allocation2 + $0x870] sm:$0xff] }
 0xa37   :  { %v5453_v24 = vcombine.low %v1694_v13, %v1698_v14 }
 0xa38   :  { %4405 = vmatpush1.bf16.msra.mxu0 %v5389_v18  ;;  %4569 = vmatpush1.bf16.msra.mxu1 %v5391_v20  ;;  %v5454_v18 = vcombine.high %v1694_v13, %v1698_v14  ;;  %v5456_v20 = vcombine.high %v1695_v15, %v1699_v39 }
 0xa39   :  { %4406 = vmatprep.subr.bf16.mxu0 %v5398_v21  ;;  %4570 = vmatprep.subr.bf16.mxu1 %v5400_v46  ;;  %v1702_v21 = vld [vmem:[#allocation2 + $0x890] sm:$0xff] }
 0xa3a   :  { %v1706_v46 = vld [vmem:[#allocation2 + $0x8b0] sm:$0xff] }
 0xa3b   :  { %v5461_v32 = vcombine.low %v1702_v21, %v1706_v46 }
 0xa3c   :  { %4407 = vmatpush1.bf16.msra.mxu0 %v5397_v26  ;;  %4571 = vmatpush1.bf16.msra.mxu1 %v5399_v27  ;;  %v5462_v26 = vcombine.high %v1702_v21, %v1706_v46  ;;  %v5464_v27 = vcombine.high %v1703_v22, %v1707_v23 }
 0xa3d   :  { %4408 = vmatprep.subr.bf16.mxu0 %v5406_v29  ;;  %4572 = vmatprep.subr.bf16.mxu1 %v5408_v30  ;;  %v1710_v29 = vld [vmem:[#allocation2 + $0x8d0] sm:$0xff] }
 0xa3e   :  { %v1714_v30 = vld [vmem:[#allocation2 + $0x8f0] sm:$0xff] }
 0xa3f   :  { %v5470_v33 = vcombine.high %v1710_v29, %v1714_v30  ;;  %v5469_v28 = vcombine.low %v1710_v29, %v1714_v30 }
 0xa40   :  { %4409 = vmatpush1.bf16.msra.mxu0 %v5405_v34  ;;  %4573 = vmatpush1.bf16.msra.mxu1 %v5407_v17  ;;  %v5472_v34 = vcombine.high %v1711_v31, %v1715_v54  ;;  %v1718_v17 = vld [vmem:[#allocation2 + $0x910] sm:$0xff] }
 0xa41   :  { %4410 = vmatprep.subr.bf16.mxu0 %v5414_v35  ;;  %4574 = vmatprep.subr.bf16.mxu1 %v5416_v36  ;;  %v1722_v35 = vld [vmem:[#allocation2 + $0x930] sm:$0xff]  ;;  %v1719_v36 = vld [vmem:[#allocation2 + $0x918] sm:$0xff] }
 0xa42   :  { %v5478_v41 = vcombine.high %v1718_v17, %v1722_v35  ;;  %v5477_v47 = vcombine.low %v1718_v17, %v1722_v35  ;;  %v5479_v48 = vcombine.low %v1719_v36, %v1723_v37 }
 0xa44   :  { %4411 = vmatpush1.bf16.msra.mxu0 %v5413_v42  ;;  %4575 = vmatpush1.bf16.msra.mxu1 %v5415_v43  ;;  %v1726_v42 = vld [vmem:[#allocation2 + $0x950] sm:$0xff] }
 0xa45   :  { %4412 = vmatprep.subr.bf16.mxu0 %v5422_v44  ;;  %4576 = vmatprep.subr.bf16.mxu1 %v5424_v45  ;;  %v1730_v43 = vld [vmem:[#allocation2 + $0x970] sm:$0xff]  ;;  %v1727_v44 = vld [vmem:[#allocation2 + $0x958] sm:$0xff] }
 0xa46   :  { %v1731_v45 = vld [vmem:[#allocation2 + $0x978] sm:$0xff]  ;;  %v5486_v49 = vcombine.high %v1726_v42, %v1730_v43  ;;  %v5485_v58 = vcombine.low %v1726_v42, %v1730_v43 }
 0xa47   :  { %v5488_v50 = vcombine.high %v1727_v44, %v1731_v45  ;;  %v5487_v60 = vcombine.low %v1727_v44, %v1731_v45 }
 0xa48   :  { %4413 = vmatpush1.bf16.msra.mxu0 %v5421_v51  ;;  %4577 = vmatpush1.bf16.msra.mxu1 %v5423_v1  ;;  %v1734_v51 = vld [vmem:[#allocation2 + $0x990] sm:$0xff] }
 0xa49   :  { %4414 = vmatprep.subr.bf16.mxu0 %v5430_v56  ;;  %4578 = vmatprep.subr.bf16.mxu1 %v5432_v57  ;;  %v1738_v1 = vld [vmem:[#allocation2 + $0x9b0] sm:$0xff]  ;;  %v1735_v56 = vld [vmem:[#allocation2 + $0x998] sm:$0xff] }
 0xa4a   :  { %v1739_v57 = vld [vmem:[#allocation2 + $0x9b8] sm:$0xff]  ;;  %v5494_v59 = vcombine.high %v1734_v51, %v1738_v1  ;;  %v5493_v4 = vcombine.low %v1734_v51, %v1738_v1 }
 0xa4b   :  { %v5496_v61 = vcombine.high %v1735_v56, %v1739_v57  ;;  %v5495_v5 = vcombine.low %v1735_v56, %v1739_v57 }
 0xa4c   :  { %4415 = vmatpush1.bf16.msra.mxu0 %v5429_v62  ;;  %4579 = vmatpush1.bf16.msra.mxu1 %v5431_v63  ;;  %v1742_v62 = vld [vmem:[#allocation2 + $0x9d0] sm:$0xff] }
 0xa4d   :  { %4416 = vmatprep.subr.bf16.mxu0 %v5438_v2  ;;  %4580 = vmatprep.subr.bf16.mxu1 %v5440_v3  ;;  %v1746_v63 = vld [vmem:[#allocation2 + $0x9f0] sm:$0xff]  ;;  %v1743_v2 = vld [vmem:[#allocation2 + $0x9d8] sm:$0xff] }
 0xa4e   :  { %v1747_v3 = vld [vmem:[#allocation2 + $0x9f8] sm:$0xff]  ;;  %v5502_v6 = vcombine.high %v1742_v62, %v1746_v63  ;;  %v5501_v13 = vcombine.low %v1742_v62, %v1746_v63 }
 0xa4f   :  { %v5504_v8 = vcombine.high %v1743_v2, %v1747_v3  ;;  %v5503_v14 = vcombine.low %v1743_v2, %v1747_v3 }
 0xa50   :  { %4417 = vmatpush1.bf16.msra.mxu0 %v5437_v9  ;;  %4581 = vmatpush1.bf16.msra.mxu1 %v5439_v10  ;;  %v1750_v9 = vld [vmem:[#allocation2 + $0xa10] sm:$0xff] }
 0xa51   :  { %4427 = vmatprep.subr.bf16.mxu0 %v5446_v11  ;;  %4591 = vmatprep.subr.bf16.mxu1 %v5448_v12  ;;  %v1754_v10 = vld [vmem:[#allocation2 + $0xa30] sm:$0xff]  ;;  %v1751_v11 = vld [vmem:[#allocation2 + $0xa18] sm:$0xff] }
 0xa52   :  { %v1755_v12 = vld [vmem:[#allocation2 + $0xa38] sm:$0xff]  ;;  %v5510_v15 = vcombine.high %v1750_v9, %v1754_v10  ;;  %v5509_v21 = vcombine.low %v1750_v9, %v1754_v10 }
 0xa53   :  { %4419 = vmatmul.mubr.bf16.vlgmr.msra.gmra.mrb[32].mxu0 %v6977_v40  ;;  %4583 = vmatmul.mubr.bf16.vlgmr.msra.gmra.mrb[48].mxu1 %v6977_v40  ;;  %v5463_v40 = vcombine.low %v1703_v22, %v1707_v23  ;;  %v5512_v39 = vcombine.high %v1751_v11, %v1755_v12  ;;  %v5511_v46 = vcombine.low %v1751_v11, %v1755_v12 }
 0xa54   :  { %4428 = vmatpush1.bf16.msra.mxu0 %v5445_v7  ;;  %4592 = vmatpush1.bf16.msra.mxu1 %v5447_v16  ;;  %v1758_v7 = vld [vmem:[#allocation2 + $0xa50] sm:$0xff] }
 0xa55   :  { %4429 = vmatprep.subr.bf16.mxu0 %v5454_v18  ;;  %4593 = vmatprep.subr.bf16.mxu1 %v5456_v20  ;;  %v1762_v16 = vld [vmem:[#allocation2 + $0xa70] sm:$0xff]  ;;  %v1759_v18 = vld [vmem:[#allocation2 + $0xa58] sm:$0xff] }
 0xa56   :  { %4459 = vmatprep.mubr.bf16.mxu0 %v6998_v53  ;;  %4623 = vmatprep.mubr.bf16.mxu1 %v6998_v53  ;;  %v5480_v53 = vcombine.high %v1719_v36, %v1723_v37  ;;  %v1763_v20 = vld [vmem:[#allocation2 + $0xa78] sm:$0xff]  ;;  %v5518_v22 = vcombine.high %v1758_v7, %v1762_v16  ;;  %v5517_v29 = vcombine.low %v1758_v7, %v1762_v16 }
 0xa57   :  { %v5520_v23 = vcombine.high %v1759_v18, %v1763_v20  ;;  %v5519_v30 = vcombine.low %v1759_v18, %v1763_v20 }
 0xa58   :  { %4430 = vmatpush1.bf16.msra.mxu0 %v5453_v24  ;;  %4594 = vmatpush1.bf16.msra.mxu1 %v5455_v25  ;;  %v1766_v24 = vld [vmem:[#allocation2 + $0xa90] sm:$0xff] }
 0xa59   :  { %4431 = vmatprep.subr.bf16.mxu0 %v5462_v26  ;;  %4595 = vmatprep.subr.bf16.mxu1 %v5464_v27  ;;  %v1770_v25 = vld [vmem:[#allocation2 + $0xab0] sm:$0xff]  ;;  %v1767_v26 = vld [vmem:[#allocation2 + $0xa98] sm:$0xff] }
 0xa5a   :  { %v1771_v27 = vld [vmem:[#allocation2 + $0xab8] sm:$0xff]  ;;  %v5526_v31 = vcombine.high %v1766_v24, %v1770_v25  ;;  %v5525_v17 = vcombine.low %v1766_v24, %v1770_v25 }
 0xa5b   :  { %v5528_v54 = vcombine.high %v1767_v26, %v1771_v27  ;;  %v5527_v35 = vcombine.low %v1767_v26, %v1771_v27 }
 0xa5c   :  { %4432 = vmatpush1.bf16.msra.mxu0 %v5461_v32  ;;  %4596 = vmatpush1.bf16.msra.mxu1 %v5463_v40  ;;  %v1774_v32 = vld [vmem:[#allocation2 + $0xad0] sm:$0xff] }
 0xa5d   :  { %4433 = vmatprep.subr.bf16.mxu0 %v5470_v33  ;;  %4597 = vmatprep.subr.bf16.mxu1 %v5472_v34  ;;  %v1778_v40 = vld [vmem:[#allocation2 + $0xaf0] sm:$0xff]  ;;  %v1775_v33 = vld [vmem:[#allocation2 + $0xad8] sm:$0xff] }
 0xa5e   :  { %v1779_v34 = vld [vmem:[#allocation2 + $0xaf8] sm:$0xff]  ;;  %v5534_v36 = vcombine.high %v1774_v32, %v1778_v40  ;;  %v5533_v42 = vcombine.low %v1774_v32, %v1778_v40 }
 0xa5f   :  { %v5536_v37 = vcombine.high %v1775_v33, %v1779_v34  ;;  %v5535_v43 = vcombine.low %v1775_v33, %v1779_v34 }
 0xa60   :  { %4434 = vmatpush1.bf16.msra.mxu0 %v5469_v28  ;;  %4598 = vmatpush1.bf16.msra.mxu1 %v5471_v38  ;;  %v1782_v28 = vld [vmem:[#allocation2 + $0xb10] sm:$0xff] }
 0xa61   :  { %4435 = vmatprep.subr.bf16.mxu0 %v5478_v41  ;;  %4599 = vmatprep.subr.bf16.mxu1 %v5480_v53  ;;  %v1786_v38 = vld [vmem:[#allocation2 + $0xb30] sm:$0xff]  ;;  %v1783_v41 = vld [vmem:[#allocation2 + $0xb18] sm:$0xff] }
 0xa62   :  { %v1787_v53 = vld [vmem:[#allocation2 + $0xb38] sm:$0xff]  ;;  %v5542_v44 = vcombine.high %v1782_v28, %v1786_v38  ;;  %v5541_v51 = vcombine.low %v1782_v28, %v1786_v38 }
 0xa63   :  { %v5544_v45 = vcombine.high %v1783_v41, %v1787_v53  ;;  %v5543_v1 = vcombine.low %v1783_v41, %v1787_v53  ;;  %v1846_v53 = vld [vmem:[#allocation2 + $0xd10] sm:$0xff] }
 0xa64   :  { %4436 = vmatpush1.bf16.msra.mxu0 %v5477_v47  ;;  %4600 = vmatpush1.bf16.msra.mxu1 %v5479_v48  ;;  %v1790_v47 = vld [vmem:[#allocation2 + $0xb50] sm:$0xff] }
 0xa65   :  { %4437 = vmatprep.subr.bf16.mxu0 %v5486_v49  ;;  %4601 = vmatprep.subr.bf16.mxu1 %v5488_v50  ;;  %v1794_v48 = vld [vmem:[#allocation2 + $0xb70] sm:$0xff]  ;;  %v1791_v49 = vld [vmem:[#allocation2 + $0xb58] sm:$0xff] }
 0xa66   :  { %v1795_v50 = vld [vmem:[#allocation2 + $0xb78] sm:$0xff]  ;;  %v5550_v56 = vcombine.high %v1790_v47, %v1794_v48  ;;  %v5549_v62 = vcombine.low %v1790_v47, %v1794_v48  ;;  %v5606_v47 = vcombine.high %v1846_v53, %v1846_v53 }
 0xa67   :  { %v5552_v57 = vcombine.high %v1791_v49, %v1795_v50  ;;  %v5551_v63 = vcombine.low %v1791_v49, %v1795_v50  ;;  %v4697_v50 = vld [vmem:[%s7480_s13 + $0x80] sm:$0xff] }
 0xa68   :  { %4438 = vmatpush1.bf16.msra.mxu0 %v5485_v58  ;;  %4602 = vmatpush1.bf16.msra.mxu1 %v5487_v60  ;;  %v1798_v58 = vld [vmem:[#allocation2 + $0xb90] sm:$0xff] }
 0xa69   :  { %4439 = vmatprep.subr.bf16.mxu0 %v5494_v59  ;;  %4603 = vmatprep.subr.bf16.mxu1 %v5496_v61  ;;  %v1802_v60 = vld [vmem:[#allocation2 + $0xbb0] sm:$0xff]  ;;  %v1799_v59 = vld [vmem:[#allocation2 + $0xb98] sm:$0xff] }
 0xa6a   :  { %v1803_v61 = vld [vmem:[#allocation2 + $0xbb8] sm:$0xff]  ;;  %v5558_v2 = vcombine.high %v1798_v58, %v1802_v60  ;;  %v5557_v9 = vcombine.low %v1798_v58, %v1802_v60 }
 0xa6b   :  { %v5560_v3 = vcombine.high %v1799_v59, %v1803_v61  ;;  %v5559_v10 = vcombine.low %v1799_v59, %v1803_v61  ;;  %v4681_v61 = vld [vmem:[%s7480_s13] sm:$0xff] }
 0xa6c   :  { %4440 = vmatpush1.bf16.msra.mxu0 %v5493_v4  ;;  %4604 = vmatpush1.bf16.msra.mxu1 %v5495_v5  ;;  %v1806_v4 = vld [vmem:[#allocation2 + $0xbd0] sm:$0xff] }
 0xa6d   :  { %4441 = vmatprep.subr.bf16.mxu0 %v5502_v6  ;;  %4605 = vmatprep.subr.bf16.mxu1 %v5504_v8  ;;  %v1810_v5 = vld [vmem:[#allocation2 + $0xbf0] sm:$0xff]  ;;  %v1807_v6 = vld [vmem:[#allocation2 + $0xbd8] sm:$0xff] }
 0xa6e   :  { %v1811_v8 = vld [vmem:[#allocation2 + $0xbf8] sm:$0xff]  ;;  %v5566_v11 = vcombine.high %v1806_v4, %v1810_v5  ;;  %v5565_v7 = vcombine.low %v1806_v4, %v1810_v5  ;;  %v4714_v4 = vld [vmem:[%s7480_s13 + $0x108] sm:$0xff] }
 0xa6f   :  { %v5568_v12 = vcombine.high %v1807_v6, %v1811_v8  ;;  %v5567_v16 = vcombine.low %v1807_v6, %v1811_v8  ;;  %v4699_v5 = vld [vmem:[%s7480_s13 + $0x90] sm:$0xff]  ;;  %v4700_v6 = vld [vmem:[%s7480_s13 + $0x98] sm:$0xff] }
 0xa70   :  { %4442 = vmatpush1.bf16.msra.mxu0 %v5501_v13  ;;  %4606 = vmatpush1.bf16.msra.mxu1 %v5503_v14  ;;  %v1814_v13 = vld [vmem:[#allocation2 + $0xc10] sm:$0xff]  ;;  %v4731_v8 = vld [vmem:[%s7480_s13 + $0x190] sm:$0xff] }
 0xa71   :  { %4443 = vmatprep.subr.bf16.mxu0 %v5510_v15  ;;  %4607 = vmatprep.subr.bf16.mxu1 %v5512_v39  ;;  %v1818_v14 = vld [vmem:[#allocation2 + $0xc30] sm:$0xff]  ;;  %v1815_v15 = vld [vmem:[#allocation2 + $0xc18] sm:$0xff] }
 0xa72   :  { %v1819_v39 = vld [vmem:[#allocation2 + $0xc38] sm:$0xff]  ;;  %v5574_v18 = vcombine.high %v1814_v13, %v1818_v14  ;;  %v5573_v24 = vcombine.low %v1814_v13, %v1818_v14  ;;  %v5949_v14 = vpack.c.bf16 %v4700_v6, %v4699_v5  ;;  %v4708_v6 = vld [vmem:[%s7480_s13 + $0xd8] sm:$0xff] }
 0xa73   :  { %v5576_v20 = vcombine.high %v1815_v15, %v1819_v39  ;;  %v5575_v25 = vcombine.low %v1815_v15, %v1819_v39  ;;  %v4683_v15 = vld [vmem:[%s7480_s13 + $0x10] sm:$0xff]  ;;  %v4684_v39 = vld [vmem:[%s7480_s13 + $0x18] sm:$0xff] }
 0xa74   :  { %4444 = vmatpush1.bf16.msra.mxu0 %v5509_v21  ;;  %4608 = vmatpush1.bf16.msra.mxu1 %v5511_v46  ;;  %v1822_v21 = vld [vmem:[#allocation2 + $0xc50] sm:$0xff]  ;;  %v4707_v5 = vld [vmem:[%s7480_s13 + $0xd0] sm:$0xff] }
 0xa75   :  { %4445 = vmatprep.subr.bf16.mxu0 %v5518_v22  ;;  %4609 = vmatprep.subr.bf16.mxu1 %v5520_v23  ;;  %v1826_v46 = vld [vmem:[#allocation2 + $0xc70] sm:$0xff]  ;;  %v1823_v22 = vld [vmem:[#allocation2 + $0xc58] sm:$0xff] }
 0xa76   :  { %v1827_v23 = vld [vmem:[#allocation2 + $0xc78] sm:$0xff]  ;;  %v5582_v26 = vcombine.high %v1822_v21, %v1826_v46  ;;  %v5581_v32 = vcombine.low %v1822_v21, %v1826_v46  ;;  %v4701_v21 = vld [vmem:[%s7480_s13 + $0xa0] sm:$0xff] }
 0xa77   :  { %v5584_v27 = vcombine.high %v1823_v22, %v1827_v23  ;;  %v5583_v40 = vcombine.low %v1823_v22, %v1827_v23  ;;  %v4702_v23 = vld [vmem:[%s7480_s13 + $0xa8] sm:$0xff] }
 0xa78   :  { %4446 = vmatpush1.bf16.msra.mxu0 %v5517_v29  ;;  %4610 = vmatpush1.bf16.msra.mxu1 %v5519_v30  ;;  %v1830_v29 = vld [vmem:[#allocation2 + $0xc90] sm:$0xff] }
 0xa79   :  { %4447 = vmatprep.subr.bf16.mxu0 %v5526_v31  ;;  %4611 = vmatprep.subr.bf16.mxu1 %v5528_v54  ;;  %v1834_v30 = vld [vmem:[#allocation2 + $0xcb0] sm:$0xff]  ;;  %v1831_v31 = vld [vmem:[#allocation2 + $0xc98] sm:$0xff] }
 0xa7a   :  { %v1835_v54 = vld [vmem:[#allocation2 + $0xcb8] sm:$0xff]  ;;  %v5590_v33 = vcombine.high %v1830_v29, %v1834_v30  ;;  %v5589_v28 = vcombine.low %v1830_v29, %v1834_v30  ;;  %v5951_v30 = vpack.c.bf16 %v4684_v39, %v4683_v15 }
 0xa7b   :  { %v5592_v34 = vcombine.high %v1831_v31, %v1835_v54  ;;  %v4723_v15 = vld [vmem:[%s7480_s13 + $0x150] sm:$0xff] }
 0xa7c   :  { %4448 = vmatpush1.bf16.msra.mxu0 %v5525_v17  ;;  %4612 = vmatpush1.bf16.msra.mxu1 %v5527_v35  ;;  %v1838_v17 = vld [vmem:[#allocation2 + $0xcd0] sm:$0xff] }
 0xa7d   :  { %4449 = vmatprep.subr.bf16.mxu0 %v5534_v36  ;;  %4613 = vmatprep.subr.bf16.mxu1 %v5536_v37  ;;  %v1842_v35 = vld [vmem:[#allocation2 + $0xcf0] sm:$0xff]  ;;  %v1839_v36 = vld [vmem:[#allocation2 + $0xcd8] sm:$0xff] }
 0xa7e   :  { %v1843_v37 = vld [vmem:[#allocation2 + $0xcf8] sm:$0xff]  ;;  %v5598_v38 = vcombine.high %v1838_v17, %v1842_v35 }
 0xa7f   :  { %v5600_v41 = vcombine.high %v1839_v36, %v1843_v37 }
 0xa80   :  { %4450 = vmatpush1.bf16.msra.mxu0 %v5533_v42  ;;  %4614 = vmatpush1.bf16.msra.mxu1 %v5535_v43  ;;  %v1847_v42 = vld [vmem:[#allocation2 + $0xd18] sm:$0xff]  ;;  %v5597_v43 = vcombine.low %v1838_v17, %v1842_v35 }
 0xa81   :  { %4451 = vmatprep.subr.bf16.mxu0 %v5542_v44  ;;  %4615 = vmatprep.subr.bf16.mxu1 %v5544_v45  ;;  %v7037_v44 = vshrl.u32 %v144_v19, 7  ;;  %v5599_v45 = vcombine.low %v1839_v36, %v1843_v37  ;;  %v5608_v48 = vcombine.high %v1847_v42, %v1847_v42  ;;  %v5607_v49 = vcombine.low %v1847_v42, %v1847_v42  ;;  %v4729_v19 = vld [vmem:[%s7480_s13 + $0x180] sm:$0xff]  ;;  %v4736_v42 = vld [vmem:[%s7480_s13 + $0x1b8] sm:$0xff] }
 0xa82   :  { %v5953_v36 = vpack.c.bf16 %v4702_v23, %v4701_v21  ;;  %v4741_v21 = vld [vmem:[%s7480_s13 + $0x1e0] sm:$0xff] }
 0xa83   :  { %v1864_v60 = vsub.s32 3, %v7037_v44 }
 0xa84   :  { %4452 = vmatpush1.bf16.msra.mxu0 %v5541_v51  ;;  %4616 = vmatpush1.bf16.msra.mxu1 %v5543_v1  ;;  %v4698_v51 = vld [vmem:[%s7480_s13 + $0x88] sm:$0xff] }
 0xa85   :  { %4453 = vmatprep.subr.bf16.mxu0 %v5550_v56  ;;  %4617 = vmatprep.subr.bf16.mxu1 %v5552_v57  ;;  %v4730_v1 = vld [vmem:[%s7480_s13 + $0x188] sm:$0xff]  ;;  %v7051_v56 = vld [vmem:[#allocation13] sm:$0xff]  ;;  %v1856_v57 = vsub.s32 1, %v7037_v44  ;;  %v5945_v59 = vpack.c.bf16 %v4698_v51, %v4697_v50  ;;  %v4720_v51 = vld [vmem:[%s7480_s13 + $0x138] sm:$0xff] }
 0xa88   :  { %4454 = vmatpush1.bf16.msra.mxu0 %v5549_v62  ;;  %4618 = vmatpush1.bf16.msra.mxu1 %v5551_v63  ;;  %v4682_v62 = vld [vmem:[%s7480_s13 + $0x8] sm:$0xff]  ;;  %v4713_v63 = vld [vmem:[%s7480_s13 + $0x100] sm:$0xff] }
 0xa89   :  { %4455 = vmatprep.subr.bf16.mxu0 %v5558_v2  ;;  %4619 = vmatprep.subr.bf16.mxu1 %v5560_v3  ;;  %v4012_v2 = vsel %vm1066_vm4, %v5607_v49, 0  ;;  %v5977_v3 = vpack.c.bf16 %v4730_v1, %v4729_v19  ;;  %v5979_v13 = vpack.c.bf16 %v4714_v4, %v4713_v63  ;;  %v4719_v49 = vld [vmem:[%s7480_s13 + $0x130] sm:$0xff]  ;;  %v4705_v19 = vld [vmem:[%s7480_s13 + $0xc0] sm:$0xff]  ;;  %v4706_v1 = vld [vmem:[%s7480_s13 + $0xc8] sm:$0xff] }
 0xa8a   :  { %v4690_v63 = vld [vmem:[%s7480_s13 + $0x48] sm:$0xff] }
 0xa8b   :  { %v4722_v4 = vld [vmem:[%s7480_s13 + $0x148] sm:$0xff] }
 0xa8c   :  { %4456 = vmatpush1.bf16.msra.mxu0 %v5557_v9  ;;  %4620 = vmatpush1.bf16.msra.mxu1 %v5559_v10  ;;  %v4732_v9 = vld [vmem:[%s7480_s13 + $0x198] sm:$0xff]  ;;  %v1857_v10 = vrot.slane %v7051_v56, %v1856_v57  ;;  %v4737_v57 = vld [vmem:[%s7480_s13 + $0x1c0] sm:$0xff] }
 0xa8d   :  { %4457 = vmatprep.subr.bf16.mxu0 %v5566_v11  ;;  %4621 = vmatprep.subr.bf16.mxu1 %v5568_v12  ;;  %v5947_v11 = vpack.c.bf16 %v4682_v62, %v4681_v61  ;;  %v1865_v12 = vrot.slane %v7051_v56, %v1864_v60  ;;  %v5961_v61 = vpack.c.bf16 %v4706_v1, %v4705_v19  ;;  %v4689_v62 = vld [vmem:[%s7480_s13 + $0x40] sm:$0xff]  ;;  %v4746_v1 = vld [vmem:[%s7480_s13 + $0x208] sm:$0xff] }
 0xa8e   :  { %v4745_v19 = vld [vmem:[%s7480_s13 + $0x200] sm:$0xff] }
 0xa90   :  { %4458 = vmatpush1.bf16.msra.mxu0 %v5565_v7  ;;  %4622 = vmatpush1.bf16.msra.mxu1 %v5567_v16  ;;  %v5981_v16 = vpack.c.bf16 %v4732_v9, %v4731_v8  ;;  %v4739_v8 = vld [vmem:[%s7480_s13 + $0x1d0] sm:$0xff]  ;;  %v4740_v9 = vld [vmem:[%s7480_s13 + $0x1d8] sm:$0xff] }
 0xa91   :  { %4468 = vmatprep.subr.bf16.mxu0 %v5574_v18  ;;  %4632 = vmatprep.subr.bf16.mxu1 %v5576_v20  ;;  %v4715_v18 = vld [vmem:[%s7480_s13 + $0x110] sm:$0xff]  ;;  %v4716_v20 = vld [vmem:[%s7480_s13 + $0x118] sm:$0xff]  ;;  %v5997_v39 = vpack.c.bf16 %v4740_v9, %v4739_v8 }
 0xa92   :  { %v4779_v8 = vld [vmem:[%s7480_s13 + $0x310] sm:$0xff] }
 0xa93   :  { %4460 = vmatmul.mubr.bf16.vlgmr.msra.gmra.mrb[32].mxu0 %v6994_v55  ;;  %4624 = vmatmul.mubr.bf16.vlgmr.msra.gmra.mrb[48].mxu1 %v6994_v55  ;;  %v5591_v55 = vcombine.low %v1831_v31, %v1835_v54 }
 0xa94   :  { %4469 = vmatpush1.bf16.msra.mxu0 %v5573_v24  ;;  %4633 = vmatpush1.bf16.msra.mxu1 %v5575_v25  ;;  %v4733_v24 = vld [vmem:[%s7480_s13 + $0x1a0] sm:$0xff]  ;;  %v4734_v25 = vld [vmem:[%s7480_s13 + $0x1a8] sm:$0xff] }
 0xa95   :  { %4470 = vmatprep.subr.bf16.mxu0 %v5582_v26  ;;  %4634 = vmatprep.subr.bf16.mxu1 %v5584_v27  ;;  %v5985_v37 = vpack.c.bf16 %v4734_v25, %v4733_v24  ;;  %v1852_v24 = vsub.s32 0, %v7037_v44 }
 0xa96   :  { %4500 = vmatprep.mubr.bf16.mxu0 %v6414_v0  ;;  %4664 = vmatprep.mubr.bf16.mxu1 %v6414_v0  ;;  %v5605_v0 = vcombine.low %v1846_v53, %v1846_v53  ;;  %v4735_v53 = vld [vmem:[%s7480_s13 + $0x1b0] sm:$0xff] }
 0xa97   :  { %v5989_v50 = vpack.c.bf16 %v4736_v42, %v4735_v53  ;;  %v4728_v42 = vld [vmem:[%s7480_s13 + $0x178] sm:$0xff] }
 0xa98   :  { %4471 = vmatpush1.bf16.msra.mxu0 %v5581_v32  ;;  %4635 = vmatpush1.bf16.msra.mxu1 %v5583_v40  ;;  %v4006_v58 = vsel %vm1066_vm4, %v5605_v0, 0  ;;  %v5983_v40 = vpack.c.bf16 %v4716_v20, %v4715_v18  ;;  %v4687_v0 = vld [vmem:[%s7480_s13 + $0x30] sm:$0xff]  ;;  %v4709_v18 = vld [vmem:[%s7480_s13 + $0xe0] sm:$0xff]  ;;  %v4710_v20 = vld [vmem:[%s7480_s13 + $0xe8] sm:$0xff] }
 0xa99   :  { %4472 = vmatprep.subr.bf16.mxu0 %v5590_v33  ;;  %4636 = vmatprep.subr.bf16.mxu1 %v5592_v34  ;;  %v4685_v33 = vld [vmem:[%s7480_s13 + $0x20] sm:$0xff]  ;;  %v4686_v34 = vld [vmem:[%s7480_s13 + $0x28] sm:$0xff] }
 0xa9c   :  { %4473 = vmatpush1.bf16.msra.mxu0 %v5589_v28  ;;  %4637 = vmatpush1.bf16.msra.mxu1 %v5591_v55  ;;  %v4718_v28 = vld [vmem:[%s7480_s13 + $0x128] sm:$0xff]  ;;  %v4703_v55 = vld [vmem:[%s7480_s13 + $0xb0] sm:$0xff] }
 0xa9d   :  { %4474 = vmatprep.subr.bf16.mxu0 %v5598_v38  ;;  %4638 = vmatprep.subr.bf16.mxu1 %v5600_v41  ;;  %v4704_v38 = vld [vmem:[%s7480_s13 + $0xb8] sm:$0xff] }
 0xaa0   :  { %4475 = vmatpush1.bf16.msra.mxu0 %v5597_v43  ;;  %4639 = vmatpush1.bf16.msra.mxu1 %v5599_v45  ;;  %v5955_v43 = vpack.c.bf16 %v4686_v34, %v4685_v33  ;;  %v4712_v33 = vld [vmem:[%s7480_s13 + $0xf8] sm:$0xff]  ;;  %v4743_v34 = vld [vmem:[%s7480_s13 + $0x1f0] sm:$0xff] }
 0xaa1   :  { %5613 = vmatprep.subr.msk.bf16.mxu0 %vm1066_vm4, %v5606_v47  ;;  %5615 = vmatprep.subr.msk.bf16.mxu1 %vm1066_vm4, %v5608_v48  ;;  %v5957_v47 = vpack.c.bf16 %v4704_v38, %v4703_v55  ;;  %v4688_v48 = vld [vmem:[%s7480_s13 + $0x38] sm:$0xff]  ;;  %v4727_v38 = vld [vmem:[%s7480_s13 + $0x170] sm:$0xff] }
 0xaa2   :  { %v5959_v60 = vpack.c.bf16 %v4688_v48, %v4687_v0  ;;  %v4696_v55 = vld [vmem:[%s7480_s13 + $0x78] sm:$0xff]  ;;  %v4794_v0 = vld [vmem:[%s7480_s13 + $0x388] sm:$0xff] }
 0xaa4   :  { %4477 = vmatpush1.bf16.msra.mxu0 %v4006_v58  ;;  %4641 = vmatpush1.bf16.msra.mxu1 %v4012_v2  ;;  %v4738_v58 = vld [vmem:[%s7480_s13 + $0x1c8] sm:$0xff]  ;;  %v4721_v2 = vld [vmem:[%s7480_s13 + $0x140] sm:$0xff] }
 0xaa5   :  { %5946 = vmatprep.subr.bf16.mxu0 %v5945_v59  ;;  %5978 = vmatprep.subr.bf16.mxu1 %v5977_v3  ;;  %v5991_v59 = vpack.c.bf16 %v4720_v51, %v4719_v49  ;;  %v5993_v3 = vpack.c.bf16 %v4738_v58, %v4737_v57  ;;  %v4777_v57 = vld [vmem:[%s7480_s13 + $0x300] sm:$0xff] }
 0xaa6   :  { %v7091_v7 = vpop.f32.mrb[28].mxu0  ;;  %v7102_v46 = vpop.f32.mrb[44].mxu1 }
 0xaa7   :  { %v4176_v22 = vpop.f32.mrb[29].mxu0  ;;  %5614 = vmatmul.mubr.msk.bf16.vlgmr.msra.gmra.mrb[32].mxu0 %vm1061_vm6, %v6986_v52  ;;  %v4340_v27 = vpop.f32.mrb[45].mxu1  ;;  %5616 = vmatmul.mubr.msk.bf16.vlgmr.msra.gmra.mrb[48].mxu1 %vm1061_vm6, %v6986_v52  ;;  %v4717_v52 = vld [vmem:[%s7480_s13 + $0x120] sm:$0xff] }
 0xaa8   :  { %v6074_v26 = vadd.f32 %v4176_v22, %v1857_v10  ;;  %v4178_v29 = vpop.f32.mrb[30].mxu0  ;;  %5948 = vmatpush3.bf16.msra.mxu0 %v5947_v11  ;;  %v6076_v31 = vadd.f32 %v4340_v27, %v1865_v12  ;;  %v4342_v54 = vpop.f32.mrb[46].mxu1  ;;  %5980 = vmatpush3.bf16.msra.mxu1 %v5979_v13  ;;  %v5987_v45 = vpack.c.bf16 %v4718_v28, %v4717_v52  ;;  %v4691_v13 = vld [vmem:[%s7480_s13 + $0x50] sm:$0xff]  ;;  %v4742_v22 = vld [vmem:[%s7480_s13 + $0x1e8] sm:$0xff]  ;;  %v4693_v27 = vld [vmem:[%s7480_s13 + $0x60] sm:$0xff] }
 0xaa9   :  { %v4179_v32 = vpop.f32.mrb[31].mxu0  ;;  %5950 = vmatprep.subr.bf16.mxu0 %v5949_v14  ;;  %v4343_v35 = vpop.f32.mrb[47].mxu1  ;;  %5982 = vmatprep.subr.bf16.mxu1 %v5981_v16  ;;  %v5963_v10 = vpack.c.bf16 %v4690_v63, %v4689_v62  ;;  %v5995_v11 = vpack.c.bf16 %v4722_v4, %v4721_v2  ;;  %v5965_v12 = vpack.c.bf16 %v4708_v6, %v4707_v5  ;;  %v4692_v14 = vld [vmem:[%s7480_s13 + $0x58] sm:$0xff]  ;;  %v4694_v29 = vld [vmem:[%s7480_s13 + $0x68] sm:$0xff]  ;;  %v4695_v28 = vld [vmem:[%s7480_s13 + $0x70] sm:$0xff] }
 0xaaa   :  { %v4674_v17 = vmax.f32 %v6074_v26, 0.0  ;;  %v4676_v41 = vmax.f32 %v6076_v31, 0.0  ;;  %v4724_v16 = vld [vmem:[%s7480_s13 + $0x158] sm:$0xff]  ;;  %v5967_v23 = vpack.c.bf16 %v4692_v14, %v4691_v13  ;;  %v5969_v26 = vpack.c.bf16 %v4710_v20, %v4709_v18  ;;  %v4726_v32 = vld [vmem:[%s7480_s13 + $0x168] sm:$0xff]  ;;  %v4795_v62 = vld [vmem:[%s7480_s13 + $0x390] sm:$0xff] }
 0xaab   :  { %v5999_v25 = vpack.c.bf16 %v4724_v16, %v4723_v15  ;;  %v1860_v31 = vsub.s32 2, %v7037_v44  ;;  %v6001_v54 = vpack.c.bf16 %v4742_v22, %v4741_v21  ;;  %v4744_v52 = vld [vmem:[%s7480_s13 + $0x1f8] sm:$0xff]  ;;  %v1853_v35 = vrot.slane %v7051_v56, %v1852_v24  ;;  %v4747_v5 = vld [vmem:[%s7480_s13 + $0x210] sm:$0xff]  ;;  %v4766_v13 = vld [vmem:[%s7480_s13 + $0x2a8] sm:$0xff] }
 0xaac   :  { %5952 = vmatpush3.bf16.msra.mxu0 %v5951_v30  ;;  %4880 = vmatprep.mubr.f32.mxu0 %v4674_v17  ;;  %v4725_v30 = vld [vmem:[%s7480_s13 + $0x160] sm:$0xff]  ;;  %v5971_v17 = vpack.c.bf16 %v4694_v29, %v4693_v27  ;;  %v6005_v53 = vpack.c.bf16 %v4744_v52, %v4743_v34  ;;  %v5975_v48 = vpack.c.bf16 %v4696_v55, %v4695_v28  ;;  %v4748_v6 = vld [vmem:[%s7480_s13 + $0x218] sm:$0xff]  ;;  %v4798_v15 = vld [vmem:[%s7480_s13 + $0x3a8] sm:$0xff] }
 0xaad   :  { %5984 = vmatpush3.bf16.msra.mxu1 %v5983_v40  ;;  %4950 = vmatprep.mubr.f32.mxu1 %v4676_v41  ;;  %v4711_v40 = vld [vmem:[%s7480_s13 + $0xf0] sm:$0xff]  ;;  %v1861_v41 = vrot.slane %v7051_v56, %v1860_v31  ;;  %v6073_v49 = vadd.f32 %v7091_v7, %v1853_v35  ;;  %v6011_v63 = vpack.c.bf16 %v4746_v1, %v4745_v19  ;;  %v4797_v14 = vld [vmem:[%s7480_s13 + $0x3a0] sm:$0xff]  ;;  %v4750_v21 = vld [vmem:[%s7480_s13 + $0x228] sm:$0xff] }
 0xaae   :  { %5954 = vmatprep.subr.bf16.mxu0 %v5953_v36  ;;  %5986 = vmatprep.subr.bf16.mxu1 %v5985_v37  ;;  %v6003_v36 = vpack.c.bf16 %v4726_v32, %v4725_v30  ;;  %v5973_v37 = vpack.c.bf16 %v4712_v33, %v4711_v40  ;;  %v4749_v20 = vld [vmem:[%s7480_s13 + $0x220] sm:$0xff]  ;;  %v4782_v24 = vld [vmem:[%s7480_s13 + $0x328] sm:$0xff]  ;;  %v4799_v27 = vld [vmem:[%s7480_s13 + $0x3b0] sm:$0xff] }
 0xaaf   :  { %v6075_v58 = vadd.f32 %v7102_v46, %v1861_v41  ;;  %v4796_v46 = vld [vmem:[%s7480_s13 + $0x398] sm:$0xff]  ;;  %v4673_v2 = vmax.f32 %v6073_v49, 0.0  ;;  %v4781_v22 = vld [vmem:[%s7480_s13 + $0x320] sm:$0xff]  ;;  %v6019_v30 = vpack.c.bf16 %v4750_v21, %v4749_v20  ;;  %v4751_v32 = vld [vmem:[%s7480_s13 + $0x230] sm:$0xff] }
 0xab0   :  { %5956 = vmatpush3.bf16.msra.mxu0 %v5955_v43  ;;  %v4761_v43 = vld [vmem:[%s7480_s13 + $0x280] sm:$0xff]  ;;  %v4800_v29 = vld [vmem:[%s7480_s13 + $0x3b8] sm:$0xff]  ;;  %v6051_v31 = vpack.c.bf16 %v4782_v24, %v4781_v22  ;;  %v4783_v33 = vld [vmem:[%s7480_s13 + $0x330] sm:$0xff] }
 0xab1   :  { %5988 = vmatpush3.bf16.msra.mxu1 %v5987_v45  ;;  %5958 = vmatprep.subr.bf16.mxu0 %v5957_v47  ;;  %v4762_v45 = vld [vmem:[%s7480_s13 + $0x288] sm:$0xff]  ;;  %v4793_v47 = vld [vmem:[%s7480_s13 + $0x380] sm:$0xff]  ;;  %v4675_v9 = vmax.f32 %v6075_v58, 0.0  ;;  %v4752_v40 = vld [vmem:[%s7480_s13 + $0x238] sm:$0xff]  ;;  %v6053_v34 = vpack.c.bf16 %v4800_v29, %v4799_v27  ;;  %v1872_v27 = vsub.s32 5, %v7037_v44  ;;  %v1880_v29 = vsub.s32 7, %v7037_v44 }
 0xab2   :  { %5990 = vmatprep.subr.bf16.mxu1 %v5989_v50  ;;  %v6007_v50 = vpack.c.bf16 %v4728_v42, %v4727_v38  ;;  %v6009_v51 = vpack.c.bf16 %v4762_v45, %v4761_v43  ;;  %v6041_v7 = vpack.c.bf16 %v4794_v0, %v4793_v47  ;;  %v4784_v52 = vld [vmem:[%s7480_s13 + $0x338] sm:$0xff]  ;;  %v4770_v35 = vld [vmem:[%s7480_s13 + $0x2c8] sm:$0xff]  ;;  %v6023_v28 = vpack.c.bf16 %v4752_v40, %v4751_v32  ;;  %v4753_v41 = vld [vmem:[%s7480_s13 + $0x240] sm:$0xff] }
 0xab3   :  { %v6055_v55 = vpack.c.bf16 %v4784_v52, %v4783_v33  ;;  %v4785_v42 = vld [vmem:[%s7480_s13 + $0x340] sm:$0xff]  ;;  %v4786_v45 = vld [vmem:[%s7480_s13 + $0x348] sm:$0xff]  ;;  %v4771_v47 = vld [vmem:[%s7480_s13 + $0x2d0] sm:$0xff]  ;;  %v1881_v32 = vrot.slane %v7051_v56, %v1880_v29 }
 0xab4   :  { %5960 = vmatpush3.bf16.msra.mxu0 %v5959_v60  ;;  %v4778_v60 = vld [vmem:[%s7480_s13 + $0x308] sm:$0xff]  ;;  %v4772_v0 = vld [vmem:[%s7480_s13 + $0x2d8] sm:$0xff]  ;;  %v4755_v1 = vld [vmem:[%s7480_s13 + $0x250] sm:$0xff] }
 0xab5   :  { %5992 = vmatpush3.bf16.msra.mxu1 %v5991_v59  ;;  %5962 = vmatprep.subr.bf16.mxu0 %v5961_v61  ;;  %v4763_v59 = vld [vmem:[%s7480_s13 + $0x290] sm:$0xff]  ;;  %v4764_v61 = vld [vmem:[%s7480_s13 + $0x298] sm:$0xff]  ;;  %v6029_v19 = vpack.c.bf16 %v4772_v0, %v4771_v47 }
 0xab6   :  { %5994 = vmatprep.subr.bf16.mxu1 %v5993_v3  ;;  %v6043_v3 = vpack.c.bf16 %v4778_v60, %v4777_v57  ;;  %v6013_v4 = vpack.c.bf16 %v4764_v61, %v4763_v59  ;;  %v4804_v49 = vld [vmem:[%s7480_s13 + $0x3d8] sm:$0xff]  ;;  %v4787_v58 = vld [vmem:[%s7480_s13 + $0x350] sm:$0xff]  ;;  %v4773_v59 = vld [vmem:[%s7480_s13 + $0x2e0] sm:$0xff] }
 0xab7   :  { %v4756_v57 = vld [vmem:[%s7480_s13 + $0x258] sm:$0xff]  ;;  %v4774_v61 = vld [vmem:[%s7480_s13 + $0x2e8] sm:$0xff]  ;;  %v4791_v22 = vld [vmem:[%s7480_s13 + $0x370] sm:$0xff] }
 0xab8   :  { %5964 = vmatpush3.bf16.msra.mxu0 %v5963_v10  ;;  %v6045_v10 = vpack.c.bf16 %v4796_v46, %v4795_v62  ;;  %v4788_v60 = vld [vmem:[%s7480_s13 + $0x358] sm:$0xff]  ;;  %v4805_v62 = vld [vmem:[%s7480_s13 + $0x3e0] sm:$0xff]  ;;  %v4806_v46 = vld [vmem:[%s7480_s13 + $0x3e8] sm:$0xff] }
 0xab9   :  { %5996 = vmatpush3.bf16.msra.mxu1 %v5995_v11  ;;  %5966 = vmatprep.subr.bf16.mxu0 %v5965_v12  ;;  %v4780_v11 = vld [vmem:[%s7480_s13 + $0x318] sm:$0xff]  ;;  %v4765_v12 = vld [vmem:[%s7480_s13 + $0x2a0] sm:$0xff] }
 0xaba   :  { %5998 = vmatprep.subr.bf16.mxu1 %v5997_v39  ;;  %v6015_v39 = vpack.c.bf16 %v4748_v6, %v4747_v5  ;;  %v6047_v16 = vpack.c.bf16 %v4780_v11, %v4779_v8  ;;  %v6017_v18 = vpack.c.bf16 %v4766_v13, %v4765_v12  ;;  %v4757_v5 = vld [vmem:[%s7480_s13 + $0x260] sm:$0xff]  ;;  %v4758_v6 = vld [vmem:[%s7480_s13 + $0x268] sm:$0xff]  ;;  %v4775_v12 = vld [vmem:[%s7480_s13 + $0x2f0] sm:$0xff] }
 0xabb   :  { %v4789_v8 = vld [vmem:[%s7480_s13 + $0x360] sm:$0xff]  ;;  %v4776_v13 = vld [vmem:[%s7480_s13 + $0x2f8] sm:$0xff] }
 0xabc   :  { %5968 = vmatpush3.bf16.msra.mxu0 %v5967_v23  ;;  %v6049_v23 = vpack.c.bf16 %v4798_v15, %v4797_v14  ;;  %v4807_v14 = vld [vmem:[%s7480_s13 + $0x3f0] sm:$0xff]  ;;  %v6037_v15 = vpack.c.bf16 %v4776_v13, %v4775_v12  ;;  %v5617_v47 = vld [vmem:[#allocation15] ss:$0 sm:$0xff] }
 0xabd   :  { %6000 = vmatpush3.bf16.msra.mxu1 %v5999_v25  ;;  %5970 = vmatprep.subr.bf16.mxu0 %v5969_v26  ;;  %v4767_v25 = vld [vmem:[%s7480_s13 + $0x2b0] sm:$0xff]  ;;  %v4768_v26 = vld [vmem:[%s7480_s13 + $0x2b8] sm:$0xff] }
 0xabe   :  { %6002 = vmatprep.subr.bf16.mxu1 %v6001_v54  ;;  %v6021_v54 = vpack.c.bf16 %v4768_v26, %v4767_v25  ;;  %v1868_v25 = vsub.s32 4, %v7037_v44  ;;  %v1876_v26 = vsub.s32 6, %v7037_v44 }
 0xac0   :  { %5972 = vmatpush3.bf16.msra.mxu0 %v5971_v17  ;;  %v4769_v17 = vld [vmem:[%s7480_s13 + $0x2c0] sm:$0xff] }
 0xac1   :  { %6004 = vmatpush3.bf16.msra.mxu1 %v6003_v36  ;;  %5974 = vmatprep.subr.bf16.mxu0 %v5973_v37  ;;  %v4801_v36 = vld [vmem:[%s7480_s13 + $0x3c0] sm:$0xff]  ;;  %v4802_v37 = vld [vmem:[%s7480_s13 + $0x3c8] sm:$0xff]  ;;  %v6025_v38 = vpack.c.bf16 %v4770_v35, %v4769_v17 }
 0xac2   :  { %6006 = vmatprep.subr.bf16.mxu1 %v6005_v53  ;;  %v4754_v53 = vld [vmem:[%s7480_s13 + $0x248] sm:$0xff]  ;;  %v6057_v43 = vpack.c.bf16 %v4802_v37, %v4801_v36 }
 0xac4   :  { %5976 = vmatpush3.bf16.msra.mxu0 %v5975_v48  ;;  %v4803_v48 = vld [vmem:[%s7480_s13 + $0x3d0] sm:$0xff] }
 0xac5   :  { %6008 = vmatpush3.bf16.msra.mxu1 %v6007_v50  ;;  %6010 = vmatprep.subr.bf16.mxu0 %v6009_v51  ;;  %v6027_v50 = vpack.c.bf16 %v4754_v53, %v4753_v41  ;;  %v6059_v51 = vpack.c.bf16 %v4786_v45, %v4785_v42 }
 0xac6   :  { %6042 = vmatprep.subr.bf16.mxu1 %v6041_v7  ;;  %v6061_v7 = vpack.c.bf16 %v4804_v49, %v4803_v48 }
 0xac7   :  { %4881 = vmatmul.mubr.f32.vlgmr.msra.gmra.mrb[36].mxu0 %v4673_v2  ;;  %v6063_v2 = vpack.c.bf16 %v4788_v60, %v4787_v58 }
 0xac8   :  { %4951 = vmatmul.mubr.f32.vlgmr.msra.gmra.mrb[52].mxu1 %v4675_v9  ;;  %6012 = vmatpush3.bf16.msra.mxu0 %v6011_v63  ;;  %v6031_v63 = vpack.c.bf16 %v4756_v57, %v4755_v1  ;;  %v6035_v9 = vpack.c.bf16 %v4758_v6, %v4757_v5 }
 0xac9   :  { %6044 = vmatpush3.bf16.msra.mxu1 %v6043_v3  ;;  %6014 = vmatprep.subr.bf16.mxu0 %v6013_v4  ;;  %v6033_v3 = vpack.c.bf16 %v4774_v61, %v4773_v59  ;;  %v6065_v4 = vpack.c.bf16 %v4806_v46, %v4805_v62 }
 0xaca   :  { %6046 = vmatprep.subr.bf16.mxu1 %v6045_v10  ;;  %v4790_v10 = vld [vmem:[%s7480_s13 + $0x368] sm:$0xff] }
 0xacb   :  { %v6067_v11 = vpack.c.bf16 %v4790_v10, %v4789_v8 }
 0xacc   :  { %6016 = vmatpush3.bf16.msra.mxu0 %v6015_v39  ;;  %v4808_v39 = vld [vmem:[%s7480_s13 + $0x3f8] sm:$0xff] }
 0xacd   :  { %6048 = vmatpush3.bf16.msra.mxu1 %v6047_v16  ;;  %6018 = vmatprep.subr.bf16.mxu0 %v6017_v18  ;;  %v4759_v16 = vld [vmem:[%s7480_s13 + $0x270] sm:$0xff]  ;;  %v4760_v18 = vld [vmem:[%s7480_s13 + $0x278] sm:$0xff]  ;;  %v6069_v20 = vpack.c.bf16 %v4808_v39, %v4807_v14 }
 0xace   :  { %6050 = vmatprep.subr.bf16.mxu1 %v6049_v23  ;;  %v6039_v21 = vpack.c.bf16 %v4760_v18, %v4759_v16  ;;  %v4792_v23 = vld [vmem:[%s7480_s13 + $0x378] sm:$0xff]  ;;  %s6430_s13 = smov [#allocation16]  }
 0xacf   :  { %v6071_v24 = vpack.c.bf16 %v4792_v23, %v4791_v22  ;;  %s5104_s20 = sshll.u32 %s6430_s13, 4  ;;  %s5105_s20 = int_to_ptr.vmem [resolvable:$true] %s5104_s20 }
 0xad0   :  { %6020 = vmatpush3.bf16.msra.mxu0 %v6019_v30  ;;  %v1869_v30 = vrot.slane %v7051_v56, %v1868_v25  ;;  %s6371_s22 = scalar_lea.vmem %s5105_s20, 32  ;;  %p6376_p9 = scmp.lt.s32.totalorder %s5105_s20, %s5105_s20 }
 0xad1   :  { %6052 = vmatpush3.bf16.msra.mxu1 %v6051_v31  ;;  %6022 = vmatprep.subr.bf16.mxu0 %v6021_v54  ;;  %v1877_v31 = vrot.slane %v7051_v56, %v1876_v26  ;;  %v1873_v54 = vrot.slane %v7051_v56, %v1872_v27  ;;  %p6372_p8 = scmp.ne.s32.totalorder %s5105_s20, %s6371_s22  ;;  %p6377_p10 = scmp.lt.s32.totalorder %s6371_s22, %s6371_s22 }
 0xad2   :  { %6054 = vmatprep.subr.bf16.mxu1 %v6053_v34 }
 0xad3   :  { %p6378_p11 = por %p6377_p10, %p6376_p9 }
 0xad4   :  { %6024 = vmatpush3.bf16.msra.mxu0 %v6023_v28 }
 0xad5   :  { %6056 = vmatpush3.bf16.msra.mxu1 %v6055_v55  ;;  %6026 = vmatprep.subr.bf16.mxu0 %v6025_v38  ;;  %p6379_p12 = pnand %p6378_p11, %p6372_p8 }
 0xad6   :  { %6058 = vmatprep.subr.bf16.mxu1 %v6057_v43 }
 0xad8   :  { %6028 = vmatpush3.bf16.msra.mxu0 %v6027_v50 }
 0xad9   :  { %6060 = vmatpush3.bf16.msra.mxu1 %v6059_v51  ;;  %6030 = vmatprep.subr.bf16.mxu0 %v6029_v19 }
 0xada   :  { %6062 = vmatprep.subr.bf16.mxu1 %v6061_v7 }
 0xadc   :  { %6032 = vmatpush3.bf16.msra.mxu0 %v6031_v63 }
 0xadd   :  { %6064 = vmatpush3.bf16.msra.mxu1 %v6063_v2  ;;  %6034 = vmatprep.subr.bf16.mxu0 %v6033_v3 }
 0xade   :  { %6066 = vmatprep.subr.bf16.mxu1 %v6065_v4 }
 0xae0   :  { %6036 = vmatpush3.bf16.msra.mxu0 %v6035_v9 }
 0xae1   :  { %6068 = vmatpush3.bf16.msra.mxu1 %v6067_v11  ;;  %6038 = vmatprep.subr.bf16.mxu0 %v6037_v15 }
 0xae2   :  { %6070 = vmatprep.subr.bf16.mxu1 %v6069_v20 }
 0xae4   :  { %6040 = vmatpush3.bf16.msra.mxu0 %v6039_v21 }
 0xae5   :  { %6072 = vmatpush3.bf16.msra.mxu1 %v6071_v24 }
 0xb7a   :  { %v4502_v40 = vpop.f32.mrb[32].mxu0  ;;  %v4666_v34 = vpop.f32.mrb[48].mxu1 }
 0xb7b   :  { %v6077_v33 = vadd.f32 %v4502_v40, %v1869_v30  ;;  %v4504_v52 = vpop.f32.mrb[33].mxu0  ;;  %v6079_v17 = vadd.f32 %v4666_v34, %v1877_v31  ;;  %v4668_v36 = vpop.f32.mrb[49].mxu1 }
 0xb7c   :  { %v6078_v35 = vadd.f32 %v4504_v52, %v1873_v54  ;;  %v4506_v37 = vpop.f32.mrb[34].mxu0  ;;  %v6080_v28 = vadd.f32 %v4668_v36, %v1881_v32  ;;  %v4670_v55 = vpop.f32.mrb[50].mxu1 }
 0xb7d   :  { %v4507_v38 = vpop.f32.mrb[35].mxu0  ;;  %v4671_v41 = vpop.f32.mrb[51].mxu1  ;;  %v4677_v53 = vmax.f32 %v6077_v33, 0.0  ;;  %v4679_v43 = vmax.f32 %v6079_v17, 0.0 }
 0xb7e   :  { %v4678_v44 = vmax.f32 %v6078_v35, 0.0  ;;  %v4680_v42 = vmax.f32 %v6080_v28, 0.0 }
 0xb80   :  { %5020 = vmatprep.mubr.f32.mxu0 %v4678_v44  ;;  %5090 = vmatprep.mubr.f32.mxu1 %v4680_v42 }
 0xb81   :  { %5021 = vmatmul.mubr.f32.vlgmr.msra.gmra.mrb[38].mxu0 %v4677_v53  ;;  %5091 = vmatmul.mubr.f32.vlgmr.msra.gmra.mrb[54].mxu1 %v4679_v43 }
 0xb9a   :  { %v5703_v56 = vpop.f32.mrb[36].mxu0 }
 0xb9b   :  { %v5738_v45 = vpop.f32.mrb[52].mxu1  ;;  %v5704_v0 = vpop.f32.mrb[37].mxu0 }
 0xb9c   :  { %v5705_v48 = vadd.f32 %v5704_v0, %v5703_v56  ;;  %v5739_v49 = vpop.f32.mrb[53].mxu1 }
 0xb9d   :  { %v5740_v50 = vadd.f32 %v5739_v49, %v5738_v45 }
 0xb9e   :  { %v4883_v51 = vadd.f32 %v5705_v48, %v5617_v47 }
 0xba0   :  { %v4953_v19 = vadd.f32 %v5740_v50, %v4883_v51 }
 0xc54   :  { %v5773_v1 = vpop.f32.mrb[38].mxu0  ;;  %v5808_v57 = vpop.f32.mrb[54].mxu1 }
 0xc55   :  { %v5774_v58 = vpop.f32.mrb[39].mxu0  ;;  %v5809_v60 = vpop.f32.mrb[55].mxu1 }
 0xc56   :  { %v5775_v7 = vadd.f32 %v5774_v58, %v5773_v1  ;;  %v5810_v59 = vadd.f32 %v5809_v60, %v5808_v57 }
 0xc58   :  { %v5023_v61 = vadd.f32 %v5775_v7, %v4953_v19 }
 0xc5a   :  { %v5093_v62 = vadd.f32 %v5810_v59, %v5023_v61 }
 0xc5c   :  { %5097 = vst.msk [vmem:[#allocation16] sm:$0x3] %vm5096_vm14, %v5093_v62 }
 0xc5d   :  { %6382 = shalt.err (!%p6379_p12)
}
 0xc5e   :  { %s6383_s10 = scalar_lea.hbm %s7482_s15, 32 }
 0xc5f   :  { %p6384_p13 = scmp.ne.s32.totalorder %s7482_s15, %s6383_s10  ;;  %p6387_p0 = scmp.lt.u32.totalorder %s6383_s10, %s7482_s15 }
 0xc61   :  { %p6389_p1 = pnand %p6387_p0, %p6384_p13 }
 0xc63   :  { %6392 = shalt.err (!%p6389_p1)
}
 0xc64   :  { %5107 = dma.vmem_to_hbm [thread:$0]  %s5105_s20, 32, %s7482_s15, [#allocation6]  }
 0xc65   :  { %6403 = dma.done.wait [#allocation6], 32  }
 0xc66   :  { %6404 = vsyncadd [#allocation6], 4294967264 }
 0xc67   :  { %5111 = vsyncpa [#allocation5], 1 }
 0xc68   :  { %5112 = vsyncpa [#allocation8], 1 }
 0xc69   :  { %5113 = vsyncpa [#allocation11], 1 }
 0xc6a   :  { %5114 = vsyncpa [#allocation14], 1 }
 0xc6b   :  { %5115 = vsyncpa [#allocation6], 1 }
 0xc6c   :  { %5116 = vsyncmov [#allocation3] }
 0xc6f   :  { %s5117_s21 = vpop.sfrf %5116 }
 0xc70   :  { %p5618_p2 = scmp.ne.s32.totalorder %s5117_s21, 0 }
 0xc72   :  { %5121 = shalt.err (%p5618_p2)  }

</bundles_post_ra>
